<compile_context>
chip_gen: v7x
topology: tpu7x:2x2x1
jax: 0.10.0
libtpu: 0.0.40
codegen_flags: <defaults>
</compile_context>

<pallas_src>
import jax
import jax.numpy as jnp
from jax.experimental import pallas as pl
from jax.experimental.pallas import tpu as pltpu


def _small_k_matmul(w, x):
    """(M, K) @ (K, N) with tiny K via VPU broadcast-FMAs (avoids padding the MXU)."""
    acc = w[:, 0:1] * x[0:1, :]
    for c in range(1, w.shape[1]):
        acc = acc + w[:, c:c + 1] * x[c:c + 1, :]
    return acc


# ----------------------------------------------------------------------------
# Kernel 1: encoders + step-invariant attention/pointer terms, lane-chunked.
#   stdy : (Cs+Cd, Lc)  folded (city-major, batch-minor) lanes
#   hd   = [sh; dh] = Wsd @ stdy + bsd          (VPU FMAs, K small)
#   [a;e]= Wae (2H,2H) @ hd                     (one 256-shaped MXU matmul)
# ----------------------------------------------------------------------------
def _precompute_kernel(stdy_ref, wsd_ref, bsd_ref, wae_ref, sh_ref, a_ref, e_ref):
    H = sh_ref.shape[0]
    hd = _small_k_matmul(wsd_ref[...], stdy_ref[...]) + bsd_ref[...]      # (2H, Lc) f32
    sh_ref[...] = hd[0:H, :].astype(sh_ref.dtype)
    ae = jnp.dot(wae_ref[...], hd, preferred_element_type=jnp.float32)    # (2H, Lc)
    a_ref[...] = ae[0:H, :].astype(a_ref.dtype)
    e_ref[...] = ae[H:2 * H, :].astype(e_ref.dtype)


# ----------------------------------------------------------------------------
# Kernel 2: fully fused decode loop. Batch on lanes, cities on sublanes.
#   st : (Cs, S, TB) f32    sh/a/e : (H, S, TB) bf16
#   outputs idx/logp : (MS, TB), one lane-dense row written per step.
# ----------------------------------------------------------------------------
def _decode_kernel(st_ref, sh_ref, a_ref, e_ref,
                   wdec_ref, bdec_ref, wgru_ref, bgru_ref,
                   wah_ref, va_ref, wpc_ref, vp_ref,
                   idx_ref, logp_ref,
                   h_sc, din_sc):
    Cs, S, TB = st_ref.shape
    H = wah_ref.shape[0]
    MS = idx_ref.shape[0]

    # loop-invariant small weights
    wdec = wdec_ref[...]
    bdec = bdec_ref[...]
    wgru = wgru_ref[...]
    bgru = bgru_ref[...]
    wah = wah_ref[...]
    va = va_ref[...]
    wpc = wpc_ref[...]
    vp = vp_ref[...]

    row_f = jax.lax.broadcasted_iota(jnp.int32, (S, TB), 0).astype(jnp.float32)

    # decoder_input = x0 = zeros; last_hh = None -> zeros
    h_sc[...] = jnp.zeros(h_sc.shape, jnp.float32)
    din_sc[...] = jnp.zeros(din_sc.shape, jnp.float32)

    @pl.loop(0, MS)
    def _step(step):
        h_old = h_sc[...]                                                  # (H, TB)

        # decoder 1x1 conv (K = Cs, tiny -> VPU FMAs)
        x = _small_k_matmul(wdec, din_sc[...]) + bdec                      # (H, TB)

        # GRU cell: single merged (4H, 2H) @ (2H, TB) matmul
        #   rows 0:2H  -> r,z preacts (b_ih + b_hh pre-added)
        #   rows 2H:3H -> W_in@x + b_in        rows 3H:4H -> W_hn@h + b_hn
        g = jnp.dot(wgru, jnp.concatenate([x, h_old], axis=0),
                    preferred_element_type=jnp.float32) + bgru             # (4H, TB)
        r = jax.nn.sigmoid(g[0:H])
        z = jax.nn.sigmoid(g[H:2 * H])
        n = jnp.tanh(g[2 * H:3 * H] + r * g[3 * H:4 * H])
        h_new = (1.0 - z) * n + z * h_old                                  # (H, TB)
        h_sc[...] = h_new

        # Attention: hoisted a = Wa_s@sh + Wa_d@dh; per-step only Wa_h @ h.
        hterm = jnp.dot(wah, h_new, preferred_element_type=jnp.float32)    # (H, TB)
        att = jnp.tanh(a_ref[...] + hterm[:, None, :].astype(jnp.bfloat16))  # bf16 (H,S,TB)
        scores = jnp.sum(va[:, :, None] * att, axis=0)                     # f32 (S, TB)
        sm = jnp.max(scores, axis=0, keepdims=True)
        se = jnp.exp(scores - sm)
        attn = se * pl.reciprocal(jnp.sum(se, axis=0, keepdims=True), approx=True)

        # Context + pointer logits: hoisted e = Wp_s@sh; per-step Wp_c @ ctx.
        ctx = jnp.sum(sh_ref[...] * attn[None, :, :], axis=1)              # f32 (H, TB)
        cterm = jnp.dot(wpc, ctx, preferred_element_type=jnp.float32)      # (H, TB)
        energy = jnp.tanh(e_ref[...] + cterm[:, None, :].astype(jnp.bfloat16))
        logits = jnp.sum(vp[:, :, None] * energy, axis=0)                  # f32 (S, TB)

        # Greedy decode; mask_fn=None -> mask all ones -> log(mask) == 0.
        # Exact log-prob: logit[ptr] == lm  =>  logp = -log(sum(exp(logits - lm))).
        lm = jnp.max(logits, axis=0, keepdims=True)                        # (1, TB)
        ssum = jnp.sum(jnp.exp(logits - lm), axis=0, keepdims=True)        # (1, TB)
        logp = -jnp.log(ssum)
        ptr_f = jnp.min(jnp.where(logits == lm, row_f, jnp.float32(S)),
                        axis=0, keepdims=True)                             # first argmax
        onehot = (row_f == ptr_f).astype(jnp.float32)                      # (S, TB)

        # next decoder input: static[b, :, ptr_b] via one-hot reduce (f32, exact)
        din_sc[...] = jnp.sum(st_ref[...] * onehot[None, :, :], axis=1)    # (Cs, TB)

        idx_ref[pl.ds(step, 1), :] = ptr_f.astype(jnp.int32)
        logp_ref[pl.ds(step, 1), :] = logp


# ----------------------------------------------------------------------------
# Forward (eval/greedy, update_fn=None, mask_fn=None)
# ----------------------------------------------------------------------------
@jax.jit
def drl4tsp_forward(params, static, dynamic):
    B, Cs, S = static.shape
    Cd = dynamic.shape[1]
    H = params['w_static'].shape[0]
    MS = S                               # mask_fn is None -> max_steps = S
    # NOTE: the torch reference builds a (B,S,S) distance matrix consumed only by
    # update_fn (None here) -> dropped entirely.

    # Batch tiling: batch rides the 128-lane axis. For B > 128 we use 128-lane
    # tiles (parallel grid -> both v7x TensorCores); for B <= 128 a single tile.
    TB = B if B <= 128 else 128
    Bp = -(-B // TB) * TB
    nb = Bp // TB
    if Bp != B:
        static = jnp.pad(static, ((0, Bp - B), (0, 0), (0, 0)))
        dynamic = jnp.pad(dynamic, ((0, Bp - B), (0, 0), (0, 0)))

    # One-time layout plumbing in XLA: (B,C,S) -> (C,S,B): features lead,
    # cities on sublanes, batch on lanes.
    st_t = jnp.transpose(static, (1, 2, 0))                     # (Cs, S, Bp) f32
    dy_t = jnp.transpose(dynamic, (1, 2, 0))                    # (Cd, S, Bp) f32
    stdy2 = jnp.concatenate([st_t, dy_t], axis=0).reshape(Cs + Cd, S * Bp)

    f32 = jnp.float32
    # Stacked encoder weights: hd = [sh; dh] = Wsd @ [static; dynamic] + bsd
    wsd = jnp.concatenate([
        jnp.concatenate([params['w_static'], jnp.zeros((H, Cd), f32)], axis=1),
        jnp.concatenate([jnp.zeros((H, Cs), f32), params['w_dynamic']], axis=1)],
        axis=0)                                                 # (2H, Cs+Cd)
    bsd = jnp.concatenate([params['b_static'], params['b_dynamic']], axis=0)   # (2H, 1)
    # Merged hoisted attention/pointer weights: [a; e] = Wae @ [sh; dh]
    wae = jnp.concatenate([
        jnp.concatenate([params['wa_s'], params['wa_d']], axis=1),
        jnp.concatenate([params['wp_s'], jnp.zeros((H, H), f32)], axis=1)],
        axis=0)                                                 # (2H, 2H)
    # Merged GRU weights: [r,z | gi_n | gh_n] = Wgru @ [x; h] + bgru
    wih, whh = params['w_ih'], params['w_hh']
    bih, bhh = params['b_ih'], params['b_hh']
    wgru = jnp.concatenate([
        jnp.concatenate([wih[0:2 * H], whh[0:2 * H]], axis=1),
        jnp.concatenate([wih[2 * H:3 * H], jnp.zeros((H, H), f32)], axis=1),
        jnp.concatenate([jnp.zeros((H, H), f32), whh[2 * H:3 * H]], axis=1)],
        axis=0)                                                 # (4H, 2H)
    bgru = jnp.concatenate([bih[0:2 * H] + bhh[0:2 * H],
                            bih[2 * H:3 * H], bhh[2 * H:3 * H]], axis=0)   # (4H, 1)

    # ---- precompute: lane-chunked, HBM-bandwidth bound ----
    Ltot = S * Bp
    if Ltot <= 4096:
        Lc, nl = Ltot, 1
    else:
        Lc, nl = 2048, -(-Ltot // 2048)

    pre_vmem = int(2 * ((Cs + Cd) * Lc * 4 + 3 * H * Lc * 2)    # io blocks, double-buffered
                   + 8 * H * Lc * 4                             # (2H, Lc) f32 temporaries
                   + (2 << 20))
    pre_vmem = min(max(pre_vmem, 8 << 20), 100 << 20)

    sh2, a2, e2 = pl.pallas_call(
        _precompute_kernel,
        out_shape=(jax.ShapeDtypeStruct((H, Ltot), jnp.bfloat16),
                   jax.ShapeDtypeStruct((H, Ltot), jnp.bfloat16),
                   jax.ShapeDtypeStruct((H, Ltot), jnp.bfloat16)),
        grid=(nl,),
        in_specs=[
            pl.BlockSpec((Cs + Cd, Lc), lambda li: (0, li)),
            pl.BlockSpec((2 * H, Cs + Cd), lambda li: (0, 0)),
            pl.BlockSpec((2 * H, 1), lambda li: (0, 0)),
            pl.BlockSpec((2 * H, 2 * H), lambda li: (0, 0)),
        ],
        out_specs=(pl.BlockSpec((H, Lc), lambda li: (0, li)),
                   pl.BlockSpec((H, Lc), lambda li: (0, li)),
                   pl.BlockSpec((H, Lc), lambda li: (0, li))),
        compiler_params=pltpu.CompilerParams(
            dimension_semantics=("parallel",),
            vmem_limit_bytes=pre_vmem),
    )(stdy2, wsd, bsd, wae)

    sh3 = sh2.reshape(H, S, Bp)          # free bitcast: lane fold was (S-major, B-minor)
    a3 = a2.reshape(H, S, Bp)
    e3 = e2.reshape(H, S, Bp)

    # ---- decode: whole S-step loop fused in one kernel per batch tile ----
    dec_in = Cs * S * TB * 4 + 3 * H * S * TB * 2               # per input buffer
    dec_w = (H * Cs + H + 8 * H * H + 4 * H + 2 * H * H + 2 * H) * 4
    dec_out = 2 * MS * TB * 4
    dec_tmp = 4 * H * S * TB * 4 + 8 * H * TB * 4 + 8 * S * TB * 4
    dec_vmem = int(2 * dec_in + 2 * dec_out + 2 * dec_w + dec_tmp + (2 << 20))
    dec_vmem = min(max(dec_vmem, 8 << 20), 110 << 20)

    idx_t, logp_t = pl.pallas_call(
        _decode_kernel,
        out_shape=(jax.ShapeDtypeStruct((MS, Bp), jnp.int32),
                   jax.ShapeDtypeStruct((MS, Bp), jnp.float32)),
        grid=(nb,),
        in_specs=[
            pl.BlockSpec((Cs, S, TB), lambda bi: (0, 0, bi)),
            pl.BlockSpec((H, S, TB), lambda bi: (0, 0, bi)),
            pl.BlockSpec((H, S, TB), lambda bi: (0, 0, bi)),
            pl.BlockSpec((H, S, TB), lambda bi: (0, 0, bi)),
            pl.BlockSpec((H, Cs), lambda bi: (0, 0)),
            pl.BlockSpec((H, 1), lambda bi: (0, 0)),
            pl.BlockSpec((4 * H, 2 * H), lambda bi: (0, 0)),
            pl.BlockSpec((4 * H, 1), lambda bi: (0, 0)),
            pl.BlockSpec((H, H), lambda bi: (0, 0)),
            pl.BlockSpec((H, 1), lambda bi: (0, 0)),
            pl.BlockSpec((H, H), lambda bi: (0, 0)),
            pl.BlockSpec((H, 1), lambda bi: (0, 0)),
        ],
        out_specs=(pl.BlockSpec((MS, TB), lambda bi: (0, bi)),
                   pl.BlockSpec((MS, TB), lambda bi: (0, bi))),
        scratch_shapes=[pltpu.VMEM((H, TB), jnp.float32),       # GRU hidden state
                        pltpu.VMEM((Cs, TB), jnp.float32)],     # decoder input
        compiler_params=pltpu.CompilerParams(
            dimension_semantics=("parallel",),
            vmem_limit_bytes=dec_vmem),
    )(st_t, sh3, a3, e3,
      params['w_decoder'], params['b_decoder'], wgru, bgru,
      params['wa_h'], params['va'], params['wp_c'], params['vp'])

    tour_idx = jnp.transpose(idx_t)[:B]                         # (B, MS)
    tour_logp = jnp.transpose(logp_t)[:B]
    return tour_idx, tour_logp


# ----------------------------------------------------------------------------
# Parameter init (deterministic, xavier-style; shapes from module __init__)
# ----------------------------------------------------------------------------
def init_params(key, static_size, dynamic_size, hidden_size):
    H = hidden_size
    ks = jax.random.split(key, 14)

    def xavier(k, shape):
        fan_out, fan_in = shape[0], shape[1]
        bound = (6.0 / (fan_in + fan_out)) ** 0.5
        return jax.random.uniform(k, shape, jnp.float32, -bound, bound)

    def unif(k, shape, bound):
        return jax.random.uniform(k, shape, jnp.float32, -bound, bound)

    gb = 1.0 / (H ** 0.5)
    w_static = xavier(ks[0], (H, static_size))
    b_static = unif(ks[1], (H, 1), 1.0 / (static_size ** 0.5))
    w_dynamic = xavier(ks[2], (H, dynamic_size))
    b_dynamic = unif(ks[3], (H, 1), 1.0 / (dynamic_size ** 0.5))
    w_decoder = xavier(ks[4], (H, static_size))
    b_decoder = unif(ks[5], (H, 1), 1.0 / (static_size ** 0.5))
    # GRU (1 layer): weight_ih/hh (3H, H), biases stored as (3H, 1) columns
    w_ih = xavier(ks[6], (3 * H, H))
    w_hh = xavier(ks[7], (3 * H, H))
    b_ih = unif(ks[8], (3 * H, 1), gb)
    b_hh = unif(ks[9], (3 * H, 1), gb)
    # Attention: v (1,1,H) -> (H,1) column; W (1,H,3H) -> split along 3H
    va = xavier(ks[10], (H, 1))
    wa = xavier(ks[11], (H, 3 * H))
    # Pointer: v (1,1,H) -> (H,1); W (1,H,2H) -> split along 2H
    vp = xavier(ks[12], (H, 1))
    wp = xavier(ks[13], (H, 2 * H))

    return dict(
        w_static=w_static, b_static=b_static,
        w_dynamic=w_dynamic, b_dynamic=b_dynamic,
        w_decoder=w_decoder, b_decoder=b_decoder,
        w_ih=w_ih, w_hh=w_hh, b_ih=b_ih, b_hh=b_hh,
        wa_s=wa[:, 0:H], wa_d=wa[:, H:2 * H], wa_h=wa[:, 2 * H:3 * H], va=va,
        wp_s=wp[:, 0:H], wp_c=wp[:, H:2 * H], vp=vp,
    )


# ----------------------------------------------------------------------------
if __name__ == "__main__":
    # TODO(synk): training-mode Categorical sampling and update_fn/mask_fn hooks
    # are not implemented (reference config uses None / eval greedy path).
    B, static_size, dynamic_size, H, S = 2, 2, 2, 32, 8
    key = jax.random.PRNGKey(0)
    k_static, k_params = jax.random.split(key, 2)

    static = jax.random.uniform(k_static, (B, static_size, S), jnp.float32)
    dynamic = jnp.zeros((B, dynamic_size, S), jnp.float32)   # TSP: zero dynamic feats
    params = init_params(k_params, static_size, dynamic_size, H)

    tour_idx, tour_logp = drl4tsp_forward(params, static, dynamic)
    jax.block_until_ready((tour_idx, tour_logp))
    assert tour_idx.shape == (B, S) and tour_logp.shape == (B, S)
    assert bool(jnp.all(jnp.isfinite(tour_logp)))
    assert bool(jnp.all((tour_idx >= 0) & (tour_idx < S)))
    print("KERNEL_OK")
</pallas_src>

<mosaic_0001>
module attributes {stable_mosaic.version = 11 : i64} {
  func.func @_precompute_kernel(%arg0: i32, %arg1: memref<4x16xf32, #tpu.memory_space<vmem>>, %arg2: memref<64x4xf32, #tpu.memory_space<vmem>>, %arg3: memref<64x1xf32, #tpu.memory_space<vmem>>, %arg4: memref<64x64xf32, #tpu.memory_space<vmem>>, %arg5: memref<32x16xbf16, #tpu.memory_space<vmem>>, %arg6: memref<32x16xbf16, #tpu.memory_space<vmem>>, %arg7: memref<32x16xbf16, #tpu.memory_space<vmem>>) attributes {dimension_semantics = [#tpu.dimension_semantics<parallel>], iteration_bounds = array<i64: 1>, scalar_prefetch = 0 : i64, scratch_operands = 0 : i64, tpu.core_type = #tpu.core_type<tc>, window_params = [{transform_indices = @transform_0, window_bounds = array<i64: 4, 16>}, {pipeline_mode = #tpu.pipeline_mode<synchronous>, transform_indices = @transform_1, window_bounds = array<i64: 64, 4>}, {pipeline_mode = #tpu.pipeline_mode<synchronous>, transform_indices = @transform_2, window_bounds = array<i64: 64, 1>}, {pipeline_mode = #tpu.pipeline_mode<synchronous>, transform_indices = @transform_3, window_bounds = array<i64: 64, 64>}, {transform_indices = @transform_4, window_bounds = array<i64: 32, 16>}, {transform_indices = @transform_5, window_bounds = array<i64: 32, 16>}, {transform_indices = @transform_6, window_bounds = array<i64: 32, 16>}]} {
    %c0 = arith.constant 0 : index
    %c0_0 = arith.constant 0 : index
    %0 = vector.load %arg2[%c0, %c0_0] : memref<64x4xf32, #tpu.memory_space<vmem>>, vector<64x4xf32>
    %c0_1 = arith.constant 0 : index
    %c0_2 = arith.constant 0 : index
    %1 = vector.load %arg1[%c0_1, %c0_2] : memref<4x16xf32, #tpu.memory_space<vmem>>, vector<4x16xf32>
    %2 = vector.extract_strided_slice %0 {offsets = [0, 0], sizes = [64, 1], strides = [1, 1]} : vector<64x4xf32> to vector<64x1xf32>
    %3 = vector.extract_strided_slice %1 {offsets = [0, 0], sizes = [1, 16], strides = [1, 1]} : vector<4x16xf32> to vector<1x16xf32>
    %4 = vector.broadcast %2 : vector<64x1xf32> to vector<64x16xf32>
    %5 = vector.broadcast %3 : vector<1x16xf32> to vector<64x16xf32>
    %6 = arith.mulf %4, %5 : vector<64x16xf32>
    %7 = vector.extract_strided_slice %0 {offsets = [0, 1], sizes = [64, 1], strides = [1, 1]} : vector<64x4xf32> to vector<64x1xf32>
    %8 = vector.extract_strided_slice %1 {offsets = [1, 0], sizes = [1, 16], strides = [1, 1]} : vector<4x16xf32> to vector<1x16xf32>
    %9 = vector.broadcast %7 : vector<64x1xf32> to vector<64x16xf32>
    %10 = vector.broadcast %8 : vector<1x16xf32> to vector<64x16xf32>
    %11 = arith.mulf %9, %10 : vector<64x16xf32>
    %12 = arith.addf %6, %11 : vector<64x16xf32>
    %13 = vector.extract_strided_slice %0 {offsets = [0, 2], sizes = [64, 1], strides = [1, 1]} : vector<64x4xf32> to vector<64x1xf32>
    %14 = vector.extract_strided_slice %1 {offsets = [2, 0], sizes = [1, 16], strides = [1, 1]} : vector<4x16xf32> to vector<1x16xf32>
    %15 = vector.broadcast %13 : vector<64x1xf32> to vector<64x16xf32>
    %16 = vector.broadcast %14 : vector<1x16xf32> to vector<64x16xf32>
    %17 = arith.mulf %15, %16 : vector<64x16xf32>
    %18 = arith.addf %12, %17 : vector<64x16xf32>
    %19 = vector.extract_strided_slice %0 {offsets = [0, 3], sizes = [64, 1], strides = [1, 1]} : vector<64x4xf32> to vector<64x1xf32>
    %20 = vector.extract_strided_slice %1 {offsets = [3, 0], sizes = [1, 16], strides = [1, 1]} : vector<4x16xf32> to vector<1x16xf32>
    %21 = vector.broadcast %19 : vector<64x1xf32> to vector<64x16xf32>
    %22 = vector.broadcast %20 : vector<1x16xf32> to vector<64x16xf32>
    %23 = arith.mulf %21, %22 : vector<64x16xf32>
    %24 = arith.addf %18, %23 : vector<64x16xf32>
    %c0_3 = arith.constant 0 : index
    %c0_4 = arith.constant 0 : index
    %25 = vector.load %arg3[%c0_3, %c0_4] : memref<64x1xf32, #tpu.memory_space<vmem>>, vector<64x1xf32>
    %26 = vector.broadcast %25 : vector<64x1xf32> to vector<64x16xf32>
    %27 = arith.addf %24, %26 : vector<64x16xf32>
    %28 = vector.extract_strided_slice %27 {offsets = [0, 0], sizes = [32, 16], strides = [1, 1]} : vector<64x16xf32> to vector<32x16xf32>
    %29 = arith.truncf %28 : vector<32x16xf32> to vector<32x16xbf16>
    %c0_5 = arith.constant 0 : index
    %c0_6 = arith.constant 0 : index
    %30 = vector.load %arg5[%c0_5, %c0_6] : memref<32x16xbf16, #tpu.memory_space<vmem>>, vector<32x16xbf16>
    tpu.vector_store %arg5[%c0_5, %c0_6], %29 {strides = array<i32>} : memref<32x16xbf16, #tpu.memory_space<vmem>>, vector<32x16xbf16>,
    %c0_7 = arith.constant 0 : index
    %c0_8 = arith.constant 0 : index
    %31 = vector.load %arg4[%c0_7, %c0_8] : memref<64x64xf32, #tpu.memory_space<vmem>>, vector<64x64xf32>
    %cst = arith.constant dense<0.000000e+00> : vector<64x16xf32>
    %32 = tpu.matmul %31, %27, %cst {dimension_numbers = #tpu.dot_dimension_numbers<[1], [0], [0], [1], [0, 0, 1, 1], [], []>} : vector<64x64xf32>, vector<64x16xf32>, vector<64x16xf32> -> vector<64x16xf32>
    %33 = vector.extract_strided_slice %32 {offsets = [0, 0], sizes = [32, 16], strides = [1, 1]} : vector<64x16xf32> to vector<32x16xf32>
    %34 = arith.truncf %33 : vector<32x16xf32> to vector<32x16xbf16>
    %c0_9 = arith.constant 0 : index
    %c0_10 = arith.constant 0 : index
    %35 = vector.load %arg6[%c0_9, %c0_10] : memref<32x16xbf16, #tpu.memory_space<vmem>>, vector<32x16xbf16>
    tpu.vector_store %arg6[%c0_9, %c0_10], %34 {strides = array<i32>} : memref<32x16xbf16, #tpu.memory_space<vmem>>, vector<32x16xbf16>,
    %36 = vector.extract_strided_slice %32 {offsets = [32, 0], sizes = [32, 16], strides = [1, 1]} : vector<64x16xf32> to vector<32x16xf32>
    %37 = arith.truncf %36 : vector<32x16xf32> to vector<32x16xbf16>
    %c0_11 = arith.constant 0 : index
    %c0_12 = arith.constant 0 : index
    %38 = vector.load %arg7[%c0_11, %c0_12] : memref<32x16xbf16, #tpu.memory_space<vmem>>, vector<32x16xbf16>
    tpu.vector_store %arg7[%c0_11, %c0_12], %37 {strides = array<i32>} : memref<32x16xbf16, #tpu.memory_space<vmem>>, vector<32x16xbf16>,
    return
  }
  func.func @transform_0(%arg0: i32) -> (i32, i32) {
    %c0_i32 = arith.constant 0 : i32
    %c0_i32_0 = arith.constant 0 : i32
    return %c0_i32, %arg0 : i32, i32
  }
  func.func @transform_1(%arg0: i32) -> (i32, i32) {
    %c0_i32 = arith.constant 0 : i32
    %c0_i32_0 = arith.constant 0 : i32
    %c0_i32_1 = arith.constant 0 : i32
    return %c0_i32, %c0_i32_0 : i32, i32
  }
  func.func @transform_2(%arg0: i32) -> (i32, i32) {
    %c0_i32 = arith.constant 0 : i32
    %c0_i32_0 = arith.constant 0 : i32
    %c0_i32_1 = arith.constant 0 : i32
    return %c0_i32, %c0_i32_0 : i32, i32
  }
  func.func @transform_3(%arg0: i32) -> (i32, i32) {
    %c0_i32 = arith.constant 0 : i32
    %c0_i32_0 = arith.constant 0 : i32
    %c0_i32_1 = arith.constant 0 : i32
    return %c0_i32, %c0_i32_0 : i32, i32
  }
  func.func @transform_4(%arg0: i32) -> (i32, i32) {
    %c0_i32 = arith.constant 0 : i32
    %c0_i32_0 = arith.constant 0 : i32
    return %c0_i32, %arg0 : i32, i32
  }
  func.func @transform_5(%arg0: i32) -> (i32, i32) {
    %c0_i32 = arith.constant 0 : i32
    %c0_i32_0 = arith.constant 0 : i32
    return %c0_i32, %arg0 : i32, i32
  }
  func.func @transform_6(%arg0: i32) -> (i32, i32) {
    %c0_i32 = arith.constant 0 : i32
    %c0_i32_0 = arith.constant 0 : i32
    return %c0_i32, %arg0 : i32, i32
  }
}

module attributes {stable_mosaic.version = 11 : i64} {
  func.func @_decode_kernel(%arg0: i32, %arg1: memref<2x8x2xf32, #tpu.memory_space<vmem>>, %arg2: memref<32x8x2xbf16, #tpu.memory_space<vmem>>, %arg3: memref<32x8x2xbf16, #tpu.memory_space<vmem>>, %arg4: memref<32x8x2xbf16, #tpu.memory_space<vmem>>, %arg5: memref<32x2xf32, #tpu.memory_space<vmem>>, %arg6: memref<32x1xf32, #tpu.memory_space<vmem>>, %arg7: memref<128x64xf32, #tpu.memory_space<vmem>>, %arg8: memref<128x1xf32, #tpu.memory_space<vmem>>, %arg9: memref<32x32xf32, #tpu.memory_space<vmem>>, %arg10: memref<32x1xf32, #tpu.memory_space<vmem>>, %arg11: memref<32x32xf32, #tpu.memory_space<vmem>>, %arg12: memref<32x1xf32, #tpu.memory_space<vmem>>, %arg13: memref<8x2xi32, #tpu.memory_space<vmem>>, %arg14: memref<8x2xf32, #tpu.memory_space<vmem>>, %arg15: memref<32x2xf32, #tpu.memory_space<vmem>>, %arg16: memref<2x2xf32, #tpu.memory_space<vmem>>) attributes {dimension_semantics = [#tpu.dimension_semantics<parallel>], iteration_bounds = array<i64: 1>, scalar_prefetch = 0 : i64, scratch_operands = 2 : i64, tpu.core_type = #tpu.core_type<tc>, window_params = [{transform_indices = @transform_0, window_bounds = array<i64: 2, 8, 2>}, {transform_indices = @transform_1, window_bounds = array<i64: 32, 8, 2>}, {transform_indices = @transform_2, window_bounds = array<i64: 32, 8, 2>}, {transform_indices = @transform_3, window_bounds = array<i64: 32, 8, 2>}, {pipeline_mode = #tpu.pipeline_mode<synchronous>, transform_indices = @transform_4, window_bounds = array<i64: 32, 2>}, {pipeline_mode = #tpu.pipeline_mode<synchronous>, transform_indices = @transform_5, window_bounds = array<i64: 32, 1>}, {pipeline_mode = #tpu.pipeline_mode<synchronous>, transform_indices = @transform_6, window_bounds = array<i64: 128, 64>}, {pipeline_mode = #tpu.pipeline_mode<synchronous>, transform_indices = @transform_7, window_bounds = array<i64: 128, 1>}, {pipeline_mode = #tpu.pipeline_mode<synchronous>, transform_indices = @transform_8, window_bounds = array<i64: 32, 32>}, {pipeline_mode = #tpu.pipeline_mode<synchronous>, transform_indices = @transform_9, window_bounds = array<i64: 32, 1>}, {pipeline_mode = #tpu.pipeline_mode<synchronous>, transform_indices = @transform_10, window_bounds = array<i64: 32, 32>}, {pipeline_mode = #tpu.pipeline_mode<synchronous>, transform_indices = @transform_11, window_bounds = array<i64: 32, 1>}, {transform_indices = @transform_12, window_bounds = array<i64: 8, 2>}, {transform_indices = @transform_13, window_bounds = array<i64: 8, 2>}]} {
    %c0 = arith.constant 0 : index
    %c0_0 = arith.constant 0 : index
    %0 = vector.load %arg5[%c0, %c0_0] : memref<32x2xf32, #tpu.memory_space<vmem>>, vector<32x2xf32>
    %c0_1 = arith.constant 0 : index
    %c0_2 = arith.constant 0 : index
    %1 = vector.load %arg6[%c0_1, %c0_2] : memref<32x1xf32, #tpu.memory_space<vmem>>, vector<32x1xf32>
    %c0_3 = arith.constant 0 : index
    %c0_4 = arith.constant 0 : index
    %2 = vector.load %arg7[%c0_3, %c0_4] : memref<128x64xf32, #tpu.memory_space<vmem>>, vector<128x64xf32>
    %c0_5 = arith.constant 0 : index
    %c0_6 = arith.constant 0 : index
    %3 = vector.load %arg8[%c0_5, %c0_6] : memref<128x1xf32, #tpu.memory_space<vmem>>, vector<128x1xf32>
    %c0_7 = arith.constant 0 : index
    %c0_8 = arith.constant 0 : index
    %4 = vector.load %arg9[%c0_7, %c0_8] : memref<32x32xf32, #tpu.memory_space<vmem>>, vector<32x32xf32>
    %c0_9 = arith.constant 0 : index
    %c0_10 = arith.constant 0 : index
    %5 = vector.load %arg10[%c0_9, %c0_10] : memref<32x1xf32, #tpu.memory_space<vmem>>, vector<32x1xf32>
    %c0_11 = arith.constant 0 : index
    %c0_12 = arith.constant 0 : index
    %6 = vector.load %arg11[%c0_11, %c0_12] : memref<32x32xf32, #tpu.memory_space<vmem>>, vector<32x32xf32>
    %c0_13 = arith.constant 0 : index
    %c0_14 = arith.constant 0 : index
    %7 = vector.load %arg12[%c0_13, %c0_14] : memref<32x1xf32, #tpu.memory_space<vmem>>, vector<32x1xf32>
    %8 = tpu.iota {dimensions = array<i32: 0>} : vector<8x2xi32>
    %9 = arith.sitofp %8 : vector<8x2xi32> to vector<8x2xf32>
    %cst = arith.constant 0.000000e+00 : f32
    %10 = vector.broadcast %cst : f32 to vector<32x2xf32>
    %c0_15 = arith.constant 0 : index
    %c0_16 = arith.constant 0 : index
    %11 = vector.load %arg15[%c0_15, %c0_16] : memref<32x2xf32, #tpu.memory_space<vmem>>, vector<32x2xf32>
    tpu.vector_store %arg15[%c0_15, %c0_16], %10 {strides = array<i32>} : memref<32x2xf32, #tpu.memory_space<vmem>>, vector<32x2xf32>,
    %cst_17 = arith.constant 0.000000e+00 : f32
    %12 = vector.broadcast %cst_17 : f32 to vector<2x2xf32>
    %c0_18 = arith.constant 0 : index
    %c0_19 = arith.constant 0 : index
    %13 = vector.load %arg16[%c0_18, %c0_19] : memref<2x2xf32, #tpu.memory_space<vmem>>, vector<2x2xf32>
    tpu.vector_store %arg16[%c0_18, %c0_19], %12 {strides = array<i32>} : memref<2x2xf32, #tpu.memory_space<vmem>>, vector<2x2xf32>,
    %c0_i32 = arith.constant 0 : i32
    %c8_i32 = arith.constant 8 : i32
    %14 = arith.addi %c0_i32, %c8_i32 : i32
    %c1_i32 = arith.constant 1 : i32
    scf.for %arg17 = %c0_i32 to %14 step %c1_i32  : i32 {
      %c1_i32_21 = arith.constant 1 : i32
      %15 = arith.muli %arg17, %c1_i32_21 : i32
      %c0_i32_22 = arith.constant 0 : i32
      %16 = arith.addi %c0_i32_22, %15 : i32
      %c0_23 = arith.constant 0 : index
      %c0_24 = arith.constant 0 : index
      %17 = vector.load %arg15[%c0_23, %c0_24] : memref<32x2xf32, #tpu.memory_space<vmem>>, vector<32x2xf32>
      %c0_25 = arith.constant 0 : index
      %c0_26 = arith.constant 0 : index
      %18 = vector.load %arg16[%c0_25, %c0_26] : memref<2x2xf32, #tpu.memory_space<vmem>>, vector<2x2xf32>
      %19 = vector.extract_strided_slice %0 {offsets = [0, 0], sizes = [32, 1], strides = [1, 1]} : vector<32x2xf32> to vector<32x1xf32>
      %20 = vector.extract_strided_slice %18 {offsets = [0, 0], sizes = [1, 2], strides = [1, 1]} : vector<2x2xf32> to vector<1x2xf32>
      %21 = vector.broadcast %19 : vector<32x1xf32> to vector<32x2xf32>
      %22 = vector.broadcast %20 : vector<1x2xf32> to vector<32x2xf32>
      %23 = arith.mulf %21, %22 : vector<32x2xf32>
      %24 = vector.extract_strided_slice %0 {offsets = [0, 1], sizes = [32, 1], strides = [1, 1]} : vector<32x2xf32> to vector<32x1xf32>
      %25 = vector.extract_strided_slice %18 {offsets = [1, 0], sizes = [1, 2], strides = [1, 1]} : vector<2x2xf32> to vector<1x2xf32>
      %26 = vector.broadcast %24 : vector<32x1xf32> to vector<32x2xf32>
      %27 = vector.broadcast %25 : vector<1x2xf32> to vector<32x2xf32>
      %28 = arith.mulf %26, %27 : vector<32x2xf32>
      %29 = arith.addf %23, %28 : vector<32x2xf32>
      %30 = vector.broadcast %1 : vector<32x1xf32> to vector<32x2xf32>
      %31 = arith.addf %29, %30 : vector<32x2xf32>
      %32 = tpu.concatenate %31, %17 in 0 : vector<32x2xf32>, vector<32x2xf32> -> vector<64x2xf32>
      %cst_27 = arith.constant dense<0.000000e+00> : vector<128x2xf32>
      %33 = tpu.matmul %2, %32, %cst_27 {dimension_numbers = #tpu.dot_dimension_numbers<[1], [0], [0], [1], [0, 0, 1, 1], [], []>} : vector<128x64xf32>, vector<64x2xf32>, vector<128x2xf32> -> vector<128x2xf32>
      %34 = vector.broadcast %3 : vector<128x1xf32> to vector<128x2xf32>
      %35 = arith.addf %33, %34 : vector<128x2xf32>
      %36 = vector.extract_strided_slice %35 {offsets = [0, 0], sizes = [32, 2], strides = [1, 1]} : vector<128x2xf32> to vector<32x2xf32>
      %37 = arith.negf %36 : vector<32x2xf32>
      %38 = math.exp %37 : vector<32x2xf32>
      %cst_28 = arith.constant 1.000000e+00 : f32
      %39 = vector.broadcast %cst_28 : f32 to vector<32x2xf32>
      %40 = arith.addf %39, %38 : vector<32x2xf32>
      %41 = arith.divf %39, %40 : vector<32x2xf32>
      %42 = vector.extract_strided_slice %35 {offsets = [32, 0], sizes = [32, 2], strides = [1, 1]} : vector<128x2xf32> to vector<32x2xf32>
      %43 = arith.negf %42 : vector<32x2xf32>
      %44 = math.exp %43 : vector<32x2xf32>
      %cst_29 = arith.constant 1.000000e+00 : f32
      %45 = vector.broadcast %cst_29 : f32 to vector<32x2xf32>
      %46 = arith.addf %45, %44 : vector<32x2xf32>
      %47 = arith.divf %45, %46 : vector<32x2xf32>
      %48 = vector.extract_strided_slice %35 {offsets = [64, 0], sizes = [32, 2], strides = [1, 1]} : vector<128x2xf32> to vector<32x2xf32>
      %49 = vector.extract_strided_slice %35 {offsets = [96, 0], sizes = [32, 2], strides = [1, 1]} : vector<128x2xf32> to vector<32x2xf32>
      %50 = arith.mulf %41, %49 : vector<32x2xf32>
      %51 = arith.addf %48, %50 : vector<32x2xf32>
      %52 = math.tanh %51 : vector<32x2xf32>
      %cst_30 = arith.constant 1.000000e+00 : f32
      %53 = vector.broadcast %cst_30 : f32 to vector<32x2xf32>
      %54 = arith.subf %53, %47 : vector<32x2xf32>
      %55 = arith.mulf %54, %52 : vector<32x2xf32>
      %56 = arith.mulf %47, %17 : vector<32x2xf32>
      %57 = arith.addf %55, %56 : vector<32x2xf32>
      %c0_31 = arith.constant 0 : index
      %c0_32 = arith.constant 0 : index
      %58 = vector.load %arg15[%c0_31, %c0_32] : memref<32x2xf32, #tpu.memory_space<vmem>>, vector<32x2xf32>
      tpu.vector_store %arg15[%c0_31, %c0_32], %57 {strides = array<i32>} : memref<32x2xf32, #tpu.memory_space<vmem>>, vector<32x2xf32>,
      %cst_33 = arith.constant dense<0.000000e+00> : vector<32x2xf32>
      %59 = tpu.matmul %4, %57, %cst_33 {dimension_numbers = #tpu.dot_dimension_numbers<[1], [0], [0], [1], [0, 0, 1, 1], [], []>} : vector<32x32xf32>, vector<32x2xf32>, vector<32x2xf32> -> vector<32x2xf32>
      %c0_34 = arith.constant 0 : index
      %c0_35 = arith.constant 0 : index
      %c0_36 = arith.constant 0 : index
      %60 = vector.load %arg3[%c0_34, %c0_35, %c0_36] : memref<32x8x2xbf16, #tpu.memory_space<vmem>>, vector<32x8x2xbf16>
      %61 = vector.shape_cast %59 : vector<32x2xf32> to vector<32x1x2xf32>
      %62 = arith.truncf %61 : vector<32x1x2xf32> to vector<32x1x2xbf16>
      %63 = vector.broadcast %62 : vector<32x1x2xbf16> to vector<32x8x2xbf16>
      %64 = arith.addf %60, %63 : vector<32x8x2xbf16>
      %65 = math.tanh %64 : vector<32x8x2xbf16>
      %66 = vector.shape_cast %5 : vector<32x1xf32> to vector<32x1x1xf32>
      %67 = arith.extf %65 : vector<32x8x2xbf16> to vector<32x8x2xf32>
      %68 = vector.broadcast %66 : vector<32x1x1xf32> to vector<32x8x2xf32>
      %69 = arith.mulf %68, %67 : vector<32x8x2xf32>
      %cst_37 = arith.constant dense<0.000000e+00> : vector<8x2xf32>
      %70 = vector.multi_reduction <add>, %69, %cst_37 [0] : vector<32x8x2xf32> to vector<8x2xf32>
      %cst_38 = arith.constant dense<0xFF800000> : vector<2xf32>
      %71 = vector.multi_reduction <maximumf>, %70, %cst_38 [0] : vector<8x2xf32> to vector<2xf32>
      %72 = vector.shape_cast %71 : vector<2xf32> to vector<1x2xf32>
      %73 = vector.broadcast %72 : vector<1x2xf32> to vector<8x2xf32>
      %74 = arith.subf %70, %73 : vector<8x2xf32>
      %75 = math.exp %74 : vector<8x2xf32>
      %cst_39 = arith.constant dense<0.000000e+00> : vector<2xf32>
      %76 = vector.multi_reduction <add>, %75, %cst_39 [0] : vector<8x2xf32> to vector<2xf32>
      %77 = vector.shape_cast %76 : vector<2xf32> to vector<1x2xf32>
      %78 = tpu.reciprocal %77 {approx = true} : vector<1x2xf32> -> vector<1x2xf32>
      %79 = vector.broadcast %78 : vector<1x2xf32> to vector<8x2xf32>
      %80 = arith.mulf %75, %79 : vector<8x2xf32>
      %c0_40 = arith.constant 0 : index
      %c0_41 = arith.constant 0 : index
      %c0_42 = arith.constant 0 : index
      %81 = vector.load %arg2[%c0_40, %c0_41, %c0_42] : memref<32x8x2xbf16, #tpu.memory_space<vmem>>, vector<32x8x2xbf16>
      %82 = vector.shape_cast %80 : vector<8x2xf32> to vector<1x8x2xf32>
      %83 = arith.extf %81 : vector<32x8x2xbf16> to vector<32x8x2xf32>
      %84 = vector.broadcast %82 : vector<1x8x2xf32> to vector<32x8x2xf32>
      %85 = arith.mulf %83, %84 : vector<32x8x2xf32>
      %cst_43 = arith.constant dense<0.000000e+00> : vector<32x2xf32>
      %86 = vector.multi_reduction <add>, %85, %cst_43 [1] : vector<32x8x2xf32> to vector<32x2xf32>
      %cst_44 = arith.constant dense<0.000000e+00> : vector<32x2xf32>
      %87 = tpu.matmul %6, %86, %cst_44 {dimension_numbers = #tpu.dot_dimension_numbers<[1], [0], [0], [1], [0, 0, 1, 1], [], []>} : vector<32x32xf32>, vector<32x2xf32>, vector<32x2xf32> -> vector<32x2xf32>
      %c0_45 = arith.constant 0 : index
      %c0_46 = arith.constant 0 : index
      %c0_47 = arith.constant 0 : index
      %88 = vector.load %arg4[%c0_45, %c0_46, %c0_47] : memref<32x8x2xbf16, #tpu.memory_space<vmem>>, vector<32x8x2xbf16>
      %89 = vector.shape_cast %87 : vector<32x2xf32> to vector<32x1x2xf32>
      %90 = arith.truncf %89 : vector<32x1x2xf32> to vector<32x1x2xbf16>
      %91 = vector.broadcast %90 : vector<32x1x2xbf16> to vector<32x8x2xbf16>
      %92 = arith.addf %88, %91 : vector<32x8x2xbf16>
      %93 = math.tanh %92 : vector<32x8x2xbf16>
      %94 = vector.shape_cast %7 : vector<32x1xf32> to vector<32x1x1xf32>
      %95 = arith.extf %93 : vector<32x8x2xbf16> to vector<32x8x2xf32>
      %96 = vector.broadcast %94 : vector<32x1x1xf32> to vector<32x8x2xf32>
      %97 = arith.mulf %96, %95 : vector<32x8x2xf32>
      %cst_48 = arith.constant dense<0.000000e+00> : vector<8x2xf32>
      %98 = vector.multi_reduction <add>, %97, %cst_48 [0] : vector<32x8x2xf32> to vector<8x2xf32>
      %cst_49 = arith.constant dense<0xFF800000> : vector<2xf32>
      %99 = vector.multi_reduction <maximumf>, %98, %cst_49 [0] : vector<8x2xf32> to vector<2xf32>
      %100 = vector.shape_cast %99 : vector<2xf32> to vector<1x2xf32>
      %101 = vector.broadcast %100 : vector<1x2xf32> to vector<8x2xf32>
      %102 = arith.subf %98, %101 : vector<8x2xf32>
      %103 = math.exp %102 : vector<8x2xf32>
      %cst_50 = arith.constant dense<0.000000e+00> : vector<2xf32>
      %104 = vector.multi_reduction <add>, %103, %cst_50 [0] : vector<8x2xf32> to vector<2xf32>
      %105 = vector.shape_cast %104 : vector<2xf32> to vector<1x2xf32>
      %106 = math.log %105 : vector<1x2xf32>
      %cst_51 = arith.constant 0.000000e+00 : f32
      %107 = vector.broadcast %cst_51 : f32 to vector<1x2xf32>
      %108 = arith.subf %107, %106 : vector<1x2xf32>
      %109 = vector.broadcast %100 : vector<1x2xf32> to vector<8x2xf32>
      %110 = arith.cmpf oeq, %98, %109 : vector<8x2xf32>
      %cst_52 = arith.constant 8.000000e+00 : f32
      %111 = vector.broadcast %cst_52 : f32 to vector<8x2xf32>
      %112 = arith.select %110, %9, %111 : vector<8x2xi1>, vector<8x2xf32>
      %cst_53 = arith.constant dense<0x7F800000> : vector<2xf32>
      %113 = vector.multi_reduction <minimumf>, %112, %cst_53 [0] : vector<8x2xf32> to vector<2xf32>
      %114 = vector.shape_cast %113 : vector<2xf32> to vector<1x2xf32>
      %115 = vector.broadcast %114 : vector<1x2xf32> to vector<8x2xf32>
      %116 = arith.cmpf oeq, %9, %115 : vector<8x2xf32>
      %117 = arith.extui %116 : vector<8x2xi1> to vector<8x2xi32>
      %118 = arith.sitofp %117 : vector<8x2xi32> to vector<8x2xf32>
      %c0_54 = arith.constant 0 : index
      %c0_55 = arith.constant 0 : index
      %c0_56 = arith.constant 0 : index
      %119 = vector.load %arg1[%c0_54, %c0_55, %c0_56] : memref<2x8x2xf32, #tpu.memory_space<vmem>>, vector<2x8x2xf32>
      %120 = vector.shape_cast %118 : vector<8x2xf32> to vector<1x8x2xf32>
      %121 = vector.broadcast %120 : vector<1x8x2xf32> to vector<2x8x2xf32>
      %122 = arith.mulf %119, %121 : vector<2x8x2xf32>
      %cst_57 = arith.constant dense<0.000000e+00> : vector<2x2xf32>
      %123 = vector.multi_reduction <add>, %122, %cst_57 [1] : vector<2x8x2xf32> to vector<2x2xf32>
      %c0_58 = arith.constant 0 : index
      %c0_59 = arith.constant 0 : index
      %124 = vector.load %arg16[%c0_58, %c0_59] : memref<2x2xf32, #tpu.memory_space<vmem>>, vector<2x2xf32>
      tpu.vector_store %arg16[%c0_58, %c0_59], %123 {strides = array<i32>} : memref<2x2xf32, #tpu.memory_space<vmem>>, vector<2x2xf32>,
      %125 = arith.fptosi %114 : vector<1x2xf32> to vector<1x2xi32>
      %126 = arith.index_cast %16 : i32 to index
      %c0_60 = arith.constant 0 : index
      %127 = vector.load %arg13[%126, %c0_60] : memref<8x2xi32, #tpu.memory_space<vmem>>, vector<1x2xi32>
      tpu.vector_store %arg13[%126, %c0_60], %125 {strides = array<i32>} : memref<8x2xi32, #tpu.memory_space<vmem>>, vector<1x2xi32>,
      %128 = arith.index_cast %16 : i32 to index
      %c0_61 = arith.constant 0 : index
      %129 = vector.load %arg14[%128, %c0_61] : memref<8x2xf32, #tpu.memory_space<vmem>>, vector<1x2xf32>
      tpu.vector_store %arg14[%128, %c0_61], %108 {strides = array<i32>} : memref<8x2xf32, #tpu.memory_space<vmem>>, vector<1x2xf32>,
    }
    %c8_i32_20 = arith.constant 8 : i32
    return
  }
  func.func @transform_0(%arg0: i32) -> (i32, i32, i32) {
    %c0_i32 = arith.constant 0 : i32
    %c0_i32_0 = arith.constant 0 : i32
    %c0_i32_1 = arith.constant 0 : i32
    return %c0_i32, %c0_i32_0, %arg0 : i32, i32, i32
  }
  func.func @transform_1(%arg0: i32) -> (i32, i32, i32) {
    %c0_i32 = arith.constant 0 : i32
    %c0_i32_0 = arith.constant 0 : i32
    %c0_i32_1 = arith.constant 0 : i32
    return %c0_i32, %c0_i32_0, %arg0 : i32, i32, i32
  }
  func.func @transform_2(%arg0: i32) -> (i32, i32, i32) {
    %c0_i32 = arith.constant 0 : i32
    %c0_i32_0 = arith.constant 0 : i32
    %c0_i32_1 = arith.constant 0 : i32
    return %c0_i32, %c0_i32_0, %arg0 : i32, i32, i32
  }
  func.func @transform_3(%arg0: i32) -> (i32, i32, i32) {
    %c0_i32 = arith.constant 0 : i32
    %c0_i32_0 = arith.constant 0 : i32
    %c0_i32_1 = arith.constant 0 : i32
    return %c0_i32, %c0_i32_0, %arg0 : i32, i32, i32
  }
  func.func @transform_4(%arg0: i32) -> (i32, i32) {
    %c0_i32 = arith.constant 0 : i32
    %c0_i32_0 = arith.constant 0 : i32
    %c0_i32_1 = arith.constant 0 : i32
    return %c0_i32, %c0_i32_0 : i32, i32
  }
  func.func @transform_5(%arg0: i32) -> (i32, i32) {
    %c0_i32 = arith.constant 0 : i32
    %c0_i32_0 = arith.constant 0 : i32
    %c0_i32_1 = arith.constant 0 : i32
    return %c0_i32, %c0_i32_0 : i32, i32
  }
  func.func @transform_6(%arg0: i32) -> (i32, i32) {
    %c0_i32 = arith.constant 0 : i32
    %c0_i32_0 = arith.constant 0 : i32
    %c0_i32_1 = arith.constant 0 : i32
    return %c0_i32, %c0_i32_0 : i32, i32
  }
  func.func @transform_7(%arg0: i32) -> (i32, i32) {
    %c0_i32 = arith.constant 0 : i32
    %c0_i32_0 = arith.constant 0 : i32
    %c0_i32_1 = arith.constant 0 : i32
    return %c0_i32, %c0_i32_0 : i32, i32
  }
  func.func @transform_8(%arg0: i32) -> (i32, i32) {
    %c0_i32 = arith.constant 0 : i32
    %c0_i32_0 = arith.constant 0 : i32
    %c0_i32_1 = arith.constant 0 : i32
    return %c0_i32, %c0_i32_0 : i32, i32
  }
  func.func @transform_9(%arg0: i32) -> (i32, i32) {
    %c0_i32 = arith.constant 0 : i32
    %c0_i32_0 = arith.constant 0 : i32
    %c0_i32_1 = arith.constant 0 : i32
    return %c0_i32, %c0_i32_0 : i32, i32
  }
  func.func @transform_10(%arg0: i32) -> (i32, i32) {
    %c0_i32 = arith.constant 0 : i32
    %c0_i32_0 = arith.constant 0 : i32
    %c0_i32_1 = arith.constant 0 : i32
    return %c0_i32, %c0_i32_0 : i32, i32
  }
  func.func @transform_11(%arg0: i32) -> (i32, i32) {
    %c0_i32 = arith.constant 0 : i32
    %c0_i32_0 = arith.constant 0 : i32
    %c0_i32_1 = arith.constant 0 : i32
    return %c0_i32, %c0_i32_0 : i32, i32
  }
  func.func @transform_12(%arg0: i32) -> (i32, i32) {
    %c0_i32 = arith.constant 0 : i32
    %c0_i32_0 = arith.constant 0 : i32
    return %c0_i32, %arg0 : i32, i32
  }
  func.func @transform_13(%arg0: i32) -> (i32, i32) {
    %c0_i32 = arith.constant 0 : i32
    %c0_i32_0 = arith.constant 0 : i32
    return %c0_i32, %arg0 : i32, i32
  }
}

</mosaic_0001>

<bundles_post_ra>
// kernel: drl4tsp_forward.2
= control target key start
LH: loop header
LB: loop body
LE: loop exit
PB: predicated region body
PF: predicated region fallthrough
CT: control target
= control target key end

     0   :  { %v630_v0 = vmov 1   ;;  %v631_v4 = vmov 2   ;;  %v632_v7 = vmov 0   ;;  %v633_v8 = vmov 3   ;;  %s861_s1 = inlined_call_operand.vmem [shape: f32[64,4], index: 1, kind: input, shape index: {}]   ;;  %s862_s2 = inlined_call_operand.vmem [shape: f32[64,1], index: 2, kind: input, shape index: {}]   ;;  %s863_s3 = inlined_call_operand.vmem [shape: f32[64,64], index: 3, kind: input, shape index: {}]   ;;  %s864_s0 = inlined_call_operand.vmem [shape: f32[4,16], index: 0, kind: input, shape index: {}]   ;;  %s865_s4 = inlined_call_operand.vmem [shape: bf16[32,16], index: 4, kind: output, shape index: {0}]   ;;  %s866_s5 = inlined_call_operand.vmem [shape: bf16[32,16], index: 5, kind: output, shape index: {1}]   ;;  %s867_s6 = inlined_call_operand.vmem [shape: bf16[32,16], index: 6, kind: output, shape index: {2}]  }
   0x1   :  { %615 = vset.pattern.permute.xlu0 %v630_v0  ;;  %608 = vset.pattern.permute.xlu1 %v630_v0  ;;  %v24_v1 = vld [vmem:[%s861_s1 + $0x20] sm:$0xff]  ;;  %v21_v3 = vld [vmem:[%s861_s1 + $0x8] sm:$0xff]  ;;  %v23_v5 = vld [vmem:[%s861_s1 + $0x18] sm:$0xff]  ;;  %vm322_vm0 = vcmask 523264   ;;  %v69_v33 = vlaneseq  ;;  %vm309_vm1 = vcmask 125952  }
   0x2   :  { %v20_v2 = vld [vmem:[%s861_s1] sm:$0xff]  ;;  %98 = vperm.xlu0 %615, %v24_v1   ;;  %v22_v6 = vld [vmem:[%s861_s1 + $0x10] sm:$0xff]  ;;  %v25_v10 = vld [vmem:[%s861_s1 + $0x28] sm:$0xff] }
   0x3   :  { %82 = vperm.xlu1 %608, %v20_v2   ;;  %v26_v9 = vld [vmem:[%s861_s1 + $0x30] sm:$0xff]  ;;  %v27_v11 = vld [vmem:[%s861_s1 + $0x38] sm:$0xff]  ;;  %v242_v13 = vld [vmem:[%s862_s2 + $0x28] sm:$0xff]  ;;  %v70_v36 = vshrl.u32 %v69_v33, 7 }
   0x4   :  { %v240_v12 = vld [vmem:[%s862_s2 + $0x18] sm:$0xff]  ;;  %v237_v14 = vld [vmem:[%s862_s2] sm:$0xff]  ;;  %v238_v15 = vld [vmem:[%s862_s2 + $0x8] sm:$0xff] }
   0x5   :  { %v239_v16 = vld [vmem:[%s862_s2 + $0x10] sm:$0xff]  ;;  %v241_v17 = vld [vmem:[%s862_s2 + $0x20] sm:$0xff]  ;;  %v244_v19 = vld [vmem:[%s862_s2 + $0x38] sm:$0xff]  ;;  %v115_v39 = vsub.s32 1, %v70_v36  ;;  %v167_v41 = vsub.s32 2, %v70_v36  ;;  %v71_v42 = vsub.s32 0, %v70_v36 }
   0x6   :  { %616 = vset.pattern.permute.xlu0 %v631_v4  ;;  %v243_v18 = vld [vmem:[%s862_s2 + $0x30] sm:$0xff]  ;;  %v314_v20 = vld [vmem:[%s863_s3] sm:$0xff]  ;;  %v219_v45 = vsub.s32 3, %v70_v36 }
   0x7   :  { %86 = vperm.xlu1 %608, %v21_v3   ;;  %134 = vperm.xlu0 %616, %v20_v2   ;;  %v318_v21 = vld [vmem:[%s863_s3 + $0x20] sm:$0xff] }
   0x8   :  { %568 = vmatprep.mubr.msk.f32.mxu0 %vm322_vm0, %v314_v20  ;;  %574 = vmatprep.mubr.msk.f32.mxu1 %vm322_vm0, %v318_v21  ;;  %v28_v40 = vld [vmem:[%s864_s0] sm:$0xf] }
   0x9   :  { %v736_v44 = vrot.slane %v28_v40, %v115_v39  ;;  %v739_v48 = vrot.slane %v28_v40, %v167_v41  ;;  %v741_v49 = vrot.slane %v28_v40, %v71_v42  ;;  %v744_v52 = vrot.slane %v28_v40, %v219_v45 }
   0xb   :  { %609 = vset.pattern.permute.xlu1 %v631_v4  ;;  %146 = vperm.xlu0 %616, %v23_v5  }
   0xc   :  { %138 = vperm.xlu1 %609, %v21_v3  }
   0xf   :  { %150 = vperm.xlu0 %616, %v24_v1  }
  0x10   :  { %610 = vset.pattern.permute.xlu1 %v632_v7 }
  0x11   :  { %41 = vperm.xlu1 %610, %v22_v6  }
  0x13   :  { %620 = vset.pattern.permute.xlu0 %v633_v8 }
  0x14   :  { %186 = vperm.xlu0 %620, %v20_v2  }
  0x15   :  { %611 = vset.pattern.permute.xlu1 %v630_v0 }
  0x16   :  { %90 = vperm.xlu1 %611, %v22_v6  }
  0x18   :  { %198 = vperm.xlu0 %620, %v23_v5  }
  0x1a   :  { %94 = vperm.xlu1 %611, %v23_v5  }
  0x1c   :  { %202 = vperm.xlu0 %620, %v24_v1  }
  0x1e   :  { %612 = vset.pattern.permute.xlu1 %v633_v8 }
  0x1f   :  { %190 = vperm.xlu1 %612, %v21_v3  }
  0x20   :  { %210 = vperm.xlu0 %620, %v26_v9  }
  0x23   :  { %613 = vset.pattern.permute.xlu1 %v631_v4 }
  0x24   :  { %142 = vperm.xlu1 %613, %v22_v6   ;;  %627 = vset.pattern.permute.xlu0 %v632_v7 }
  0x25   :  { %31 = vperm.xlu0 %627, %v20_v2  }
  0x28   :  { %614 = vset.pattern.permute.xlu1 %v632_v7 }
  0x29   :  { %51 = vperm.xlu1 %614, %v24_v1   ;;  %36 = vperm.xlu0 %627, %v21_v3  }
  0x2d   :  { %56 = vperm.xlu1 %614, %v25_v10   ;;  %46 = vperm.xlu0 %627, %v23_v5  }
  0x31   :  { %617 = vset.pattern.permute.xlu1 %v630_v0  ;;  %66 = vperm.xlu0 %627, %v27_v11  }
  0x32   :  { %102 = vperm.xlu1 %617, %v25_v10  }
  0x35   :  { %262 = vperm.xlu0 %627, %v240_v12  }
  0x36   :  { %618 = vset.pattern.permute.xlu1 %v633_v8 }
  0x37   :  { %194 = vperm.xlu1 %618, %v22_v6  }
  0x39   :  { %272 = vperm.xlu0 %627, %v242_v13  }
  0x3b   :  { %619 = vset.pattern.permute.xlu1 %v632_v7 }
  0x3c   :  { %247 = vperm.xlu1 %619, %v237_v14  }
  0x40   :  { %252 = vperm.xlu1 %619, %v238_v15  }
  0x44   :  { %621 = vset.pattern.permute.xlu1 %v631_v4 }
  0x45   :  { %154 = vperm.xlu1 %621, %v25_v10  }
  0x49   :  { %622 = vset.pattern.permute.xlu1 %v632_v7 }
  0x4a   :  { %61 = vperm.xlu1 %622, %v26_v9  }
  0x4e   :  { %623 = vset.pattern.permute.xlu1 %v630_v0 }
  0x4f   :  { %106 = vperm.xlu1 %623, %v26_v9  }
  0x53   :  { %110 = vperm.xlu1 %623, %v27_v11  }
  0x57   :  { %624 = vset.pattern.permute.xlu1 %v633_v8 }
  0x58   :  { %206 = vperm.xlu1 %624, %v25_v10  }
  0x5c   :  { %625 = vset.pattern.permute.xlu1 %v632_v7 }
  0x5d   :  { %257 = vperm.xlu1 %625, %v239_v16  }
  0x61   :  { %626 = vset.pattern.permute.xlu1 %v631_v4 }
  0x62   :  { %158 = vperm.xlu1 %626, %v26_v9  }
  0x66   :  { %162 = vperm.xlu1 %626, %v27_v11  }
  0x6a   :  { %628 = vset.pattern.permute.xlu1 %v633_v8 }
  0x6b   :  { %214 = vperm.xlu1 %628, %v27_v11  }
  0x6f   :  { %629 = vset.pattern.permute.xlu1 %v632_v7 }
  0x70   :  { %267 = vperm.xlu1 %629, %v241_v17  }
  0x74   :  { %277 = vperm.xlu1 %629, %v243_v18  }
  0x78   :  { %282 = vperm.xlu1 %629, %v244_v19  }
  0x81   :  { %v99_v23 = vpop.permute.xlu0 %98 }
  0x82   :  { %v83_v22 = vpop.permute.xlu1 %82  ;;  %v121_v47 = vmul.f32 %v736_v44, %v99_v23 }
  0x83   :  { %v117_v1 = vmul.f32 %v736_v44, %v83_v22 }
  0x86   :  { %v87_v24 = vpop.permute.xlu1 %86  ;;  %v135_v25 = vpop.permute.xlu0 %134 }
  0x87   :  { %v169_v6 = vmul.f32 %v739_v48, %v135_v25  ;;  %v118_v10 = vmul.f32 %v736_v44, %v87_v24 }
  0x8a   :  { %v147_v27 = vpop.permute.xlu0 %146 }
  0x8b   :  { %v139_v26 = vpop.permute.xlu1 %138  ;;  %v172_v60 = vmul.f32 %v739_v48, %v147_v27 }
  0x8c   :  { %v170_v18 = vmul.f32 %v739_v48, %v139_v26 }
  0x8e   :  { %v151_v28 = vpop.permute.xlu0 %150 }
  0x8f   :  { %v173_v51 = vmul.f32 %v739_v48, %v151_v28 }
  0x90   :  { %v725_v29 = vpop.permute.xlu1 %41 }
  0x91   :  { %v75_v39 = vmul.f32 %v741_v49, %v725_v29 }
  0x93   :  { %v187_v30 = vpop.permute.xlu0 %186 }
  0x94   :  { %v221_v13 = vmul.f32 %v744_v52, %v187_v30 }
  0x95   :  { %v727_v31 = vpop.permute.xlu1 %90 }
  0x97   :  { %v199_v32 = vpop.permute.xlu0 %198 }
  0x98   :  { %v224_v2 = vmul.f32 %v744_v52, %v199_v32 }
  0x99   :  { %v95_v34 = vpop.permute.xlu1 %94 }
  0x9a   :  { %v120_v61 = vmul.f32 %v736_v44, %v95_v34 }
  0x9b   :  { %v203_v35 = vpop.permute.xlu0 %202 }
  0x9c   :  { %v225_v55 = vmul.f32 %v744_v52, %v203_v35 }
  0x9e   :  { %v191_v37 = vpop.permute.xlu1 %190 }
  0x9f   :  { %v729_v38 = vpop.permute.xlu0 %210  ;;  %v222_v23 = vmul.f32 %v744_v52, %v191_v37  ;;  %v119_v37 = vmul.f32 %v736_v44, %v727_v31 }
  0xa1   :  { %v127_v41 = vadd.f32 %v119_v37, %v75_v39 }
  0xa3   :  { %v734_v43 = vpop.permute.xlu1 %142 }
  0xa4   :  { %v32_v46 = vpop.permute.xlu0 %31  ;;  %v171_v40 = vmul.f32 %v739_v48, %v734_v43 }
  0xa5   :  { %v73_v62 = vmul.f32 %v741_v49, %v32_v46 }
  0xa6   :  { %v179_v46 = vadd.f32 %v171_v40, %v127_v41 }
  0xa7   :  { %v125_v7 = vadd.f32 %v117_v1, %v73_v62 }
  0xa8   :  { %v52_v50 = vpop.permute.xlu1 %51  ;;  %v37_v54 = vpop.permute.xlu0 %36 }
  0xa9   :  { %v77_v53 = vmul.f32 %v741_v49, %v52_v50  ;;  %v74_v8 = vmul.f32 %v741_v49, %v37_v54  ;;  %v177_v17 = vadd.f32 %v169_v6, %v125_v7 }
  0xab   :  { %v129_v56 = vadd.f32 %v121_v47, %v77_v53  ;;  %v126_v14 = vadd.f32 %v118_v10, %v74_v8  ;;  %v229_v20 = vadd.f32 %v221_v13, %v177_v17 }
  0xac   :  { %v748_v57 = vpop.permute.xlu1 %56  ;;  %v47_v58 = vpop.permute.xlu0 %46 }
  0xad   :  { %v181_v59 = vadd.f32 %v173_v51, %v129_v56  ;;  %v76_v63 = vmul.f32 %v741_v49, %v47_v58  ;;  %v178_v21 = vadd.f32 %v170_v18, %v126_v14  ;;  %v227_v58 = vmul.f32 %v744_v52, %v729_v38 }
  0xae   :  { %v78_v62 = vmul.f32 %v741_v49, %v748_v57 }
  0xaf   :  { %v754_v0 = vadd.f32 %v225_v55, %v181_v59  ;;  %v128_v3 = vadd.f32 %v120_v61, %v76_v63  ;;  %v230_v27 = vadd.f32 %v222_v23, %v178_v21  ;;  %v317_v21 = vld [vmem:[%s863_s3 + $0x18] sm:$0xff] }
  0xb0   :  { %v758_v4 = vpop.permute.xlu0 %66 }
  0xb1   :  { %v103_v5 = vpop.permute.xlu1 %102  ;;  %v180_v9 = vadd.f32 %v172_v60, %v128_v3  ;;  %v80_v38 = vmul.f32 %v741_v49, %v758_v4 }
  0xb2   :  { %v122_v59 = vmul.f32 %v736_v44, %v103_v5 }
  0xb3   :  { %v232_v11 = vadd.f32 %v224_v2, %v180_v9 }
  0xb4   :  { %v263_v12 = vpop.permute.xlu0 %262  ;;  %v130_v2 = vadd.f32 %v122_v59, %v78_v62 }
  0xb5   :  { %v288_v15 = vadd.f32 %v263_v12, %v232_v11 }
  0xb6   :  { %v195_v16 = vpop.permute.xlu1 %194 }
  0xb7   :  { %v527_v19 = vpack.c.bf16 %v288_v15, %v288_v15  ;;  %v223_v42 = vmul.f32 %v744_v52, %v195_v16 }
  0xb8   :  { %v273_v9 = vpop.permute.xlu0 %272 }
  0xb9   :  { %313 = vst.msk [vmem:[%s865_s4 + $0xc] sm:$0xf] %vm309_vm1, %v527_v19  ;;  %v231_v47 = vadd.f32 %v223_v42, %v179_v46 }
  0xbb   :  { %v248_v22 = vpop.permute.xlu1 %247 }
  0xbc   :  { %v285_v24 = vadd.f32 %v248_v22, %v229_v20  ;;  %v320_v20 = vld [vmem:[%s863_s3 + $0x30] sm:$0xff]  ;;  %v321_v22 = vld [vmem:[%s863_s3 + $0x38] sm:$0xff] }
  0xbe   :  { %v524_v25 = vpack.c.bf16 %v285_v24, %v285_v24 }
  0xbf   :  { %v253_v28 = vpop.permute.xlu1 %252 }
  0xc0   :  { %310 = vst.msk [vmem:[%s865_s4] sm:$0xf] %vm309_vm1, %v524_v25  ;;  %v286_v26 = vadd.f32 %v253_v28, %v230_v27 }
  0xc2   :  { %v525_v30 = vpack.c.bf16 %v286_v26, %v286_v26  ;;  %v580_v32 = vpack.c.bf16 %v286_v26, %v285_v24 }
  0xc4   :  { %311 = vst.msk [vmem:[%s865_s4 + $0x4] sm:$0xf] %vm309_vm1, %v525_v30  ;;  %v155_v33 = vpop.permute.xlu1 %154  ;;  %581 = vmatprep.subr.bf16.mxu0 %v580_v32  ;;  %596 = vmatprep.subr.bf16.mxu1 %v580_v32 }
  0xc5   :  { %583 = vmatpush3.bf16.msra.mxu0 %v580_v32  ;;  %600 = vmatpush3.bf16.msra.mxu1 %v580_v32  ;;  %v174_v63 = vmul.f32 %v739_v48, %v155_v33 }
  0xc7   :  { %v182_v6 = vadd.f32 %v174_v63, %v130_v2 }
  0xc9   :  { %v62_v34 = vpop.permute.xlu1 %61 }
  0xca   :  { %v79_v31 = vmul.f32 %v741_v49, %v62_v34 }
  0xce   :  { %v107_v35 = vpop.permute.xlu1 %106 }
  0xcf   :  { %v123_v53 = vmul.f32 %v736_v44, %v107_v35 }
  0xd1   :  { %v131_v43 = vadd.f32 %v123_v53, %v79_v31 }
  0xd2   :  { %v111_v36 = vpop.permute.xlu1 %110 }
  0xd3   :  { %v124_v5 = vmul.f32 %v736_v44, %v111_v36 }
  0xd5   :  { %v132_v13 = vadd.f32 %v124_v5, %v80_v38 }
  0xd7   :  { %v207_v45 = vpop.permute.xlu1 %206 }
  0xd8   :  { %v226_v3 = vmul.f32 %v744_v52, %v207_v45 }
  0xda   :  { %v234_v8 = vadd.f32 %v226_v3, %v182_v6 }
  0xdc   :  { %v258_v50 = vpop.permute.xlu1 %257  ;;  %v290_v11 = vadd.f32 %v273_v9, %v234_v8 }
  0xdd   :  { %v287_v51 = vadd.f32 %v258_v50, %v231_v47 }
  0xdf   :  { %v526_v54 = vpack.c.bf16 %v287_v51, %v287_v51  ;;  %v584_v55 = vpack.c.bf16 %v288_v15, %v287_v51 }
  0xe1   :  { %312 = vst.msk [vmem:[%s865_s4 + $0x8] sm:$0xf] %vm309_vm1, %v526_v54  ;;  %v159_v29 = vpop.permute.xlu1 %158  ;;  %585 = vmatprep.subr.bf16.mxu0 %v584_v55  ;;  %597 = vmatprep.subr.bf16.mxu1 %v584_v55 }
  0xe2   :  { %v175_v56 = vmul.f32 %v739_v48, %v159_v29  ;;  %587 = vmatpush3.bf16.msra.mxu0 %v584_v55  ;;  %601 = vmatpush3.bf16.msra.mxu1 %v584_v55 }
  0xe4   :  { %v183_v60 = vadd.f32 %v175_v56, %v131_v43 }
  0xe5   :  { %v163_v61 = vpop.permute.xlu1 %162 }
  0xe6   :  { %v235_v1 = vadd.f32 %v227_v58, %v183_v60  ;;  %v176_v12 = vmul.f32 %v739_v48, %v163_v61  ;;  %v315_v48 = vld [vmem:[%s863_s3 + $0x8] sm:$0xff] }
  0xe8   :  { %v184_v17 = vadd.f32 %v176_v12, %v132_v13 }
  0xea   :  { %v215_v7 = vpop.permute.xlu1 %214 }
  0xeb   :  { %v228_v14 = vmul.f32 %v744_v52, %v215_v7  ;;  %v319_v52 = vld [vmem:[%s863_s3 + $0x28] sm:$0xff] }
  0xed   :  { %v236_v18 = vadd.f32 %v228_v14, %v184_v17 }
  0xef   :  { %v268_v10 = vpop.permute.xlu1 %267 }
  0xf0   :  { %v289_v57 = vadd.f32 %v268_v10, %v754_v0  ;;  %v316_v0 = vld [vmem:[%s863_s3 + $0x10] sm:$0xff] }
  0xf2   :  { %v588_v15 = vpack.c.bf16 %v290_v11, %v289_v57 }
  0xf3   :  { %v278_v16 = vpop.permute.xlu1 %277 }
  0xf4   :  { %589 = vmatprep.subr.bf16.mxu0 %v588_v15  ;;  %598 = vmatprep.subr.bf16.mxu1 %v588_v15  ;;  %v291_v4 = vadd.f32 %v278_v16, %v235_v1 }
  0xf5   :  { %591 = vmatpush3.bf16.msra.mxu0 %v588_v15  ;;  %602 = vmatpush3.bf16.msra.mxu1 %v588_v15 }
  0xf7   :  { %v283_v49 = vpop.permute.xlu1 %282 }
  0xf8   :  { %v292_v44 = vadd.f32 %v283_v49, %v236_v18 }
  0xfa   :  { %v592_v19 = vpack.c.bf16 %v292_v44, %v291_v4 }
  0xfc   :  { %593 = vmatprep.subr.bf16.mxu0 %v592_v19  ;;  %599 = vmatprep.subr.bf16.mxu1 %v592_v19 }
  0xfd   :  { %595 = vmatpush3.bf16.msra.mxu0 %v592_v19  ;;  %603 = vmatpush3.bf16.msra.mxu1 %v592_v19 }
 0x100   :  { %569 = vmatmul.mubr.msk.f32.vlgmr.msra.gmra.mrb[0].mxu0 %vm322_vm0, %v315_v48  ;;  %575 = vmatmul.mubr.msk.f32.vlgmr.msra.gmra.mrb[0].mxu1 %vm322_vm0, %v319_v52 }
 0x101   :  { %571 = vmatprep.mubr.msk.f32.mxu0 %vm322_vm0, %v316_v0  ;;  %577 = vmatprep.mubr.msk.f32.mxu1 %vm322_vm0, %v320_v20 }
 0x104   :  { %572 = vmatmul.mubr.msk.f32.gmra.mrb[2].mxu0 %vm322_vm0, %v317_v21  ;;  %578 = vmatmul.mubr.msk.f32.gmra.mrb[2].mxu1 %vm322_vm0, %v321_v22 }
 0x1d3   :  { %v570_v23 = vpop.f32.mrb[0].mxu0  ;;  %v576_v24 = vpop.f32.mrb[0].mxu1 }
 0x1d4   :  { %v529_v25 = vpack.c.bf16 %v570_v23, %v570_v23  ;;  %v533_v27 = vpack.c.bf16 %v576_v24, %v576_v24  ;;  %v413_v28 = vpop.f32.mrb[1].mxu0  ;;  %v433_v26 = vpop.f32.mrb[1].mxu1 }
 0x1d5   :  { %v528_v30 = vpack.c.bf16 %v413_v28, %v413_v28  ;;  %v532_v32 = vpack.c.bf16 %v433_v26, %v433_v26 }
 0x1d6   :  { %469 = vst.msk [vmem:[%s866_s5 + $0x4] sm:$0xf] %vm309_vm1, %v529_v25  ;;  %489 = vst.msk [vmem:[%s867_s6 + $0x4] sm:$0xf] %vm309_vm1, %v533_v27 }
 0x1d7   :  { %468 = vst.msk [vmem:[%s866_s5] sm:$0xf] %vm309_vm1, %v528_v30  ;;  %488 = vst.msk [vmem:[%s867_s6] sm:$0xf] %vm309_vm1, %v532_v32  ;;  %v573_v33 = vpop.f32.mrb[2].mxu0  ;;  %v579_v34 = vpop.f32.mrb[2].mxu1 }
 0x1d8   :  { %v531_v35 = vpack.c.bf16 %v573_v33, %v573_v33  ;;  %v535_v36 = vpack.c.bf16 %v579_v34, %v579_v34  ;;  %v423_v37 = vpop.f32.mrb[3].mxu0  ;;  %v443_v39 = vpop.f32.mrb[3].mxu1 }
 0x1d9   :  { %v530_v40 = vpack.c.bf16 %v423_v37, %v423_v37  ;;  %v534_v41 = vpack.c.bf16 %v443_v39, %v443_v39 }
 0x1da   :  { %471 = vst.msk [vmem:[%s866_s5 + $0xc] sm:$0xf] %vm309_vm1, %v531_v35  ;;  %491 = vst.msk [vmem:[%s867_s6 + $0xc] sm:$0xf] %vm309_vm1, %v535_v36 }
 0x1db   :  { %470 = vst.msk [vmem:[%s866_s5 + $0x8] sm:$0xf] %vm309_vm1, %v530_v40  ;;  %490 = vst.msk [vmem:[%s867_s6 + $0x8] sm:$0xf] %vm309_vm1, %v534_v41 }

// kernel: drl4tsp_forward.3
= control target key start
LH: loop header
LB: loop body
LE: loop exit
PB: predicated region body
PF: predicated region fallthrough
CT: control target
= control target key end

     0   :  { %v99_v0 = vlaneseq  ;;  %vm102_vm0 = vcmask 15360   ;;  %vm107_vm1 = vcmask 9216   ;;  %v4034_v4 = vmov 0.0   ;;  %s5424_s0 = inlined_call_operand.vmem [shape: f32[2,8,2], index: 0, kind: input, shape index: {}]   ;;  %s5425_s1 = inlined_call_operand.vmem [shape: bf16[32,8,2], index: 1, kind: input, shape index: {}]   ;;  %s5426_s2 = inlined_call_operand.vmem [shape: bf16[32,8,2], index: 2, kind: input, shape index: {}]   ;;  %s5427_s3 = inlined_call_operand.vmem [shape: bf16[32,8,2], index: 3, kind: input, shape index: {}]   ;;  %s5428_s4 = inlined_call_operand.vmem [shape: f32[32,2], index: 4, kind: input, shape index: {}]   ;;  %s5429_s5 = inlined_call_operand.vmem [shape: f32[32,1], index: 5, kind: input, shape index: {}]   ;;  %s5430_s6 = inlined_call_operand.vmem [shape: f32[128,64], index: 6, kind: input, shape index: {}]   ;;  %s5431_s12 = inlined_call_operand.vmem [shape: s32[8,2], index: 12, kind: output, shape index: {0}]   ;;  %s5432_s13 = inlined_call_operand.vmem [shape: f32[8,2], index: 13, kind: output, shape index: {1}]   ;;  %s5433_s7 = inlined_call_operand.vmem [shape: f32[128,1], index: 7, kind: input, shape index: {}]   ;;  %s5434_s8 = inlined_call_operand.vmem [shape: f32[32,32], index: 8, kind: input, shape index: {}]   ;;  %s5435_s9 = inlined_call_operand.vmem [shape: f32[32,1], index: 9, kind: input, shape index: {}]   ;;  %s5436_s10 = inlined_call_operand.vmem [shape: f32[32,32], index: 10, kind: input, shape index: {}]   ;;  %s5437_s11 = inlined_call_operand.vmem [shape: f32[32,1], index: 11, kind: input, shape index: {}]  }
   0x1   :  { %v4112_v1 = vld [vmem:[%s5428_s4] sm:$0xff]  ;;  %v4117_v2 = vld [vmem:[%s5428_s4 + $0x8] sm:$0xff]  ;;  %v4122_v3 = vld [vmem:[%s5428_s4 + $0x10] sm:$0xff]  ;;  %103 = vst.msk [vmem:[#allocation2] sm:$0xff] %vm102_vm0, %v4034_v4 }
   0x2   :  { %5445 = vst [vmem:[#allocation4_spill] sm:$0xff] %v4112_v1  ;;  %5446 = vst [vmem:[#allocation5_spill] sm:$0xff] %v4117_v2  ;;  %v4132_v5 = vld [vmem:[%s5428_s4 + $0x18] sm:$0xff]  ;;  %v4137_v6 = vld [vmem:[%s5429_s5] sm:$0xff]  ;;  %v4144_v8 = vshrl.u32 %v99_v0, 7 }
   0x3   :  { %5447 = vst [vmem:[#allocation6_spill] sm:$0xff] %v4122_v3  ;;  %104 = vst.msk [vmem:[#allocation2 + $0x8] sm:$0xff] %vm102_vm0, %v4034_v4  ;;  %v4142_v7 = vld [vmem:[%s5429_s5 + $0x8] sm:$0xff]  ;;  %v4149_v9 = vld [vmem:[%s5429_s5 + $0x10] sm:$0xff] }
   0x4   :  { %105 = vst.msk [vmem:[#allocation2 + $0x10] sm:$0xff] %vm102_vm0, %v4034_v4  ;;  %106 = vst.msk [vmem:[#allocation2 + $0x18] sm:$0xff] %vm102_vm0, %v4034_v4  ;;  %v4154_v10 = vld [vmem:[%s5429_s5 + $0x18] sm:$0xff]  ;;  %v4159_v11 = vld [vmem:[%s5430_s6] sm:$0xff] }
   0x5   :  { %108 = vst.msk [vmem:[#allocation3] sm:$0x3] %vm107_vm1, %v4034_v4  ;;  %5448 = vst [vmem:[#allocation7_spill] sm:$0xff] %v4132_v5  ;;  %v4164_v12 = vld [vmem:[%s5430_s6 + $0x8] sm:$0xff]  ;;  %v4169_v13 = vld [vmem:[%s5430_s6 + $0x10] sm:$0xff] }
   0x6   :  { %5449 = vst [vmem:[#allocation8_spill] sm:$0xff] %v4137_v6  ;;  %5450 = vst [vmem:[#allocation9_spill] sm:$0xff] %v4142_v7  ;;  %v4174_v14 = vld [vmem:[%s5430_s6 + $0x18] sm:$0xff]  ;;  %v4180_v16 = vld [vmem:[%s5430_s6 + $0x20] sm:$0xff] }
   0x7   :  { %5451 = vst [vmem:[#allocation10_spill] sm:$0xff] %v4149_v9  ;;  %5452 = vst [vmem:[#allocation11_spill] sm:$0xff] %v4154_v10  ;;  %v4185_v17 = vld [vmem:[%s5430_s6 + $0x28] sm:$0xff]  ;;  %v4190_v18 = vld [vmem:[%s5430_s6 + $0x30] sm:$0xff] }
   0x8   :  { %5453 = vst [vmem:[#allocation12_spill] sm:$0xff] %v4159_v11  ;;  %5454 = vst [vmem:[#allocation13_spill] sm:$0xff] %v4164_v12  ;;  %v4195_v19 = vld [vmem:[%s5430_s6 + $0x38] sm:$0xff]  ;;  %v4200_v20 = vld [vmem:[%s5430_s6 + $0x40] sm:$0xff] }
   0x9   :  { %5455 = vst [vmem:[#allocation14_spill] sm:$0xff] %v4169_v13  ;;  %5456 = vst [vmem:[#allocation15_spill] sm:$0xff] %v4174_v14  ;;  %v4205_v21 = vld [vmem:[%s5430_s6 + $0x48] sm:$0xff]  ;;  %v4210_v22 = vld [vmem:[%s5430_s6 + $0x50] sm:$0xff] }
   0xa   :  { %5457 = vst [vmem:[#allocation16_spill] sm:$0xff] %v4180_v16  ;;  %5458 = vst [vmem:[#allocation17_spill] sm:$0xff] %v4185_v17  ;;  %v4215_v23 = vld [vmem:[%s5430_s6 + $0x58] sm:$0xff]  ;;  %v4220_v24 = vld [vmem:[%s5430_s6 + $0x60] sm:$0xff] }
   0xb   :  { %5459 = vst [vmem:[#allocation18_spill] sm:$0xff] %v4190_v18  ;;  %5460 = vst [vmem:[#allocation19_spill] sm:$0xff] %v4195_v19  ;;  %v4225_v25 = vld [vmem:[%s5430_s6 + $0x68] sm:$0xff]  ;;  %v4230_v26 = vld [vmem:[%s5430_s6 + $0x70] sm:$0xff] }
   0xc   :  { %5461 = vst [vmem:[#allocation20_spill] sm:$0xff] %v4200_v20  ;;  %5462 = vst [vmem:[#allocation21_spill] sm:$0xff] %v4205_v21  ;;  %v4235_v27 = vld [vmem:[%s5430_s6 + $0x78] sm:$0xff]  ;;  %v4240_v28 = vld [vmem:[%s5433_s7] sm:$0xff] }
   0xd   :  { %5463 = vst [vmem:[#allocation22_spill] sm:$0xff] %v4210_v22  ;;  %5464 = vst [vmem:[#allocation23_spill] sm:$0xff] %v4215_v23  ;;  %v4245_v29 = vld [vmem:[%s5433_s7 + $0x8] sm:$0xff]  ;;  %v4250_v30 = vld [vmem:[%s5433_s7 + $0x10] sm:$0xff] }
   0xe   :  { %5465 = vst [vmem:[#allocation24_spill] sm:$0xff] %v4220_v24  ;;  %5466 = vst [vmem:[#allocation25_spill] sm:$0xff] %v4225_v25  ;;  %v4255_v31 = vld [vmem:[%s5433_s7 + $0x18] sm:$0xff]  ;;  %v4260_v32 = vld [vmem:[%s5433_s7 + $0x20] sm:$0xff] }
   0xf   :  { %5467 = vst [vmem:[#allocation26_spill] sm:$0xff] %v4230_v26  ;;  %5468 = vst [vmem:[#allocation27_spill] sm:$0xff] %v4235_v27  ;;  %v4265_v33 = vld [vmem:[%s5433_s7 + $0x28] sm:$0xff]  ;;  %v4270_v34 = vld [vmem:[%s5433_s7 + $0x30] sm:$0xff] }
  0x10   :  { %5469 = vst [vmem:[#allocation28_spill] sm:$0xff] %v4240_v28  ;;  %5470 = vst [vmem:[#allocation29_spill] sm:$0xff] %v4245_v29  ;;  %v4275_v35 = vld [vmem:[%s5433_s7 + $0x38] sm:$0xff]  ;;  %v4280_v36 = vld [vmem:[%s5433_s7 + $0x40] sm:$0xff] }
  0x11   :  { %5471 = vst [vmem:[#allocation30_spill] sm:$0xff] %v4250_v30  ;;  %5472 = vst [vmem:[#allocation31_spill] sm:$0xff] %v4255_v31  ;;  %v4285_v37 = vld [vmem:[%s5433_s7 + $0x48] sm:$0xff]  ;;  %v4290_v38 = vld [vmem:[%s5433_s7 + $0x50] sm:$0xff] }
  0x12   :  { %5473 = vst [vmem:[#allocation32_spill] sm:$0xff] %v4260_v32  ;;  %5474 = vst [vmem:[#allocation33_spill] sm:$0xff] %v4265_v33  ;;  %v4295_v39 = vld [vmem:[%s5433_s7 + $0x58] sm:$0xff]  ;;  %v4300_v40 = vld [vmem:[%s5433_s7 + $0x60] sm:$0xff] }
  0x13   :  { %5475 = vst [vmem:[#allocation34_spill] sm:$0xff] %v4270_v34  ;;  %5476 = vst [vmem:[#allocation35_spill] sm:$0xff] %v4275_v35  ;;  %v4305_v41 = vld [vmem:[%s5433_s7 + $0x68] sm:$0xff]  ;;  %v4310_v42 = vld [vmem:[%s5433_s7 + $0x70] sm:$0xff] }
  0x14   :  { %5477 = vst [vmem:[#allocation36_spill] sm:$0xff] %v4280_v36  ;;  %5478 = vst [vmem:[#allocation37_spill] sm:$0xff] %v4285_v37  ;;  %v4315_v43 = vld [vmem:[%s5433_s7 + $0x78] sm:$0xff]  ;;  %v4320_v44 = vld [vmem:[%s5434_s8] sm:$0xff] }
  0x15   :  { %5479 = vst [vmem:[#allocation38_spill] sm:$0xff] %v4290_v38  ;;  %5480 = vst [vmem:[#allocation39_spill] sm:$0xff] %v4295_v39  ;;  %v4325_v45 = vld [vmem:[%s5434_s8 + $0x8] sm:$0xff]  ;;  %v4330_v46 = vld [vmem:[%s5434_s8 + $0x10] sm:$0xff] }
  0x16   :  { %5481 = vst [vmem:[#allocation40_spill] sm:$0xff] %v4300_v40  ;;  %5482 = vst [vmem:[#allocation41_spill] sm:$0xff] %v4305_v41  ;;  %v4335_v47 = vld [vmem:[%s5434_s8 + $0x18] sm:$0xff]  ;;  %v4340_v48 = vld [vmem:[%s5435_s9] sm:$0xff] }
  0x17   :  { %5483 = vst [vmem:[#allocation42_spill] sm:$0xff] %v4310_v42  ;;  %5484 = vst [vmem:[#allocation43_spill] sm:$0xff] %v4315_v43  ;;  %v4345_v49 = vld [vmem:[%s5435_s9 + $0x8] sm:$0xff]  ;;  %v4350_v50 = vld [vmem:[%s5435_s9 + $0x10] sm:$0xff] }
  0x18   :  { %5485 = vst [vmem:[#allocation44_spill] sm:$0xff] %v4320_v44  ;;  %5486 = vst [vmem:[#allocation45_spill] sm:$0xff] %v4325_v45  ;;  %v4355_v51 = vld [vmem:[%s5435_s9 + $0x18] sm:$0xff]  ;;  %v4360_v52 = vld [vmem:[%s5436_s10] sm:$0xff] }
  0x19   :  { %5487 = vst [vmem:[#allocation46_spill] sm:$0xff] %v4330_v46  ;;  %5488 = vst [vmem:[#allocation47_spill] sm:$0xff] %v4335_v47  ;;  %v4365_v53 = vld [vmem:[%s5436_s10 + $0x8] sm:$0xff]  ;;  %v4370_v54 = vld [vmem:[%s5436_s10 + $0x10] sm:$0xff] }
  0x1a   :  { %5489 = vst [vmem:[#allocation48_spill] sm:$0xff] %v4340_v48  ;;  %5490 = vst [vmem:[#allocation49_spill] sm:$0xff] %v4345_v49  ;;  %v4375_v55 = vld [vmem:[%s5436_s10 + $0x18] sm:$0xff]  ;;  %v4380_v56 = vld [vmem:[%s5437_s11] sm:$0xff]  ;;  %s4397_s10 = smov 0  }
  0x1b   :  { %5491 = vst [vmem:[#allocation50_spill] sm:$0xff] %v4350_v50  ;;  %v4385_v57 = vld [vmem:[%s5437_s11 + $0x8] sm:$0xff]  ;;  %v4390_v58 = vld [vmem:[%s5437_s11 + $0x10] sm:$0xff]  ;;  %v4395_v59 = vld [vmem:[%s5437_s11 + $0x18] sm:$0xff] }
  0x1c LB: > { %v5495_v5 = vld [vmem:[#allocation7_spill] sm:$0xff]  ;;  %v5496_v3 = vld [vmem:[#allocation6_spill] sm:$0xff]  ;;  %v5497_v2 = vld [vmem:[#allocation5_spill] sm:$0xff]  ;;  %v4035_v60 = vmov 1   ;;  %v4036_v61 = vmov 0   ;;  %vm280_vm2 = vcmask 523264   ;;  %s3549_s17 = scalar_lea.vmem %s5431_s12, %s4032_s10  ;;  %s3552_s18 = scalar_lea.vmem %s5432_s13, %s4032_s10  ;;  %s4032_s10 = sphi %s4397_s10, %s114_s10  }
  0x1d   : > { %v5498_v1 = vld [vmem:[#allocation4_spill] sm:$0xff]  ;;  %3846 = vset.pattern.permute.xlu0 %v4035_v60  ;;  %3844 = vset.pattern.permute.xlu1 %v4035_v60  ;;  %v5499_v7 = vld [vmem:[#allocation9_spill] sm:$0xff]  ;;  %v5502_v9 = vld [vmem:[#allocation10_spill] sm:$0xff]  ;;  %v4037_v62 = vmov 1966171168   ;;  %vm554_vm3 = vcmask 261120  }
  0x1e   : > { %157 = vperm.xlu0 %3846, %v5496_v3   ;;  %149 = vperm.xlu1 %3844, %v5498_v1   ;;  %v5500_v6 = vld [vmem:[#allocation8_spill] sm:$0xff]  ;;  %v5503_v30 = vld [vmem:[#allocation30_spill] sm:$0xff]  ;;  %v5504_v10 = vld [vmem:[#allocation11_spill] sm:$0xff]  ;;  %v690_v63 = vunpack.c.l.s4 %v4037_v62  ;;  %vm2190_vm4 = vcmask 1041409   ;;  %vm2192_vm5 = vcmask 1042434   ;;  %vm2194_vm6 = vcmask 1043459  }
  0x1f   : > { %v5501_v28 = vld [vmem:[#allocation28_spill] sm:$0xff]  ;;  %v5506_v29 = vld [vmem:[#allocation29_spill] sm:$0xff]  ;;  %v5507_v34 = vld [vmem:[#allocation34_spill] sm:$0xff]  ;;  %vm2196_vm7 = vcmask 1044484   ;;  %vm2198_vm8 = vcmask 1045509   ;;  %vm2200_vm9 = vcmask 1046534  }
  0x20   : > { %v5505_v32 = vld [vmem:[#allocation32_spill] sm:$0xff]  ;;  %v691_v0 = vunpack.c.0.s8 %v690_v63  ;;  %v5508_v31 = vld [vmem:[#allocation31_spill] sm:$0xff]  ;;  %v5510_v33 = vld [vmem:[#allocation33_spill] sm:$0xff]  ;;  %vm2202_vm10 = vcmask 1047559   ;;  %vm3550_vm13 = vcmask 8192   ;;  %s114_s10 = sadd.s32 1, %s4032_s10  }
  0x21   : > { %v5493_v49 = vld [vmem:[#allocation49_spill] sm:$0xff]  ;;  %v5494_v48 = vld [vmem:[#allocation48_spill] sm:$0xff]  ;;  %v5512_v35 = vld [vmem:[#allocation35_spill] sm:$0xff]  ;;  %p111_p0 = scmp.ge.s32.totalorder %s114_s10, 8  }
  0x22   : > { %v5492_v50 = vld [vmem:[#allocation50_spill] sm:$0xff]  ;;  %153 = vperm.xlu1 %3844, %v5497_v2   ;;  %3847 = vset.pattern.permute.xlu0 %v4036_v61  ;;  %v5509_v40 = vld [vmem:[#allocation40_spill] sm:$0xff]  ;;  %v4422_v4 = vsub.s32 %v691_v0, %v4144_v8  ;;  %v1240_v63 = vcombine.high %v5494_v48, %v5494_v48  ;;  %v5516_v41 = vld [vmem:[#allocation41_spill] sm:$0xff] }
  0x23   : > { %122 = vperm.xlu0 %3847, %v5498_v1   ;;  %v5511_v36 = vld [vmem:[#allocation36_spill] sm:$0xff]  ;;  %v5515_v42 = vld [vmem:[#allocation42_spill] sm:$0xff]  ;;  %v5518_v37 = vld [vmem:[#allocation37_spill] sm:$0xff] }
  0x24   : > { %v5513_v11 = vld [vmem:[#allocation12_spill] sm:$0xff]  ;;  %v5517_v38 = vld [vmem:[#allocation38_spill] sm:$0xff]  ;;  %v1254_v1 = vrot.slane %v1240_v63, %v4422_v4  ;;  %v5519_v43 = vld [vmem:[#allocation43_spill] sm:$0xff] }
  0x25   : > { %3737 = vmatprep.mubr.msk.f32.mxu0 %vm280_vm2, %v5513_v11  ;;  %v5514_v24 = vld [vmem:[#allocation24_spill] sm:$0xff]  ;;  %v5520_v39 = vld [vmem:[#allocation39_spill] sm:$0xff]  ;;  %v5521_v12 = vld [vmem:[#allocation13_spill] sm:$0xff] }
  0x26   : > { %3845 = vset.pattern.permute.xlu1 %v4036_v61  ;;  %3755 = vmatprep.mubr.msk.f32.mxu1 %vm280_vm2, %v5514_v24  ;;  %v5522_v25 = vld [vmem:[#allocation25_spill] sm:$0xff]  ;;  %v5523_v13 = vld [vmem:[#allocation14_spill] sm:$0xff]  ;;  %v5525_v14 = vld [vmem:[#allocation15_spill] sm:$0xff] }
  0x27   : > { %127 = vperm.xlu0 %3847, %v5497_v2   ;;  %137 = vperm.xlu1 %3845, %v5495_v5   ;;  %v5524_v26 = vld [vmem:[#allocation26_spill] sm:$0xff]  ;;  %v5526_v27 = vld [vmem:[#allocation27_spill] sm:$0xff]  ;;  %v5527_v16 = vld [vmem:[#allocation16_spill] sm:$0xff] }
  0x28   : > { %v5528_v17 = vld [vmem:[#allocation17_spill] sm:$0xff]  ;;  %v5529_v18 = vld [vmem:[#allocation18_spill] sm:$0xff]  ;;  %v5530_v19 = vld [vmem:[#allocation19_spill] sm:$0xff] }
  0x29   : > { %v5531_v20 = vld [vmem:[#allocation20_spill] sm:$0xff]  ;;  %v5532_v21 = vld [vmem:[#allocation21_spill] sm:$0xff]  ;;  %v5533_v22 = vld [vmem:[#allocation22_spill] sm:$0xff] }
  0x2a   : > { %v5534_v23 = vld [vmem:[#allocation23_spill] sm:$0xff]  ;;  %v5535_v44 = vld [vmem:[#allocation44_spill] sm:$0xff]  ;;  %v5536_v45 = vld [vmem:[#allocation45_spill] sm:$0xff] }
  0x2b   : > { %132 = vperm.xlu0 %3847, %v5496_v3   ;;  %3848 = vset.pattern.permute.xlu1 %v4035_v60  ;;  %v1247_v60 = vrot.slane %v5494_v48, %v4422_v4  ;;  %v5537_v46 = vld [vmem:[#allocation46_spill] sm:$0xff]  ;;  %v5538_v47 = vld [vmem:[#allocation47_spill] sm:$0xff] }
  0x2c   : > { %161 = vperm.xlu1 %3848, %v5495_v5   ;;  %v1270_v5 = vrot.slane %v1254_v1, %v4422_v4 }
  0x2d   : > { %v1263_v62 = vrot.slane %v1247_v60, %v4422_v4  ;;  %v1255_v2 = vcombine.high %v1247_v60, %v1247_v60 }
  0x2f   : > { %183 = vperm.xlu0 %3847, %v5499_v7   ;;  %v1285_v15 = vcombine.high %v1263_v62, %v1263_v62 }
  0x30   : > { %3849 = vset.pattern.permute.xlu1 %v4036_v61  ;;  %v4435_v61 = vsub.s32 0, %v4144_v8 }
  0x31   : > { %178 = vperm.xlu1 %3849, %v5500_v6   ;;  %v1277_v6 = vrot.slane %v1255_v2, %v4422_v4  ;;  %v1289_v2 = vcombine.high %v5493_v49, %v5493_v49 }
  0x32   : > { %v1471_v0 = vrot.slane %v1263_v62, %v4435_v61  ;;  %v1479_v3 = vrot.slane %v1285_v15, %v4435_v61  ;;  %v1487_v7 = vrot.slane %v1270_v5, %v4435_v61  ;;  %v1296_v62 = vrot.slane %v5493_v49, %v4422_v4 }
  0x33   : > { %202 = vperm.xlu0 %3847, %v5501_v28   ;;  %v1475_v60 = vrot.slane %v1277_v6, %v4435_v61  ;;  %v1287_v63 = vcombine.high %v1277_v6, %v1277_v6  ;;  %v1303_v6 = vrot.slane %v1289_v2, %v4422_v4  ;;  %v1345_v2 = vrot.slane %v5492_v50, %v4422_v4 }
  0x35   : > { %188 = vperm.xlu1 %3849, %v5502_v9   ;;  %v1286_v9 = vcombine.high %v1270_v5, %v1270_v5 }
  0x37   : > { %212 = vperm.xlu0 %3847, %v5503_v30   ;;  %v1495_v15 = vrot.slane %v1286_v9, %v4435_v61  ;;  %v1304_v9 = vcombine.high %v1296_v62, %v1296_v62 }
  0x39   : > { %193 = vperm.xlu1 %3849, %v5504_v10   ;;  %v1312_v10 = vrot.slane %v1296_v62, %v4422_v4 }
  0x3b   : > { %222 = vperm.xlu0 %3847, %v5505_v32   ;;  %v1503_v11 = vrot.slane %v1312_v10, %v4435_v61  ;;  %v1334_v24 = vcombine.high %v1312_v10, %v1312_v10 }
  0x3d   : > { %207 = vperm.xlu1 %3849, %v5506_v29   ;;  %v1511_v28 = vrot.slane %v1334_v24, %v4435_v61 }
  0x3f   : > { %232 = vperm.xlu0 %3847, %v5507_v34  }
  0x41   : > { %217 = vperm.xlu1 %3849, %v5508_v31  }
  0x43   : > { %262 = vperm.xlu0 %3847, %v5509_v40  }
  0x45   : > { %227 = vperm.xlu1 %3849, %v5510_v33  }
  0x47   : > { %242 = vperm.xlu0 %3847, %v5511_v36  }
  0x49   : > { %237 = vperm.xlu1 %3849, %v5512_v35  }
  0x4b   : > { %272 = vperm.xlu0 %3847, %v5515_v42  }
  0x4d   : > { %267 = vperm.xlu1 %3849, %v5516_v41  }
  0x4f   : > { %252 = vperm.xlu0 %3847, %v5517_v38  }
  0x51   : > { %247 = vperm.xlu1 %3849, %v5518_v37  }
  0x53   : > { %1597 = vperm.xlu0 %3847, %v1471_v0   ;;  %v1256_v0 = vcombine.high %v1254_v1, %v1254_v1 }
  0x55   : > { %277 = vperm.xlu1 %3849, %v5519_v43   ;;  %v1284_v5 = vrot.slane %v1256_v0, %v4422_v4  ;;  %v1326_v0 = vrot.slane %v1304_v9, %v4422_v4 }
  0x57   : > { %1605 = vperm.xlu0 %3847, %v1479_v3   ;;  %v1483_v3 = vrot.slane %v1287_v63, %v4435_v61  ;;  %v1491_v1 = vrot.slane %v1284_v5, %v4435_v61  ;;  %v1507_v62 = vrot.slane %v1326_v0, %v4435_v61 }
  0x59   : > { %257 = vperm.xlu1 %3849, %v5520_v39  }
  0x5b   : > { %1613 = vperm.xlu0 %3847, %v1487_v7   ;;  %v1288_v7 = vcombine.high %v1284_v5, %v1284_v5  ;;  %v1361_v5 = vrot.slane %v1345_v2, %v4422_v4 }
  0x5d   : > { %1601 = vperm.xlu1 %3849, %v1475_v60   ;;  %v1319_v60 = vrot.slane %v1303_v6, %v4422_v4  ;;  %v1499_v63 = vrot.slane %v1288_v7, %v4435_v61  ;;  %v1535_v9 = vrot.slane %v1361_v5, %v4435_v61 }
  0x5f   : > { %1621 = vperm.xlu0 %3847, %v1495_v15   ;;  %v1519_v10 = vrot.slane %v1319_v60, %v4435_v61  ;;  %v1335_v15 = vcombine.high %v1319_v60, %v1319_v60  ;;  %v1383_v60 = vcombine.high %v1361_v5, %v1361_v5 }
  0x61   : > { %1609 = vperm.xlu1 %3849, %v1483_v3   ;;  %v1305_v3 = vcombine.high %v1303_v6, %v1303_v6  ;;  %v1527_v24 = vrot.slane %v1335_v15, %v4435_v61  ;;  %v1543_v15 = vrot.slane %v1383_v60, %v4435_v61 }
  0x63   : > { %1629 = vperm.xlu0 %3847, %v1503_v11   ;;  %v1336_v11 = vcombine.high %v1326_v0, %v1326_v0  ;;  %v1333_v7 = vrot.slane %v1305_v3, %v4422_v4 }
  0x65   : > { %1617 = vperm.xlu1 %3849, %v1491_v1   ;;  %v1338_v1 = vcombine.high %v5492_v50, %v5492_v50  ;;  %v1523_v6 = vrot.slane %v1333_v7, %v4435_v61  ;;  %v1337_v0 = vcombine.high %v1333_v7, %v1333_v7 }
  0x67   : > { %1637 = vperm.xlu0 %3847, %v1511_v28   ;;  %v1515_v28 = vrot.slane %v1336_v11, %v4435_v61  ;;  %v1531_v11 = vrot.slane %v1337_v0, %v4435_v61 }
  0x69   : > { %1625 = vperm.xlu1 %3849, %v1499_v63   ;;  %v1352_v63 = vrot.slane %v1338_v1, %v4422_v4  ;;  %v1394_v1 = vrot.slane %v4355_v51, %v4422_v4 }
  0x6b   : > { %1645 = vperm.xlu0 %3847, %v1519_v10   ;;  %v1353_v10 = vcombine.high %v1345_v2, %v1345_v2  ;;  %v1354_v7 = vcombine.high %v1352_v63, %v1352_v63  ;;  %v1410_v60 = vrot.slane %v1394_v1, %v4422_v4 }
  0x6d   : > { %1633 = vperm.xlu1 %3849, %v1507_v62   ;;  %v1368_v62 = vrot.slane %v1352_v63, %v4422_v4  ;;  %v1375_v3 = vrot.slane %v1353_v10, %v4422_v4  ;;  %v1382_v10 = vrot.slane %v1354_v7, %v4422_v4 }
  0x6f   : > { %1653 = vperm.xlu0 %3847, %v1527_v24   ;;  %v1551_v24 = vrot.slane %v1368_v62, %v4435_v61  ;;  %v1384_v5 = vcombine.high %v1368_v62, %v1368_v62  ;;  %v1539_v2 = vrot.slane %v1375_v3, %v4435_v61  ;;  %v1432_v62 = vcombine.high %v1410_v60, %v1410_v60 }
  0x70   : > { %v1555_v63 = vrot.slane %v1382_v10, %v4435_v61 }
  0x71   : > { %1641 = vperm.xlu1 %3849, %v1515_v28   ;;  %v1385_v28 = vcombine.high %v1375_v3, %v1375_v3  ;;  %v1386_v3 = vcombine.high %v1382_v10, %v1382_v10 }
  0x73   : > { %1661 = vperm.xlu0 %3847, %v1535_v9   ;;  %v1559_v9 = vrot.slane %v1384_v5, %v4435_v61  ;;  %v1547_v0 = vrot.slane %v1385_v28, %v4435_v61  ;;  %v1575_v5 = vrot.slane %v1432_v62, %v4435_v61  ;;  %v1563_v28 = vrot.slane %v1386_v3, %v4435_v61 }
  0x75   : > { %1649 = vperm.xlu1 %3849, %v1523_v6   ;;  %v1387_v6 = vcombine.high %v4355_v51, %v4355_v51 }
  0x77   : > { %1669 = vperm.xlu0 %3847, %v1543_v15   ;;  %v1567_v15 = vrot.slane %v1410_v60, %v4435_v61 }
  0x79   : > { %1657 = vperm.xlu1 %3849, %v1531_v11   ;;  %v1401_v11 = vrot.slane %v1387_v6, %v4422_v4  ;;  %v2921_v6 = vrot.slane %v4380_v56, %v4422_v4 }
  0x7b   : > { %1677 = vperm.xlu0 %3847, %v1551_v24   ;;  %v1402_v24 = vcombine.high %v1394_v1, %v1394_v1  ;;  %v1403_v10 = vcombine.high %v1401_v11, %v1401_v11  ;;  %v2937_v62 = vrot.slane %v2921_v6, %v4422_v4 }
  0x7d   : > { %1665 = vperm.xlu1 %3849, %v1539_v2   ;;  %v1417_v2 = vrot.slane %v1401_v11, %v4422_v4  ;;  %v1424_v7 = vrot.slane %v1402_v24, %v4422_v4  ;;  %v1431_v24 = vrot.slane %v1403_v10, %v4422_v4 }
  0x7f   : > { %1685 = vperm.xlu0 %3847, %v1559_v9   ;;  %v1583_v9 = vrot.slane %v1417_v2, %v4435_v61  ;;  %v1433_v60 = vcombine.high %v1417_v2, %v1417_v2  ;;  %v1571_v1 = vrot.slane %v1424_v7, %v4435_v61  ;;  %v2959_v2 = vcombine.high %v2937_v62, %v2937_v62 }
  0x80   : > { %v1587_v11 = vrot.slane %v1431_v24, %v4435_v61 }
  0x81   : > { %1673 = vperm.xlu1 %3849, %v1547_v0   ;;  %v1434_v0 = vcombine.high %v1424_v7, %v1424_v7  ;;  %v1435_v7 = vcombine.high %v1431_v24, %v1431_v24 }
  0x83   : > { %1693 = vperm.xlu0 %3847, %v1567_v15   ;;  %v1591_v15 = vrot.slane %v1433_v60, %v4435_v61  ;;  %v1579_v3 = vrot.slane %v1434_v0, %v4435_v61  ;;  %v3153_v60 = vrot.slane %v2959_v2, %v4435_v61  ;;  %v1595_v0 = vrot.slane %v1435_v7, %v4435_v61 }
  0x85   : > { %1681 = vperm.xlu1 %3849, %v1555_v63   ;;  %v2914_v63 = vcombine.high %v4380_v56, %v4380_v56 }
  0x87   : > { %1701 = vperm.xlu0 %3847, %v1575_v5   ;;  %v3145_v5 = vrot.slane %v2937_v62, %v4435_v61 }
  0x89   : > { %1689 = vperm.xlu1 %3849, %v1563_v28   ;;  %v2928_v28 = vrot.slane %v2914_v63, %v4422_v4  ;;  %v2970_v63 = vrot.slane %v4385_v57, %v4422_v4 }
  0x8b   : > { %1709 = vperm.xlu0 %3847, %v1583_v9   ;;  %v2929_v9 = vcombine.high %v2921_v6, %v2921_v6  ;;  %v2930_v24 = vcombine.high %v2928_v28, %v2928_v28  ;;  %v2986_v2 = vrot.slane %v2970_v63, %v4422_v4  ;;  %v2978_v30 = vcombine.high %v2970_v63, %v2970_v63 }
  0x8d   : > { %1697 = vperm.xlu1 %3849, %v1571_v1   ;;  %v2944_v1 = vrot.slane %v2928_v28, %v4422_v4  ;;  %v2951_v10 = vrot.slane %v2929_v9, %v4422_v4  ;;  %v3008_v28 = vcombine.high %v2986_v2, %v2986_v2 }
  0x8f   : > { %1717 = vperm.xlu0 %3847, %v1591_v15   ;;  %v3161_v15 = vrot.slane %v2944_v1, %v4435_v61  ;;  %v2960_v62 = vcombine.high %v2944_v1, %v2944_v1  ;;  %v3149_v6 = vrot.slane %v2951_v10, %v4435_v61  ;;  %v2958_v1 = vrot.slane %v2930_v24, %v4422_v4 }
  0x90   : > { %v166_v24 = vsub.s32 1, %v4144_v8 }
  0x91   : > { %1705 = vperm.xlu1 %3849, %v1579_v3   ;;  %v2961_v3 = vcombine.high %v2951_v10, %v2951_v10  ;;  %v2962_v29 = vcombine.high %v2958_v1, %v2958_v1 }
  0x93   : > { %3271 = vperm.xlu0 %3847, %v3145_v5   ;;  %v3169_v5 = vrot.slane %v2960_v62, %v4435_v61  ;;  %v3165_v62 = vrot.slane %v2958_v1, %v4435_v61 }
  0x95   : > { %1713 = vperm.xlu1 %3849, %v1587_v11   ;;  %v2963_v11 = vcombine.high %v4385_v57, %v4385_v57 }
  0x97   : > { %3279 = vperm.xlu0 %3847, %v3153_v60   ;;  %v3157_v60 = vrot.slane %v2961_v3, %v4435_v61  ;;  %v2977_v10 = vrot.slane %v2963_v11, %v4422_v4  ;;  %v119_v11 = vld [vmem:[#allocation3] sm:$0x3] }
  0x98   : > { %v143_v33 = vrot.slane %v119_v11, %v4435_v61 }
  0x99   : > { %1721 = vperm.xlu1 %3849, %v1595_v0   ;;  %v3177_v0 = vrot.slane %v2986_v2, %v4435_v61  ;;  %v2993_v3 = vrot.slane %v2977_v10, %v4422_v4  ;;  %v3000_v2 = vrot.slane %v2978_v30, %v4422_v4  ;;  %v3012_v30 = vcombine.high %v4390_v58, %v4390_v58 }
  0x9b   : > { %3287 = vperm.xlu0 %3847, %v3161_v15   ;;  %v3193_v63 = vrot.slane %v2993_v3, %v4435_v61  ;;  %v3009_v1 = vcombine.high %v2993_v3, %v2993_v3  ;;  %v3010_v34 = vcombine.high %v3000_v2, %v3000_v2 }
  0x9d   : > { %v150_v7 = vpop.permute.xlu1 %149  ;;  %3275 = vperm.xlu1 %3849, %v3149_v6   ;;  %v4526_v9 = vpop.permute.xlu0 %157  ;;  %v3185_v6 = vrot.slane %v3008_v28, %v4435_v61  ;;  %v167_v28 = vrot.slane %v119_v11, %v166_v24  ;;  %v3201_v38 = vrot.slane %v3009_v1, %v4435_v61  ;;  %v3189_v24 = vrot.slane %v3010_v34, %v4435_v61 }
  0x9f   : > { %3295 = vperm.xlu0 %3847, %v3169_v5   ;;  %v3173_v5 = vrot.slane %v2962_v29, %v4435_v61  ;;  %v2979_v29 = vcombine.high %v2977_v10, %v2977_v10  ;;  %v168_v39 = vmul.f32 %v167_v28, %v150_v7 }
  0xa1   : > { %v154_v15 = vpop.permute.xlu1 %153  ;;  %3283 = vperm.xlu1 %3849, %v3157_v60  }
  0xa2   : > { %v123_v31 = vpop.permute.xlu0 %122  ;;  %v169_v40 = vmul.f32 %v167_v28, %v154_v15 }
  0xa3   : > { %3303 = vperm.xlu0 %3847, %v3177_v0   ;;  %v3019_v0 = vrot.slane %v4390_v58, %v4422_v4  ;;  %v144_v36 = vmul.f32 %v143_v33, %v123_v31 }
  0xa5   : > { %3291 = vperm.xlu1 %3849, %v3165_v62   ;;  %v3181_v62 = vrot.slane %v3000_v2, %v4435_v61  ;;  %v3035_v3 = vrot.slane %v3019_v0, %v4422_v4  ;;  %v3026_v2 = vrot.slane %v3012_v30, %v4422_v4  ;;  %v172_v31 = vadd.f32 %v168_v39, %v144_v36 }
  0xa6   : > { %v128_v32 = vpop.permute.xlu0 %127  ;;  %v138_v60 = vpop.permute.xlu1 %137  ;;  %v3027_v1 = vcombine.high %v3019_v0, %v3019_v0  ;;  %v170_v39 = vmul.f32 %v167_v28, %v4526_v9 }
  0xa7   : > { %3311 = vperm.xlu0 %3847, %v3185_v6   ;;  %v145_v37 = vmul.f32 %v143_v33, %v128_v32  ;;  %v3209_v32 = vrot.slane %v3035_v3, %v4435_v61  ;;  %v3042_v34 = vrot.slane %v3026_v2, %v4422_v4 }
  0xa9   : > { %3299 = vperm.xlu1 %3849, %v3173_v5   ;;  %v3007_v5 = vrot.slane %v2979_v29, %v4422_v4  ;;  %v173_v11 = vadd.f32 %v169_v40, %v145_v37  ;;  %v147_v40 = vmul.f32 %v143_v33, %v138_v60  ;;  %v3225_v0 = vrot.slane %v3042_v34, %v4435_v61 }
  0xaa   : > { %v133_v35 = vpop.permute.xlu0 %132  ;;  %v3058_v30 = vcombine.high %v3042_v34, %v3042_v34 }
  0xab   : > { %3319 = vperm.xlu0 %3847, %v3193_v63   ;;  %v162_v6 = vpop.permute.xlu1 %161  ;;  %v3057_v63 = vcombine.high %v3035_v3, %v3035_v3  ;;  %v3197_v7 = vrot.slane %v3007_v5, %v4435_v61  ;;  %v3011_v15 = vcombine.high %v3007_v5, %v3007_v5  ;;  %v3028_v3 = vcombine.high %v3026_v2, %v3026_v2  ;;  %v4563_v5 = vld [vmem:[#allocation2 + $0x8] sm:$0xff] }
  0xac   : > { %v171_v29 = vmul.f32 %v167_v28, %v162_v6 }
  0xad   : > { %3307 = vperm.xlu1 %3849, %v3181_v62   ;;  %v146_v62 = vmul.f32 %v143_v33, %v133_v35  ;;  %v3217_v37 = vrot.slane %v3057_v63, %v4435_v61  ;;  %v3068_v35 = vrot.slane %v4395_v59, %v4422_v4  ;;  %v3056_v63 = vrot.slane %v3028_v3, %v4422_v4 }
  0xae   : > { %v184_v10 = vpop.permute.xlu0 %183 }
  0xaf   : > { %3327 = vperm.xlu0 %3847, %v3201_v38   ;;  %v197_v42 = vadd.f32 %v184_v10, %v173_v11  ;;  %v3049_v38 = vrot.slane %v3027_v1, %v4422_v4  ;;  %v3233_v11 = vrot.slane %v3058_v30, %v4435_v61  ;;  %v4573_v1 = vld [vmem:[#allocation2 + $0x10] sm:$0xff] }
  0xb0   : > { %v179_v41 = vpop.permute.xlu1 %178 }
  0xb1   : > { %v196_v43 = vadd.f32 %v179_v41, %v172_v31  ;;  %3315 = vperm.xlu1 %3849, %v3189_v24   ;;  %v3205_v41 = vrot.slane %v3011_v15, %v4435_v61  ;;  %v3213_v60 = vrot.slane %v3049_v38, %v4435_v61  ;;  %v3059_v28 = vcombine.high %v3049_v38, %v3049_v38  ;;  %v4561_v24 = vld [vmem:[#allocation2] sm:$0xff] }
  0xb2   : > { %v3061_v31 = vcombine.high %v4395_v59, %v4395_v59  ;;  %v3797_v2 = vpack.c.bf16 %v4563_v5, %v4561_v24  ;;  %v3076_v38 = vcombine.high %v3068_v35, %v3068_v35 }
  0xb3   : > { %v3789_v48 = vpack.c.bf16 %v197_v42, %v196_v43  ;;  %3335 = vperm.xlu0 %3847, %v3209_v32   ;;  %v174_v42 = vadd.f32 %v170_v39, %v146_v62  ;;  %v175_v43 = vadd.f32 %v171_v29, %v147_v40  ;;  %v3221_v32 = vrot.slane %v3059_v28, %v4435_v61 }
  0xb4   : > { %v189_v36 = vpop.permute.xlu1 %188  ;;  %v3075_v62 = vrot.slane %v3061_v31, %v4422_v4 }
  0xb5   : > { %3323 = vperm.xlu1 %3849, %v3197_v7   ;;  %3790 = vmatprep.subr.bf16.mxu0 %v3789_v48  ;;  %v198_v9 = vadd.f32 %v189_v36, %v174_v42  ;;  %v4575_v7 = vld [vmem:[#allocation2 + $0x18] sm:$0xff]  ;;  %v3060_v36 = vcombine.high %v3056_v63, %v3056_v63 }
  0xb6   : > { %3821 = vmatprep.subr.bf16.mxu1 %v3789_v48  ;;  %3792 = vmatpush3.bf16.msra.mxu0 %v3789_v48  ;;  %v3801_v29 = vpack.c.bf16 %v4575_v7, %v4573_v1  ;;  %v3091_v40 = vrot.slane %v3075_v62, %v4422_v4 }
  0xb7   : > { %3825 = vmatpush3.bf16.msra.mxu1 %v3789_v48  ;;  %3343 = vperm.xlu0 %3847, %v3217_v37   ;;  %v3084_v48 = vrot.slane %v3068_v35, %v4422_v4  ;;  %v3229_v37 = vrot.slane %v3056_v63, %v4435_v61 }
  0xb8   : > { %v194_v6 = vpop.permute.xlu1 %193  ;;  %v3257_v42 = vrot.slane %v3091_v40, %v4435_v61  ;;  %v3107_v35 = vcombine.high %v3091_v40, %v3091_v40 }
  0xb9   : > { %v199_v33 = vadd.f32 %v194_v6, %v175_v43  ;;  %3331 = vperm.xlu1 %3849, %v3205_v41   ;;  %v3241_v15 = vrot.slane %v3084_v48, %v4435_v61  ;;  %v3106_v34 = vcombine.high %v3084_v48, %v3084_v48  ;;  %v3237_v41 = vrot.slane %v3060_v36, %v4435_v61  ;;  %v203_v48 = vpop.permute.xlu0 %202 }
  0xba   : > { %v3077_v6 = vcombine.high %v3075_v62, %v3075_v62  ;;  %v3265_v3 = vrot.slane %v3107_v35, %v4435_v61 }
  0xbb   : > { %v3793_v10 = vpack.c.bf16 %v199_v33, %v198_v9  ;;  %3351 = vperm.xlu0 %3847, %v3225_v0   ;;  %v3249_v39 = vrot.slane %v3106_v34, %v4435_v61  ;;  %v3098_v0 = vrot.slane %v3076_v38, %v4422_v4 }
  0xbc   : > { %v3105_v33 = vrot.slane %v3077_v6, %v4422_v4 }
  0xbd   : > { %3339 = vperm.xlu1 %3849, %v3213_v60   ;;  %3794 = vmatprep.subr.bf16.mxu0 %v3793_v10  ;;  %v3245_v43 = vrot.slane %v3098_v0, %v4435_v61  ;;  %v3108_v30 = vcombine.high %v3098_v0, %v3098_v0 }
  0xbe   : > { %3822 = vmatprep.subr.bf16.mxu1 %v3793_v10  ;;  %3796 = vmatpush3.bf16.msra.mxu0 %v3793_v10  ;;  %v3261_v60 = vrot.slane %v3105_v33, %v4435_v61  ;;  %v3109_v28 = vcombine.high %v3105_v33, %v3105_v33 }
  0xbf   : > { %3826 = vmatpush3.bf16.msra.mxu1 %v3793_v10  ;;  %3359 = vperm.xlu0 %3847, %v3233_v11   ;;  %v3253_v9 = vrot.slane %v3108_v30, %v4435_v61  ;;  %v208_v11 = vpop.permute.xlu1 %207 }
  0xc0   : > { %3798 = vmatprep.subr.bf16.mxu0 %v3797_v2  ;;  %3823 = vmatprep.subr.bf16.mxu1 %v3797_v2  ;;  %v3269_v10 = vrot.slane %v3109_v28, %v4435_v61 }
  0xc1   : > { %3347 = vperm.xlu1 %3849, %v3221_v32  }
  0xc2   : > { %3800 = vmatpush3.bf16.msra.mxu0 %v3797_v2 }
  0xc3   : > { %3827 = vmatpush3.bf16.msra.mxu1 %v3797_v2  ;;  %3367 = vperm.xlu0 %3847, %v3241_v15   ;;  %v218_v31 = vpop.permute.xlu1 %217  ;;  %v213_v2 = vpop.permute.xlu0 %212 }
  0xc4   : > { %3802 = vmatprep.subr.bf16.mxu0 %v3801_v29  ;;  %3824 = vmatprep.subr.bf16.mxu1 %v3801_v29 }
  0xc5   : > { %3355 = vperm.xlu1 %3849, %v3229_v37  }
  0xc6   : > { %3804 = vmatpush3.bf16.msra.mxu0 %v3801_v29 }
  0xc7   : > { %3828 = vmatpush3.bf16.msra.mxu1 %v3801_v29  ;;  %3375 = vperm.xlu0 %3847, %v3249_v39   ;;  %v228_v62 = vpop.permute.xlu1 %227  ;;  %v223_v36 = vpop.permute.xlu0 %222 }
  0xc9   : > { %3363 = vperm.xlu1 %3849, %v3237_v41   ;;  %3738 = vmatmul.mubr.msk.f32.vlgmr.msra.gmra.mrb[0].mxu0 %vm280_vm2, %v5521_v12 }
  0xca   : > { %3756 = vmatmul.mubr.msk.f32.vlgmr.msra.gmra.mrb[0].mxu1 %vm280_vm2, %v5522_v25  ;;  %3740 = vmatprep.mubr.msk.f32.mxu0 %vm280_vm2, %v5523_v13 }
  0xcb   : > { %3383 = vperm.xlu0 %3847, %v3257_v42   ;;  %3758 = vmatprep.mubr.msk.f32.mxu1 %vm280_vm2, %v5524_v26  ;;  %v238_v6 = vpop.permute.xlu1 %237  ;;  %v233_v33 = vpop.permute.xlu0 %232 }
  0xcd   : > { %3371 = vperm.xlu1 %3849, %v3245_v43   ;;  %3741 = vmatmul.mubr.msk.f32.gmra.mrb[2].mxu0 %vm280_vm2, %v5525_v14 }
  0xce   : > { %3759 = vmatmul.mubr.msk.f32.gmra.mrb[2].mxu1 %vm280_vm2, %v5526_v27  ;;  %3743 = vmatprep.mubr.msk.f32.mxu0 %vm280_vm2, %v5527_v16 }
  0xcf   : > { %3391 = vperm.xlu0 %3847, %v3265_v3   ;;  %3769 = vmatprep.mubr.msk.f32.mxu1 %vm554_vm3, %v5535_v44 }
  0xd1   : > { %3379 = vperm.xlu1 %3849, %v3253_v9   ;;  %3744 = vmatmul.mubr.msk.f32.gmra.mrb[4].mxu0 %vm280_vm2, %v5528_v17 }
  0xd2   : > { %3746 = vmatprep.mubr.msk.f32.mxu0 %vm280_vm2, %v5529_v18 }
  0xd5   : > { %3387 = vperm.xlu1 %3849, %v3261_v60   ;;  %3747 = vmatmul.mubr.msk.f32.gmra.mrb[6].mxu0 %vm280_vm2, %v5530_v19 }
  0xd6   : > { %3749 = vmatprep.mubr.msk.f32.mxu0 %vm280_vm2, %v5531_v20 }
  0xd9   : > { %3395 = vperm.xlu1 %3849, %v3269_v10   ;;  %3750 = vmatmul.mubr.msk.f32.gmra.mrb[8].mxu0 %vm280_vm2, %v5532_v21 }
  0xda   : > { %3752 = vmatprep.mubr.msk.f32.mxu0 %vm280_vm2, %v5533_v22 }
  0xdd   : > { %3753 = vmatmul.mubr.msk.f32.gmra.mrb[10].mxu0 %vm280_vm2, %v5534_v23 }
 0x19c   : > { %v3739_v32 = vpop.f32.mrb[0].mxu0 }
 0x19d   : > { %v401_v63 = vadd.f32 %v3739_v32, %v208_v11  ;;  %v4623_v15 = vpop.f32.mrb[0].mxu1  ;;  %v395_v34 = vpop.f32.mrb[1].mxu0 }
 0x19e   : > { %v396_v29 = vadd.f32 %v395_v34, %v203_v48  ;;  %v4625_v37 = vpop.f32.mrb[1].mxu1  ;;  %v268_v34 = vpop.permute.xlu1 %267 }
 0x19f   : > { %v3586_v38 = vmul.f32 -1.442695, %v401_v63 }
 0x1a0   : > { %v3585_v39 = vmul.f32 -1.442695, %v396_v29  ;;  %v3742_v40 = vpop.f32.mrb[2].mxu0 }
 0x1a1   : > { %3850 = vpow2.f32 %v3586_v38  ;;  %v411_v41 = vadd.f32 %v3742_v40, %v218_v31  ;;  %v4627_v0 = vpop.f32.mrb[2].mxu1  ;;  %v405_v42 = vpop.f32.mrb[3].mxu0 }
 0x1a2   : > { %3852 = vpow2.f32 %v3585_v39  ;;  %v406_v35 = vadd.f32 %v405_v42, %v213_v2  ;;  %v4629_v43 = vpop.f32.mrb[3].mxu1  ;;  %v263_v38 = vpop.permute.xlu0 %262 }
 0x1a3   : > { %v3588_v30 = vmul.f32 -1.442695, %v411_v41 }
 0x1a4   : > { %v3587_v3 = vmul.f32 -1.442695, %v406_v35  ;;  %v3745_v9 = vpop.f32.mrb[4].mxu0 }
 0x1a5   : > { %3854 = vpow2.f32 %v3588_v30  ;;  %v421_v60 = vadd.f32 %v3745_v9, %v228_v62  ;;  %v415_v28 = vpop.f32.mrb[5].mxu0  ;;  %v248_v9 = vpop.permute.xlu1 %247 }
 0x1a6   : > { %3856 = vpow2.f32 %v3587_v3  ;;  %v416_v10 = vadd.f32 %v415_v28, %v223_v36  ;;  %v243_v28 = vpop.permute.xlu0 %242 }
 0x1a7   : > { %v3590_v11 = vmul.f32 -1.442695, %v421_v60 }
 0x1a8   : > { %v3589_v48 = vmul.f32 -1.442695, %v416_v10  ;;  %v3748_v31 = vpop.f32.mrb[6].mxu0 }
 0x1a9   : > { %3858 = vpow2.f32 %v3590_v11  ;;  %v431_v32 = vadd.f32 %v3748_v31, %v238_v6  ;;  %v425_v63 = vpop.f32.mrb[7].mxu0  ;;  %v278_v31 = vpop.permute.xlu1 %277 }
 0x1aa   : > { %3860 = vpow2.f32 %v3589_v48  ;;  %v426_v2 = vadd.f32 %v425_v63, %v233_v33 }
 0x1ab   : > { %v3851_v29 = vpop.eup %3850  ;;  %v3592_v39 = vmul.f32 -1.442695, %v431_v32 }
 0x1ac   : > { %v3853_v40 = vpop.eup %3852  ;;  %v487_v41 = vadd.f32 1.0, %v3851_v29  ;;  %v3591_v42 = vmul.f32 -1.442695, %v426_v2  ;;  %v3751_v35 = vpop.f32.mrb[8].mxu0  ;;  %v461_v29 = vadd.f32 %v4623_v15, %v268_v34 }
 0x1ad   : > { %v486_v62 = vadd.f32 1.0, %v3853_v40  ;;  %3862 = vpow2.f32 %v3592_v39  ;;  %v435_v30 = vpop.f32.mrb[9].mxu0  ;;  %v273_v2 = vpop.permute.xlu0 %272  ;;  %v441_v12 = vadd.f32 %v3751_v35, %v248_v9 }
 0x1ae   : > { %3864 = vrcp.f32 %v487_v41  ;;  %v456_v41 = vadd.f32 %v4625_v37, %v263_v38  ;;  %v258_v17 = vpop.permute.xlu1 %257  ;;  %v466_v15 = vadd.f32 %v4629_v43, %v273_v2 }
 0x1af   : > { %v3855_v36 = vpop.eup %3854  ;;  %3866 = vrcp.f32 %v486_v62 }
 0x1b0   : > { %v3857_v3 = vpop.eup %3856  ;;  %v489_v6 = vadd.f32 1.0, %v3855_v36  ;;  %3868 = vpow2.f32 %v3591_v42  ;;  %v3754_v60 = vpop.f32.mrb[10].mxu0 }
 0x1b1   : > { %v488_v33 = vadd.f32 1.0, %v3857_v3  ;;  %v445_v10 = vpop.f32.mrb[11].mxu0  ;;  %v253_v38 = vpop.permute.xlu0 %252  ;;  %v451_v35 = vadd.f32 %v3754_v60, %v258_v17 }
 0x1b2   : > { %3870 = vrcp.f32 %v489_v6  ;;  %v436_v6 = vadd.f32 %v435_v30, %v243_v28 }
 0x1b3   : > { %v3859_v11 = vpop.eup %3858  ;;  %3872 = vrcp.f32 %v488_v33  ;;  %v471_v33 = vadd.f32 %v4627_v0, %v278_v31 }
 0x1b4   : > { %v3861_v48 = vpop.eup %3860  ;;  %v511_v32 = vadd.f32 1.0, %v3859_v11 }
 0x1b5   : > { %v510_v39 = vadd.f32 1.0, %v3861_v48 }
 0x1b6   : > { %3874 = vrcp.f32 %v511_v32  ;;  %v446_v32 = vadd.f32 %v445_v10, %v253_v38 }
 0x1b7   : > { %v3863_v63 = vpop.eup %3862  ;;  %3876 = vrcp.f32 %v510_v39 }
 0x1b8   : > { %v3865_v40 = vpop.eup %3864  ;;  %v513_v62 = vadd.f32 1.0, %v3863_v63 }
 0x1b9   : > { %v3867_v42 = vpop.eup %3866  ;;  %v523_v36 = vmul.f32 %v3865_v40, %v461_v29 }
 0x1ba   : > { %v3869_v3 = vpop.eup %3868  ;;  %v522_v13 = vmul.f32 %v3867_v42, %v456_v41  ;;  %3878 = vrcp.f32 %v513_v62 }
 0x1bb   : > { %v512_v11 = vadd.f32 1.0, %v3869_v3  ;;  %v527_v14 = vadd.f32 %v523_v36, %v441_v12 }
 0x1bc   : > { %v3871_v16 = vpop.eup %3870  ;;  %v526_v34 = vadd.f32 %v522_v13, %v436_v6 }
 0x1bd   : > { %v3873_v37 = vpop.eup %3872  ;;  %v525_v48 = vmul.f32 %v3871_v16, %v471_v33  ;;  %3880 = vrcp.f32 %v512_v11 }
 0x1be   : > { %v524_v9 = vmul.f32 %v3873_v37, %v466_v15  ;;  %3882 = vtanh.f32 %v527_v14 }
 0x1bf   : > { %3884 = vtanh.f32 %v526_v34  ;;  %v529_v30 = vadd.f32 %v525_v48, %v451_v35 }
 0x1c0   : > { %v528_v0 = vadd.f32 %v524_v9, %v446_v32  ;;  %v3875_v12 = vpop.eup %3874 }
 0x1c1   : > { %3886 = vtanh.f32 %v529_v30  ;;  %v3877_v28 = vpop.eup %3876  ;;  %v535_v43 = vsub.f32 1.0, %v3875_v12  ;;  %v543_v16 = vmul.f32 %v3875_v12, %v4563_v5 }
 0x1c2   : > { %3888 = vtanh.f32 %v528_v0  ;;  %v534_v13 = vsub.f32 1.0, %v3877_v28  ;;  %v542_v14 = vmul.f32 %v3877_v28, %v4561_v24 }
 0x1c4   : > { %v3879_v31 = vpop.eup %3878 }
 0x1c5   : > { %v537_v60 = vsub.f32 1.0, %v3879_v31  ;;  %v545_v3 = vmul.f32 %v3879_v31, %v4575_v7 }
 0x1c7   : > { %v3881_v63 = vpop.eup %3880 }
 0x1c8   : > { %v3883_v2 = vpop.eup %3882  ;;  %v536_v41 = vsub.f32 1.0, %v3881_v63  ;;  %v544_v33 = vmul.f32 %v3881_v63, %v4573_v1 }
 0x1c9   : > { %v3885_v29 = vpop.eup %3884  ;;  %v539_v39 = vmul.f32 %v3883_v2, %v535_v43 }
 0x1ca   : > { %v538_v17 = vmul.f32 %v3885_v29, %v534_v13 }
 0x1cb   : > { %v3887_v10 = vpop.eup %3886  ;;  %v547_v40 = vadd.f32 %v543_v16, %v539_v39 }
 0x1cc   : > { %v3889_v62 = vpop.eup %3888  ;;  %v546_v42 = vadd.f32 %v542_v14, %v538_v17  ;;  %v541_v36 = vmul.f32 %v3887_v10, %v537_v60 }
 0x1cd   : > { %551 = vst.msk [vmem:[#allocation2 + $0x8] sm:$0xff] %vm102_vm0, %v547_v40  ;;  %v540_v6 = vmul.f32 %v3889_v62, %v536_v41 }
 0x1ce   : > { %550 = vst.msk [vmem:[#allocation2] sm:$0xff] %vm102_vm0, %v546_v42  ;;  %v3805_v5 = vpack.c.bf16 %v547_v40, %v546_v42  ;;  %v549_v11 = vadd.f32 %v545_v3, %v541_v36 }
 0x1cf   : > { %v548_v15 = vadd.f32 %v544_v33, %v540_v6 }
 0x1d0   : > { %3806 = vmatprep.subr.bf16.mxu1 %v3805_v5  ;;  %553 = vst.msk [vmem:[#allocation2 + $0x18] sm:$0xff] %vm102_vm0, %v549_v11 }
 0x1d1   : > { %3808 = vmatpush3.bf16.msra.mxu1 %v3805_v5  ;;  %552 = vst.msk [vmem:[#allocation2 + $0x10] sm:$0xff] %vm102_vm0, %v548_v15  ;;  %v3809_v24 = vpack.c.bf16 %v549_v11, %v548_v15 }
 0x1d3   : > { %3810 = vmatprep.subr.bf16.mxu1 %v3809_v24 }
 0x1d5   : > { %3812 = vmatpush3.bf16.msra.mxu1 %v3809_v24 }
 0x1d8   : > { %3770 = vmatmul.mubr.msk.f32.vlgmr.msra.gmra.mrb[4].mxu1 %vm554_vm3, %v5536_v45 }
 0x1d9   : > { %3772 = vmatprep.mubr.msk.f32.mxu1 %vm554_vm3, %v5537_v46 }
 0x1dc   : > { %3773 = vmatmul.mubr.msk.f32.gmra.mrb[6].mxu1 %vm554_vm3, %v5538_v47 }
 0x1dd   : > { %3783 = vmatprep.mubr.msk.f32.mxu1 %vm554_vm3, %v4360_v52 }
 0x2ab   : > { %v3771_v1 = vpop.f32.mrb[4].mxu1 }
 0x2ac   : > { %v633_v7 = vpop.f32.mrb[5].mxu1  ;;  %v737_v37 = vcombine.high %v3771_v1, %v3771_v1  ;;  %v744_v38 = vrot.slane %v3771_v1, %v4422_v4 }
 0x2ad   : > { %v688_v34 = vcombine.high %v633_v7, %v633_v7  ;;  %v695_v48 = vrot.slane %v633_v7, %v4422_v4 }
 0x2ae   : > { %v751_v30 = vrot.slane %v737_v37, %v4422_v4  ;;  %v752_v0 = vcombine.high %v744_v38, %v744_v38  ;;  %v760_v28 = vrot.slane %v744_v38, %v4422_v4 }
 0x2af   : > { %v4653_v35 = vpop.f32.mrb[6].mxu1  ;;  %v702_v9 = vrot.slane %v688_v34, %v4422_v4  ;;  %v703_v12 = vcombine.high %v695_v48, %v695_v48  ;;  %v711_v13 = vrot.slane %v695_v48, %v4422_v4 }
 0x2b0   : > { %v4656_v32 = vpop.f32.mrb[7].mxu1  ;;  %v753_v63 = vcombine.high %v751_v30, %v751_v30  ;;  %v767_v43 = vrot.slane %v751_v30, %v4422_v4  ;;  %v774_v2 = vrot.slane %v752_v0, %v4422_v4  ;;  %v782_v16 = vcombine.high %v760_v28, %v760_v28 }
 0x2b1   : > { %v704_v31 = vcombine.high %v702_v9, %v702_v9  ;;  %v718_v29 = vrot.slane %v702_v9, %v4422_v4  ;;  %v725_v39 = vrot.slane %v703_v12, %v4422_v4  ;;  %v924_v10 = vpack.c.bf16 %v760_v28, %v760_v28  ;;  %v652_v12 = vld [vmem:[%s5426_s2] sm:$0xf]  ;;  %v653_v28 = vld [vmem:[%s5426_s2 + $0x4] sm:$0xf] }
 0x2b2   : > { %v781_v14 = vrot.slane %v753_v63, %v4422_v4  ;;  %v4667_v60 = vcombine.high %v767_v43, %v767_v43  ;;  %v784_v40 = vcombine.high %v774_v2, %v774_v2  ;;  %v733_v41 = vcombine.high %v711_v13, %v711_v13 }
 0x2b3   : > { %v732_v17 = vrot.slane %v704_v31, %v4422_v4  ;;  %v734_v62 = vcombine.high %v718_v29, %v718_v29  ;;  %v735_v42 = vcombine.high %v725_v39, %v725_v39  ;;  %v925_v36 = vpack.c.bf16 %v774_v2, %v774_v2  ;;  %v4681_v2 = vpop.permute.xlu0 %1597 }
 0x2b4   : > { %v4669_v3 = vpack.c.bf16 %v782_v16, %v782_v16  ;;  %v916_v33 = vpack.c.bf16 %v711_v13, %v711_v13  ;;  %v4671_v5 = vpack.c.bf16 %v767_v43, %v767_v43  ;;  %v917_v11 = vpack.c.bf16 %v725_v39, %v725_v39  ;;  %v655_v39 = vld [vmem:[%s5426_s2 + $0xc] sm:$0xf] }
 0x2b5   : > { %v736_v6 = vcombine.high %v732_v17, %v732_v17  ;;  %v918_v15 = vpack.c.bf16 %v733_v41, %v733_v41  ;;  %v919_v24 = vpack.c.bf16 %v735_v42, %v735_v42  ;;  %v1005_v1 = vpack.i.b16 %v924_v10, %v924_v10 }
 0x2b6   : > { %v920_v7 = vpack.c.bf16 %v718_v29, %v718_v29  ;;  %v921_v34 = vpack.c.bf16 %v732_v17, %v732_v17  ;;  %v922_v37 = vpack.c.bf16 %v734_v62, %v734_v62  ;;  %v927_v38 = vpack.c.bf16 %v784_v40, %v784_v40  ;;  %v654_v29 = vld [vmem:[%s5426_s2 + $0x8] sm:$0xf]  ;;  %v656_v40 = vld [vmem:[%s5426_s2 + $0x10] sm:$0xf] }
 0x2b7   : > { %v923_v48 = vpack.c.bf16 %v736_v6, %v736_v6  ;;  %v949_v9 = vpack.i.b16 %v916_v33, %v916_v33  ;;  %v956_v30 = vpack.i.b16 %v917_v11, %v917_v11  ;;  %v4673_v0 = vpack.c.bf16 %v781_v14, %v781_v14  ;;  %v4697_v6 = vpop.permute.xlu1 %1601  ;;  %v657_v33 = vld [vmem:[%s5426_s2 + $0x14] sm:$0xf] }
 0x2b8   : > { %v963_v31 = vpack.i.b16 %v918_v15, %v918_v15  ;;  %v970_v63 = vpack.i.b16 %v919_v24, %v919_v24  ;;  %v977_v43 = vpack.i.b16 %v920_v7, %v920_v7  ;;  %v1012_v13 = vpack.i.b16 %v925_v36, %v925_v36 }
 0x2b9   : > { %v954_v16 = vrot.slane %v949_v9, %v4435_v61  ;;  %v961_v17 = vrot.slane %v956_v30, %v4435_v61  ;;  %v984_v10 = vpack.i.b16 %v921_v34, %v921_v34  ;;  %v991_v36 = vpack.i.b16 %v922_v37, %v922_v37  ;;  %v658_v9 = vld [vmem:[%s5426_s2 + $0x18] sm:$0xf] }
 0x2ba   : > { %v968_v41 = vrot.slane %v963_v31, %v4435_v61  ;;  %v975_v62 = vrot.slane %v970_v63, %v4435_v61  ;;  %v982_v42 = vrot.slane %v977_v43, %v4435_v61  ;;  %v998_v15 = vpack.i.b16 %v923_v48, %v923_v48  ;;  %v659_v43 = vld [vmem:[%s5426_s2 + $0x1c] sm:$0xf] }
 0x2bb   : > { %v989_v11 = vrot.slane %v984_v10, %v4435_v61  ;;  %v1172_v24 = vadd.bf16 %v954_v16, %v652_v12  ;;  %v1173_v7 = vadd.bf16 %v961_v17, %v653_v28  ;;  %v1010_v34 = vrot.slane %v1005_v1, %v4435_v61  ;;  %v660_v1 = vld [vmem:[%s5426_s2 + $0x20] sm:$0xf]  ;;  %v661_v10 = vld [vmem:[%s5426_s2 + $0x24] sm:$0xf] }
 0x2bc   : > { %v996_v30 = vrot.slane %v991_v36, %v4435_v61  ;;  %v1174_v37 = vadd.bf16 %v968_v41, %v654_v29  ;;  %v1175_v31 = vadd.bf16 %v975_v62, %v655_v39  ;;  %v1019_v63 = vpack.i.b16 %v4669_v3, %v4669_v3  ;;  %v1606_v29 = vpop.permute.xlu0 %1605  ;;  %v662_v36 = vld [vmem:[%s5426_s2 + $0x28] sm:$0xf] }
 0x2bd   : > { %v1003_v48 = vrot.slane %v998_v15, %v4435_v61  ;;  %v1176_v12 = vadd.bf16 %v982_v42, %v656_v40  ;;  %3890 = vtanh.bf16 %v1172_v24  ;;  %v785_v28 = vcombine.high %v781_v14, %v781_v14  ;;  %v1610_v14 = vpop.permute.xlu1 %1609  ;;  %v664_v24 = vld [vmem:[%s5426_s2 + $0x30] sm:$0xf] }
 0x2be   : > { %v1177_v16 = vadd.bf16 %v989_v11, %v657_v33  ;;  %3892 = vtanh.bf16 %v1173_v7  ;;  %v1017_v39 = vrot.slane %v1012_v13, %v4435_v61  ;;  %v1026_v17 = vpack.i.b16 %v927_v38, %v927_v38 }
 0x2bf   : > { %v1178_v3 = vadd.bf16 %v996_v30, %v658_v9  ;;  %3894 = vtanh.bf16 %v1174_v37  ;;  %v930_v40 = vpack.c.bf16 %v4667_v60, %v4667_v60  ;;  %v1033_v41 = vpack.i.b16 %v4671_v5, %v4671_v5  ;;  %v663_v5 = vld [vmem:[%s5426_s2 + $0x2c] sm:$0xf]  ;;  %v665_v30 = vld [vmem:[%s5426_s2 + $0x34] sm:$0xf] }
 0x2c0   : > { %v1179_v62 = vadd.bf16 %v1003_v48, %v659_v43  ;;  %3896 = vtanh.bf16 %v1175_v31  ;;  %v1024_v42 = vrot.slane %v1019_v63, %v4435_v61  ;;  %v1040_v38 = vpack.i.b16 %v4673_v0, %v4673_v0  ;;  %v1614_v0 = vpop.permute.xlu0 %1613 }
 0x2c1   : > { %v1180_v13 = vadd.bf16 %v1010_v34, %v660_v1  ;;  %3898 = vtanh.bf16 %v1176_v12  ;;  %v1031_v60 = vrot.slane %v1026_v17, %v4435_v61  ;;  %v1181_v33 = vadd.bf16 %v1017_v39, %v661_v10  ;;  %v1618_v37 = vpop.permute.xlu1 %1617  ;;  %v666_v17 = vld [vmem:[%s5426_s2 + $0x38] sm:$0xf] }
 0x2c2   : > { %3900 = vtanh.bf16 %v1177_v16  ;;  %v931_v11 = vpack.c.bf16 %v785_v28, %v785_v28  ;;  %v1038_v15 = vrot.slane %v1033_v41, %v4435_v61  ;;  %v1045_v7 = vrot.slane %v1040_v38, %v4435_v61 }
 0x2c3   : > { %3902 = vtanh.bf16 %v1178_v3  ;;  %v1047_v34 = vpack.i.b16 %v930_v40, %v930_v40  ;;  %v1182_v9 = vadd.bf16 %v1024_v42, %v662_v36  ;;  %v1183_v31 = vadd.bf16 %v1031_v60, %v663_v5 }
 0x2c4   : > { %3904 = vtanh.bf16 %v1179_v62  ;;  %v1054_v43 = vpack.i.b16 %v931_v11, %v931_v11  ;;  %v1184_v48 = vadd.bf16 %v1038_v15, %v664_v24  ;;  %v1185_v28 = vadd.bf16 %v1045_v7, %v665_v30  ;;  %v1622_v40 = vpop.permute.xlu0 %1621  ;;  %v667_v7 = vld [vmem:[%s5426_s2 + $0x3c] sm:$0xf] }
 0x2c5   : > { %3906 = vtanh.bf16 %v1180_v13  ;;  %v1052_v1 = vrot.slane %v1047_v34, %v4435_v61 }
 0x2c6   : > { %3908 = vtanh.bf16 %v1181_v33  ;;  %v1059_v38 = vrot.slane %v1054_v43, %v4435_v61  ;;  %v1626_v33 = vpop.permute.xlu1 %1625 }
 0x2c7   : > { %3910 = vtanh.bf16 %v1182_v9  ;;  %v1186_v5 = vadd.bf16 %v1052_v1, %v666_v17 }
 0x2c8   : > { %v3891_v63 = vpop.eup %3890  ;;  %3912 = vtanh.bf16 %v1183_v31  ;;  %v1630_v1 = vpop.permute.xlu0 %1629 }
 0x2c9   : > { %v3893_v12 = vpop.eup %3892  ;;  %v1436_v16 = vunpack.c.l.bf16 %v3891_v63  ;;  %3914 = vtanh.bf16 %v1184_v48 }
 0x2ca   : > { %v3895_v39 = vpop.eup %3894  ;;  %v1437_v3 = vunpack.c.l.bf16 %v3893_v12  ;;  %3916 = vtanh.bf16 %v1185_v28 }
 0x2cb   : > { %v3897_v10 = vpop.eup %3896  ;;  %v1438_v41 = vunpack.c.l.bf16 %v3895_v39  ;;  %v1724_v62 = vmul.f32 %v4681_v2, %v1436_v16  ;;  %3918 = vtanh.bf16 %v1186_v5 }
 0x2cc   : > { %v3899_v42 = vpop.eup %3898  ;;  %v1439_v13 = vunpack.c.l.bf16 %v3897_v10  ;;  %v1725_v36 = vmul.f32 %v4697_v6, %v1437_v3  ;;  %v1634_v3 = vpop.permute.xlu1 %1633 }
 0x2cd   : > { %v3901_v60 = vpop.eup %3900  ;;  %v1440_v11 = vunpack.c.l.bf16 %v3899_v42  ;;  %v1726_v15 = vmul.f32 %v1606_v29, %v1438_v41  ;;  %v1756_v9 = vsel %vm102_vm0, %v1724_v62, 0.0  ;;  %v1187_v29 = vadd.bf16 %v1059_v38, %v667_v7 }
 0x2ce   : > { %v3903_v24 = vpop.eup %3902  ;;  %v1441_v34 = vunpack.c.l.bf16 %v3901_v60  ;;  %v1727_v2 = vmul.f32 %v1610_v14, %v1439_v13  ;;  %v1757_v30 = vsel %vm102_vm0, %v1725_v36, 0.0  ;;  %v4762_v60 = vrot.slane %v4653_v35, %v4422_v4 }
 0x2cf   : > { %v3905_v31 = vpop.eup %3904  ;;  %v1758_v63 = vadd.f32 %v1757_v30, %v1756_v9  ;;  %v1442_v43 = vunpack.c.l.bf16 %v3903_v24  ;;  %v1728_v48 = vmul.f32 %v1614_v0, %v1440_v11  ;;  %v1759_v12 = vsel %vm102_vm0, %v1726_v15, 0.0  ;;  %v1638_v24 = vpop.permute.xlu0 %1637 }
 0x2d0   : > { %v3907_v6 = vpop.eup %3906  ;;  %v1443_v39 = vunpack.c.l.bf16 %v3905_v31  ;;  %v1729_v17 = vmul.f32 %v1618_v37, %v1441_v34  ;;  %v1761_v14 = vsel %vm102_vm0, %v1727_v2, 0.0  ;;  %v835_v0 = vcombine.high %v4653_v35, %v4653_v35 }
 0x2d1   : > { %v1760_v28 = vadd.f32 %v1759_v12, %v1758_v63  ;;  %v3909_v16 = vpop.eup %3908  ;;  %v1444_v10 = vunpack.c.l.bf16 %v3907_v6  ;;  %v1730_v42 = vmul.f32 %v1622_v40, %v1442_v43  ;;  %v1763_v13 = vsel %vm102_vm0, %v1728_v48, 0.0 }
 0x2d2   : > { %v3911_v62 = vpop.eup %3910  ;;  %3920 = vtanh.bf16 %v1187_v29  ;;  %v1445_v36 = vunpack.c.l.bf16 %v3909_v16  ;;  %v1731_v5 = vmul.f32 %v1626_v33, %v1443_v39  ;;  %v1765_v11 = vsel %vm102_vm0, %v1729_v17, 0.0  ;;  %v1642_v33 = vpop.permute.xlu1 %1641 }
 0x2d3   : > { %v1762_v41 = vadd.f32 %v1761_v14, %v1760_v28  ;;  %v3913_v37 = vpop.eup %3912  ;;  %v1446_v7 = vunpack.c.l.bf16 %v3911_v62  ;;  %v1732_v40 = vmul.f32 %v1630_v1, %v1444_v10  ;;  %v1767_v9 = vsel %vm102_vm0, %v1730_v42, 0.0  ;;  %v1646_v42 = vpop.permute.xlu0 %1645 }
 0x2d4   : > { %v3915_v15 = vpop.eup %3914  ;;  %v4767_v30 = vrot.slane %v835_v0, %v4422_v4  ;;  %v786_v31 = vcombine.high %v4656_v32, %v4656_v32  ;;  %v793_v35 = vrot.slane %v4656_v32, %v4422_v4  ;;  %v1447_v63 = vunpack.c.l.bf16 %v3913_v37 }
 0x2d5   : > { %v1764_v38 = vadd.f32 %v1763_v13, %v1762_v41  ;;  %v3917_v2 = vpop.eup %3916  ;;  %v1733_v6 = vmul.f32 %v1634_v3, %v1445_v36  ;;  %v850_v48 = vcombine.high %v4762_v60, %v4762_v60  ;;  %v1769_v12 = vsel %vm102_vm0, %v1731_v5, 0.0 }
 0x2d6   : > { %v800_v1 = vrot.slane %v786_v31, %v4422_v4  ;;  %v801_v29 = vcombine.high %v793_v35, %v793_v35  ;;  %v809_v28 = vrot.slane %v793_v35, %v4422_v4  ;;  %v1448_v16 = vunpack.c.l.bf16 %v3915_v15  ;;  %v3919_v32 = vpop.eup %3918 }
 0x2d7   : > { %v1766_v34 = vadd.f32 %v1765_v11, %v1764_v38  ;;  %v1734_v39 = vmul.f32 %v1638_v24, %v1446_v7  ;;  %v1771_v17 = vsel %vm102_vm0, %v1732_v40, 0.0  ;;  %v1449_v10 = vunpack.c.l.bf16 %v3917_v2  ;;  %v1650_v24 = vpop.permute.xlu1 %1649 }
 0x2d8   : > { %v802_v41 = vcombine.high %v800_v1, %v800_v1  ;;  %v816_v3 = vrot.slane %v800_v1, %v4422_v4  ;;  %v823_v62 = vrot.slane %v801_v29, %v4422_v4  ;;  %v1735_v13 = vmul.f32 %v1642_v33, %v1447_v63 }
 0x2d9   : > { %v1768_v43 = vadd.f32 %v1767_v9, %v1766_v34  ;;  %v831_v36 = vcombine.high %v809_v28, %v809_v28  ;;  %v932_v38 = vpack.c.bf16 %v809_v28, %v809_v28  ;;  %v1773_v37 = vsel %vm102_vm0, %v1733_v6, 0.0 }
 0x2da   : > { %v830_v5 = vrot.slane %v802_v41, %v4422_v4  ;;  %v832_v11 = vcombine.high %v816_v3, %v816_v3  ;;  %v833_v15 = vcombine.high %v823_v62, %v823_v62  ;;  %v1450_v7 = vunpack.c.l.bf16 %v3919_v32  ;;  %v1654_v32 = vpop.permute.xlu0 %1653 }
 0x2db   : > { %v1770_v14 = vadd.f32 %v1769_v12, %v1768_v43  ;;  %v933_v34 = vpack.c.bf16 %v823_v62, %v823_v62  ;;  %v934_v2 = vpack.c.bf16 %v831_v36, %v831_v36  ;;  %v1775_v31 = vsel %vm102_vm0, %v1734_v39, 0.0 }
 0x2dc   : > { %v834_v35 = vcombine.high %v830_v5, %v830_v5  ;;  %v935_v43 = vpack.c.bf16 %v833_v15, %v833_v15  ;;  %v936_v33 = vpack.c.bf16 %v816_v3, %v816_v3  ;;  %v937_v12 = vpack.c.bf16 %v830_v5, %v830_v5  ;;  %v1658_v5 = vpop.permute.xlu1 %1657 }
 0x2dd   : > { %v1772_v0 = vadd.f32 %v1771_v17, %v1770_v14  ;;  %v3921_v9 = vpop.eup %3920  ;;  %v1061_v1 = vpack.i.b16 %v932_v38, %v932_v38  ;;  %v1068_v6 = vpack.i.b16 %v933_v34, %v933_v34  ;;  %v851_v29 = vcombine.high %v4767_v30, %v4767_v30 }
 0x2de   : > { %v858_v28 = vrot.slane %v4762_v60, %v4422_v4  ;;  %v938_v17 = vpack.c.bf16 %v832_v11, %v832_v11  ;;  %v1075_v14 = vpack.i.b16 %v934_v2, %v934_v2  ;;  %v1451_v41 = vunpack.c.l.bf16 %v3921_v9  ;;  %v668_v60 = vld [vmem:[%s5426_s2 + $0x40] sm:$0xf]  ;;  %v670_v9 = vld [vmem:[%s5426_s2 + $0x48] sm:$0xf] }
 0x2df   : > { %v1774_v40 = vadd.f32 %v1773_v37, %v1772_v0  ;;  %v1736_v62 = vmul.f32 %v1646_v42, %v1448_v16  ;;  %v872_v39 = vrot.slane %v850_v48, %v4422_v4  ;;  %v1082_v0 = vpack.i.b16 %v935_v43, %v935_v43  ;;  %v669_v48 = vld [vmem:[%s5426_s2 + $0x44] sm:$0xf]  ;;  %v671_v43 = vld [vmem:[%s5426_s2 + $0x4c] sm:$0xf] }
 0x2e0   : > { %v1737_v3 = vmul.f32 %v1650_v24, %v1449_v10  ;;  %v939_v36 = vpack.c.bf16 %v834_v35, %v834_v35  ;;  %v1066_v37 = vrot.slane %v1061_v1, %v4435_v61  ;;  %v1089_v38 = vpack.i.b16 %v936_v33, %v936_v33 }
 0x2e1   : > { %v4784_v63 = vadd.f32 %v1775_v31, %v1774_v40  ;;  %v1738_v15 = vmul.f32 %v1654_v32, %v1450_v7  ;;  %v1777_v40 = vsel %vm102_vm0, %v1735_v13, 0.0  ;;  %v1073_v11 = vrot.slane %v1068_v6, %v4435_v61  ;;  %v4812_v6 = vpop.permute.xlu0 %1661 }
 0x2e2   : > { %v1096_v34 = vpack.i.b16 %v937_v12, %v937_v12  ;;  %v880_v16 = vcombine.high %v858_v28, %v858_v28  ;;  %v940_v42 = vpack.c.bf16 %v858_v28, %v858_v28  ;;  %v1080_v10 = vrot.slane %v1075_v14, %v4435_v61 }
 0x2e3   : > { %v1103_v24 = vpack.i.b16 %v938_v17, %v938_v17  ;;  %v1779_v7 = vsel %vm102_vm0, %v1736_v62, 0.0  ;;  %v865_v13 = vrot.slane %v4767_v30, %v4422_v4  ;;  %v882_v2 = vcombine.high %v872_v39, %v872_v39  ;;  %v672_v17 = vld [vmem:[%s5426_s2 + $0x50] sm:$0xf] }
 0x2e4   : > { %v1087_v31 = vrot.slane %v1082_v0, %v4435_v61  ;;  %v941_v35 = vpack.c.bf16 %v872_v39, %v872_v39  ;;  %v1094_v33 = vrot.slane %v1089_v38, %v4435_v61  ;;  %v1110_v12 = vpack.i.b16 %v939_v36, %v939_v36  ;;  %v673_v0 = vld [vmem:[%s5426_s2 + $0x54] sm:$0xf]  ;;  %v4823_v38 = vpop.permute.xlu1 %1665 }
 0x2e5   : > { %v1188_v1 = vadd.bf16 %v1066_v37, %v668_v60  ;;  %v1739_v28 = vmul.f32 %v1658_v5, %v1451_v41  ;;  %v1781_v30 = vsel %vm102_vm0, %v1737_v3, 0.0  ;;  %v1101_v14 = vrot.slane %v1096_v34, %v4435_v61  ;;  %v674_v60 = vld [vmem:[%s5426_s2 + $0x58] sm:$0xf] }
 0x2e6   : > { %v1189_v32 = vadd.bf16 %v1073_v11, %v669_v48  ;;  %v942_v62 = vpack.c.bf16 %v880_v16, %v880_v16  ;;  %v1117_v39 = vpack.i.b16 %v940_v42, %v940_v42  ;;  %v1108_v36 = vrot.slane %v1103_v24, %v4435_v61 }
 0x2e7   : > { %v1190_v37 = vadd.bf16 %v1080_v10, %v670_v9  ;;  %v879_v41 = vrot.slane %v851_v29, %v4422_v4  ;;  %v881_v3 = vcombine.high %v865_v13, %v865_v13  ;;  %v943_v5 = vpack.c.bf16 %v882_v2, %v882_v2  ;;  %v675_v10 = vld [vmem:[%s5426_s2 + $0x5c] sm:$0xf] }
 0x2e8   : > { %v1191_v11 = vadd.bf16 %v1087_v31, %v671_v43  ;;  %v1124_v34 = vpack.i.b16 %v941_v35, %v941_v35  ;;  %v1115_v16 = vrot.slane %v1110_v12, %v4435_v61  ;;  %v1192_v42 = vadd.bf16 %v1094_v33, %v672_v17  ;;  %v4835_v31 = vpop.permute.xlu0 %1669  ;;  %v676_v35 = vld [vmem:[%s5426_s2 + $0x60] sm:$0xf] }
 0x2e9   : > { %3922 = vtanh.bf16 %v1188_v1  ;;  %v944_v48 = vpack.c.bf16 %v865_v13, %v865_v13  ;;  %v1193_v24 = vadd.bf16 %v1101_v14, %v673_v0  ;;  %v1778_v29 = vadd.f32 %v1777_v40, %v4784_v63  ;;  %v1674_v63 = vpop.permute.xlu1 %1673  ;;  %v677_v14 = vld [vmem:[%s5426_s2 + $0x64] sm:$0xf] }
 0x2ea   : > { %3924 = vtanh.bf16 %v1189_v32  ;;  %v1122_v2 = vrot.slane %v1117_v39, %v4435_v61  ;;  %v1131_v9 = vpack.i.b16 %v942_v62, %v942_v62  ;;  %v1194_v18 = vadd.bf16 %v1108_v36, %v674_v60 }
 0x2eb   : > { %3926 = vtanh.bf16 %v1190_v37  ;;  %v883_v13 = vcombine.high %v879_v41, %v879_v41  ;;  %v945_v43 = vpack.c.bf16 %v879_v41, %v879_v41  ;;  %v1780_v33 = vadd.f32 %v1779_v7, %v1778_v29  ;;  %v678_v7 = vld [vmem:[%s5426_s2 + $0x68] sm:$0xf] }
 0x2ec   : > { %3928 = vtanh.bf16 %v1191_v11  ;;  %v1129_v12 = vrot.slane %v1124_v34, %v4435_v61  ;;  %v1138_v1 = vpack.i.b16 %v943_v5, %v943_v5  ;;  %v1195_v17 = vadd.bf16 %v1115_v16, %v675_v10  ;;  %v1678_v11 = vpop.permute.xlu0 %1677 }
 0x2ed   : > { %3930 = vtanh.bf16 %v1192_v42  ;;  %v1783_v40 = vsel %vm102_vm0, %v1738_v15, 0.0  ;;  %v946_v32 = vpack.c.bf16 %v881_v3, %v881_v3  ;;  %v1782_v62 = vadd.f32 %v1781_v30, %v1780_v33  ;;  %v679_v30 = vld [vmem:[%s5426_s2 + $0x6c] sm:$0xf]  ;;  %v1682_v10 = vpop.permute.xlu1 %1681 }
 0x2ee   : > { %3932 = vtanh.bf16 %v1193_v24  ;;  %v1136_v39 = vrot.slane %v1131_v9, %v4435_v61  ;;  %v1145_v0 = vpack.i.b16 %v944_v48, %v944_v48  ;;  %v1196_v36 = vadd.bf16 %v1122_v2, %v676_v35  ;;  %v680_v24 = vld [vmem:[%s5426_s2 + $0x70] sm:$0xf]  ;;  %v681_v9 = vld [vmem:[%s5426_s2 + $0x74] sm:$0xf] }
 0x2ef   : > { %3934 = vtanh.bf16 %v1194_v18  ;;  %v947_v37 = vpack.c.bf16 %v883_v13, %v883_v13  ;;  %v1152_v41 = vpack.i.b16 %v945_v43, %v945_v43  ;;  %v1784_v5 = vadd.f32 %v1783_v40, %v1782_v62 }
 0x2f0   : > { %v1143_v15 = vrot.slane %v1138_v1, %v4435_v61  ;;  %v1197_v60 = vadd.bf16 %v1129_v12, %v677_v14  ;;  %3936 = vtanh.bf16 %v1195_v17  ;;  %v1785_v3 = vsel %vm102_vm0, %v1739_v28, 0.0  ;;  %v682_v17 = vld [vmem:[%s5426_s2 + $0x78] sm:$0xf] }
 0x2f1   : > { %v1159_v34 = vpack.i.b16 %v946_v32, %v946_v32  ;;  %v1786_v18 = vadd.f32 %v1785_v3, %v1784_v5  ;;  %v1150_v16 = vrot.slane %v1145_v0, %v4435_v61  ;;  %v1198_v42 = vadd.bf16 %v1136_v39, %v678_v7  ;;  %v1686_v39 = vpop.permute.xlu0 %1685  ;;  %v683_v5 = vld [vmem:[%s5426_s2 + $0x7c] sm:$0xf] }
 0x2f2   : > { %3938 = vtanh.bf16 %v1196_v36  ;;  %v1157_v29 = vrot.slane %v1152_v41, %v4435_v61  ;;  %v1166_v28 = vpack.i.b16 %v947_v37, %v947_v37  ;;  %v1199_v35 = vadd.bf16 %v1143_v15, %v679_v30  ;;  %v1690_v30 = vpop.permute.xlu1 %1689 }
 0x2f3   : > { %3940 = vtanh.bf16 %v1197_v60  ;;  %v1164_v33 = vrot.slane %v1159_v34, %v4435_v61  ;;  %v1200_v40 = vadd.bf16 %v1150_v16, %v680_v24 }
 0x2f4   : > { %v3923_v48 = vpop.eup %3922  ;;  %3942 = vtanh.bf16 %v1198_v42  ;;  %v1171_v0 = vrot.slane %v1166_v28, %v4435_v61  ;;  %v1201_v36 = vadd.bf16 %v1157_v29, %v681_v9 }
 0x2f5   : > { %v3925_v2 = vpop.eup %3924  ;;  %v1452_v13 = vunpack.c.l.bf16 %v3923_v48  ;;  %3944 = vtanh.bf16 %v1199_v35  ;;  %v1202_v34 = vadd.bf16 %v1164_v33, %v682_v17 }
 0x2f6   : > { %v3927_v43 = vpop.eup %3926  ;;  %v1453_v12 = vunpack.c.l.bf16 %v3925_v2  ;;  %3946 = vtanh.bf16 %v1200_v40  ;;  %v1203_v29 = vadd.bf16 %v1171_v0, %v683_v5 }
 0x2f7   : > { %v3929_v1 = vpop.eup %3928  ;;  %v1454_v14 = vunpack.c.l.bf16 %v3927_v43  ;;  %v1740_v32 = vmul.f32 %v4812_v6, %v1452_v13  ;;  %3948 = vtanh.bf16 %v1201_v36  ;;  %v1694_v13 = vpop.permute.xlu0 %1693 }
 0x2f8   : > { %v3931_v62 = vpop.eup %3930  ;;  %v1455_v7 = vunpack.c.l.bf16 %v3929_v1  ;;  %v1741_v37 = vmul.f32 %v4823_v38, %v1453_v12  ;;  %3950 = vtanh.bf16 %v1202_v34 }
 0x2f9   : > { %v3933_v41 = vpop.eup %3932  ;;  %v1456_v15 = vunpack.c.l.bf16 %v3931_v62  ;;  %v1742_v60 = vmul.f32 %v4835_v31, %v1454_v14  ;;  %v1787_v3 = vsel %vm102_vm0, %v1740_v32, 0.0  ;;  %3952 = vtanh.bf16 %v1203_v29 }
 0x2fa   : > { %v3935_v6 = vpop.eup %3934  ;;  %v1788_v16 = vadd.f32 %v1787_v3, %v1786_v18  ;;  %v1457_v42 = vunpack.c.l.bf16 %v3933_v41  ;;  %v1743_v48 = vmul.f32 %v1674_v63, %v1455_v7  ;;  %v1789_v38 = vsel %vm102_vm0, %v1741_v37, 0.0  ;;  %v1698_v63 = vpop.permute.xlu1 %1697 }
 0x2fb   : > { %v3937_v24 = vpop.eup %3936  ;;  %v1458_v2 = vunpack.c.l.bf16 %v3935_v6  ;;  %v1744_v9 = vmul.f32 %v1678_v11, %v1456_v15  ;;  %v1791_v35 = vsel %vm102_vm0, %v1742_v60, 0.0  ;;  %v1702_v41 = vpop.permute.xlu0 %1701 }
 0x2fc   : > { %v1790_v28 = vadd.f32 %v1789_v38, %v1788_v16  ;;  %v1459_v12 = vunpack.c.l.bf16 %v3937_v24  ;;  %v1745_v33 = vmul.f32 %v1682_v10, %v1457_v42  ;;  %v1793_v18 = vsel %vm102_vm0, %v1743_v48, 0.0 }
 0x2fd   : > { %v3939_v31 = vpop.eup %3938  ;;  %v1746_v14 = vmul.f32 %v1686_v39, %v1458_v2  ;;  %v1795_v32 = vsel %vm102_vm0, %v1744_v9, 0.0 }
 0x2fe   : > { %v1792_v43 = vadd.f32 %v1791_v35, %v1790_v28  ;;  %v3941_v1 = vpop.eup %3940  ;;  %v1460_v40 = vunpack.c.l.bf16 %v3939_v31  ;;  %v1747_v36 = vmul.f32 %v1690_v30, %v1459_v12  ;;  %v1797_v7 = vsel %vm102_vm0, %v1745_v33, 0.0  ;;  %v1706_v6 = vpop.permute.xlu1 %1705 }
 0x2ff   : > { %v3943_v62 = vpop.eup %3942  ;;  %v1461_v0 = vunpack.c.l.bf16 %v3941_v1  ;;  %v1799_v60 = vsel %vm102_vm0, %v1746_v14, 0.0  ;;  %v1710_v2 = vpop.permute.xlu0 %1709 }
 0x300   : > { %v1794_v17 = vadd.f32 %v1793_v18, %v1792_v43  ;;  %v3945_v37 = vpop.eup %3944  ;;  %v1462_v10 = vunpack.c.l.bf16 %v3943_v62  ;;  %v1748_v15 = vmul.f32 %v1694_v13, %v1460_v40  ;;  %v1801_v42 = vsel %vm102_vm0, %v1747_v36, 0.0 }
 0x301   : > { %v3947_v3 = vpop.eup %3946  ;;  %v1463_v16 = vunpack.c.l.bf16 %v3945_v37  ;;  %v1749_v39 = vmul.f32 %v1698_v63, %v1461_v0 }
 0x302   : > { %v1796_v11 = vadd.f32 %v1795_v32, %v1794_v17  ;;  %v3949_v48 = vpop.eup %3948  ;;  %v1464_v24 = vunpack.c.l.bf16 %v3947_v3  ;;  %v1750_v30 = vmul.f32 %v1702_v41, %v1462_v10  ;;  %v1803_v29 = vsel %vm102_vm0, %v1748_v15, 0.0  ;;  %v1714_v12 = vpop.permute.xlu1 %1713 }
 0x303   : > { %v3951_v28 = vpop.eup %3950  ;;  %v1465_v35 = vunpack.c.l.bf16 %v3949_v48  ;;  %v1751_v31 = vmul.f32 %v1706_v6, %v1463_v16  ;;  %v1805_v13 = vsel %vm102_vm0, %v1749_v39, 0.0  ;;  %v1718_v62 = vpop.permute.xlu0 %1717 }
 0x304   : > { %v1798_v5 = vadd.f32 %v1797_v7, %v1796_v11  ;;  %v3953_v43 = vpop.eup %3952  ;;  %v1466_v18 = vunpack.c.l.bf16 %v3951_v28  ;;  %v1752_v1 = vmul.f32 %v1710_v2, %v1464_v24  ;;  %v1807_v63 = vsel %vm102_vm0, %v1750_v30, 0.0 }
 0x305   : > { %v1467_v40 = vunpack.c.l.bf16 %v3953_v43  ;;  %v1753_v14 = vmul.f32 %v1714_v12, %v1465_v35  ;;  %v1809_v32 = vsel %vm102_vm0, %v1751_v31, 0.0 }
 0x306   : > { %v1800_v34 = vadd.f32 %v1799_v60, %v1798_v5  ;;  %v1754_v0 = vmul.f32 %v1718_v62, %v1466_v18  ;;  %v1811_v36 = vsel %vm102_vm0, %v1752_v1, 0.0  ;;  %v1722_v7 = vpop.permute.xlu1 %1721  ;;  %v3666_v18 = vld [vmem:[%s5425_s1 + $0x8] sm:$0xff]   ;;  %v3667_v1 = vld [vmem:[%s5425_s1 + $0x10] sm:$0xff]  }
 0x307   : > { %v1755_v41 = vmul.f32 %v1722_v7, %v1467_v40  ;;  %v1813_v5 = vsel %vm102_vm0, %v1753_v14, 0.0  ;;  %v4912_v62 = vld [vmem:[%s5425_s1 + $0x30] sm:$0xff]   ;;  %v3613_v7 = vunpack.c.h.bf16 %v3667_v1 }
 0x308   : > { %v1802_v38 = vadd.f32 %v1801_v42, %v1800_v34  ;;  %v1815_v15 = vsel %vm102_vm0, %v1754_v0, 0.0  ;;  %v3609_v0 = vunpack.c.h.bf16 %v3666_v18 }
 0x309   : > { %v1817_v3 = vsel %vm102_vm0, %v1755_v41, 0.0  ;;  %v4922_v41 = vld [vmem:[%s5425_s1 + $0x40] sm:$0xff]  }
 0x30a   : > { %v1804_v9 = vadd.f32 %v1803_v29, %v1802_v38 }
 0x30c   : > { %v1806_v33 = vadd.f32 %v1805_v13, %v1804_v9 }
 0x30e   : > { %v1808_v17 = vadd.f32 %v1807_v63, %v1806_v33  ;;  %v3603_v33 = vld [vmem:[%s5425_s1] sm:$0xff]   ;;  %v3668_v63 = vld [vmem:[%s5425_s1 + $0x18] sm:$0xff]  }
 0x30f   : > { %v3604_v40 = vunpack.c.l.bf16 %v3603_v33  ;;  %v3605_v14 = vunpack.c.h.bf16 %v3603_v33 }
 0x310   : > { %v1810_v11 = vadd.f32 %v1809_v32, %v1808_v17  ;;  %v3669_v17 = vld [vmem:[%s5425_s1 + $0x20] sm:$0xff]   ;;  %v3670_v32 = vld [vmem:[%s5425_s1 + $0x28] sm:$0xff]  }
 0x312   : > { %v1812_v37 = vadd.f32 %v1811_v36, %v1810_v11  ;;  %v3608_v11 = vunpack.c.l.bf16 %v3666_v18  ;;  %v3612_v36 = vunpack.c.l.bf16 %v3667_v1 }
 0x314   : > { %v1814_v10 = vadd.f32 %v1813_v5, %v1812_v37  ;;  %v4917_v37 = vld [vmem:[%s5425_s1 + $0x38] sm:$0xff]   ;;  %v3616_v5 = vunpack.c.l.bf16 %v3668_v63 }
 0x316   : > { %v1816_v60 = vadd.f32 %v1815_v15, %v1814_v10  ;;  %v3617_v10 = vunpack.c.h.bf16 %v3668_v63  ;;  %v3620_v15 = vunpack.c.l.bf16 %v3669_v17 }
 0x318   : > { %v1818_v6 = vadd.f32 %v1817_v3, %v1816_v60  ;;  %v3621_v60 = vunpack.c.h.bf16 %v3669_v17  ;;  %v4927_v3 = vld [vmem:[%s5425_s1 + $0x48] sm:$0xff]  }
 0x31a   : > { %v1819_v34 = vsel %vm102_vm0, %v1818_v6, -inf }
 0x31b   : > { %v1820_v16 = vrot.slane %v1819_v34, 4 }
 0x31d   : > { %v1821_v39 = vmax.f32 %v1819_v34, %v1820_v16  ;;  %v3624_v34 = vunpack.c.l.bf16 %v3670_v32  ;;  %v3625_v16 = vunpack.c.h.bf16 %v3670_v32  ;;  %v4972_v32 = vld [vmem:[%s5425_s1 + $0x78] sm:$0xff]  }
 0x31f   : > { %v1822_v42 = vrot.slane %v1821_v39, 2 }
 0x321   : > { %v1823_v48 = vmax.f32 %v1821_v39, %v1822_v42  ;;  %v3628_v39 = vunpack.c.l.bf16 %v4912_v62 }
 0x323   : > { %v1824_v38 = vrot.slane %v1823_v48, 1 }
 0x325   : > { %v1825_v24 = vmax.f32 %v1823_v48, %v1824_v38  ;;  %v4939_v48 = vld [vmem:[%s5425_s1 + $0x58] sm:$0xff]   ;;  %v4944_v38 = vld [vmem:[%s5425_s1 + $0x60] sm:$0xff]  }
 0x327   : > { %v1826_v30 = vsub.f32 %v1818_v6, %v1825_v24  ;;  %v4932_v6 = vld [vmem:[%s5425_s1 + $0x50] sm:$0xff]  }
 0x329   : > { %v1827_v29 = vmul.f32 1.442695, %v1826_v30 }
 0x32b   : > { %3954 = vpow2.f32 %v1827_v29 }
 0x335   : > { %v3955_v28 = vpop.eup %3954 }
 0x336   : > { %v1829_v2 = vsel %vm102_vm0, %v3955_v28, 0.0 }
 0x337   : > { %v1830_v9 = vrot.slane %v1829_v2, 4 }
 0x339   : > { %v1831_v35 = vadd.f32 %v1830_v9, %v1829_v2  ;;  %v4953_v9 = vld [vmem:[%s5425_s1 + $0x68] sm:$0xff]  }
 0x33b   : > { %v1832_v31 = vrot.slane %v1831_v35, 2 }
 0x33d   : > { %v1833_v13 = vadd.f32 %v1832_v31, %v1831_v35  ;;  %v4958_v35 = vld [vmem:[%s5425_s1 + $0x70] sm:$0xff]  }
 0x33f   : > { %v1834_v43 = vrot.slane %v1833_v13, 1 }
 0x341   : > { %v1835_v12 = vadd.f32 %v1834_v43, %v1833_v13 }
 0x343   : > { %3956 = vrcp.f32 %v1835_v12 }
 0x34d   : > { %v3957_v31 = vpop.eup %3956 }
 0x34e   : > { %v4964_v18 = vmul.f32 %v3957_v31, %v3955_v28 }
 0x350   : > { %v1902_v31 = vmul.f32 %v3604_v40, %v4964_v18  ;;  %v1903_v1 = vmul.f32 %v3605_v14, %v4964_v18  ;;  %v1904_v63 = vmul.f32 %v3608_v11, %v4964_v18  ;;  %v1905_v17 = vmul.f32 %v3609_v0, %v4964_v18 }
 0x351   : > { %v1906_v33 = vmul.f32 %v3612_v36, %v4964_v18  ;;  %v1907_v12 = vmul.f32 %v3613_v7, %v4964_v18  ;;  %v1908_v28 = vmul.f32 %v3616_v5, %v4964_v18  ;;  %v1909_v40 = vmul.f32 %v3617_v10, %v4964_v18 }
 0x352   : > { %v1910_v14 = vmul.f32 %v3620_v15, %v4964_v18  ;;  %v1911_v11 = vmul.f32 %v3621_v60, %v4964_v18  ;;  %v1912_v0 = vmul.f32 %v3624_v34, %v4964_v18  ;;  %v1913_v36 = vmul.f32 %v3625_v16, %v4964_v18 }
 0x353   : > { %v4994_v2 = vmul.f32 %v3628_v39, %v4964_v18  ;;  %v1934_v13 = vsel %vm102_vm0, %v1902_v31, 0.0  ;;  %v1941_v43 = vsel %vm102_vm0, %v1903_v1, 0.0  ;;  %v1948_v7 = vsel %vm102_vm0, %v1904_v63, 0.0 }
 0x354   : > { %v1955_v5 = vsel %vm102_vm0, %v1905_v17, 0.0  ;;  %v1935_v10 = vrot.slane %v1934_v13, 4  ;;  %v1942_v29 = vrot.slane %v1941_v43, 4  ;;  %v1949_v15 = vrot.slane %v1948_v7, 4 }
 0x355   : > { %v1956_v30 = vrot.slane %v1955_v5, 4  ;;  %v1962_v60 = vsel %vm102_vm0, %v1906_v33, 0.0  ;;  %v1969_v34 = vsel %vm102_vm0, %v1907_v12, 0.0  ;;  %v1976_v16 = vsel %vm102_vm0, %v1908_v28, 0.0 }
 0x356   : > { %v1983_v39 = vsel %vm102_vm0, %v1909_v40, 0.0  ;;  %v1936_v24 = vadd.f32 %v1935_v10, %v1934_v13  ;;  %v1943_v31 = vadd.f32 %v1942_v29, %v1941_v43  ;;  %v1950_v42 = vadd.f32 %v1949_v15, %v1948_v7 }
 0x357   : > { %v1957_v1 = vadd.f32 %v1956_v30, %v1955_v5  ;;  %v1963_v19 = vrot.slane %v1962_v60, 4  ;;  %v1970_v63 = vrot.slane %v1969_v34, 4  ;;  %v1977_v20 = vrot.slane %v1976_v16, 4 }
 0x358   : > { %v1984_v17 = vrot.slane %v1983_v39, 4  ;;  %v1937_v21 = vrot.slane %v1936_v24, 2  ;;  %v1944_v22 = vrot.slane %v1943_v31, 2  ;;  %v1951_v23 = vrot.slane %v1950_v42, 2 }
 0x359   : > { %v1958_v25 = vrot.slane %v1957_v1, 2  ;;  %v1964_v26 = vadd.f32 %v1963_v19, %v1962_v60  ;;  %v1971_v33 = vadd.f32 %v1970_v63, %v1969_v34  ;;  %v1978_v27 = vadd.f32 %v1977_v20, %v1976_v16 }
 0x35a   : > { %v1985_v12 = vadd.f32 %v1984_v17, %v1983_v39  ;;  %v1938_v44 = vadd.f32 %v1937_v21, %v1936_v24  ;;  %v1945_v28 = vadd.f32 %v1944_v22, %v1943_v31  ;;  %v1952_v45 = vadd.f32 %v1951_v23, %v1950_v42 }
 0x35b   : > { %v1959_v40 = vadd.f32 %v1958_v25, %v1957_v1  ;;  %v1965_v13 = vrot.slane %v1964_v26, 2  ;;  %v1972_v29 = vrot.slane %v1971_v33, 2  ;;  %v1979_v43 = vrot.slane %v1978_v27, 2 }
 0x35c   : > { %v1986_v30 = vrot.slane %v1985_v12, 2  ;;  %v1939_v7 = vrot.slane %v1938_v44, 1  ;;  %v1946_v5 = vrot.slane %v1945_v28, 1  ;;  %v1953_v10 = vrot.slane %v1952_v45, 1 }
 0x35d   : > { %v1960_v15 = vrot.slane %v1959_v40, 1  ;;  %v1966_v46 = vadd.f32 %v1965_v13, %v1964_v26  ;;  %v5004_v47 = vadd.f32 %v1972_v29, %v1971_v33  ;;  %v5006_v49 = vadd.f32 %v1979_v43, %v1978_v27 }
 0x35e   : > { %v5008_v19 = vadd.f32 %v1986_v30, %v1985_v12  ;;  %v5539_v20 = vunpack.c.h.bf16 %v4912_v62  ;;  %v5540_v22 = vunpack.c.l.bf16 %v4917_v37  ;;  %v5541_v25 = vunpack.c.h.bf16 %v4917_v37 }
 0x35f   : > { %v5019_v24 = vadd.f32 %v1939_v7, %v1938_v44  ;;  %v5021_v26 = vadd.f32 %v1946_v5, %v1945_v28  ;;  %v5023_v27 = vadd.f32 %v1953_v10, %v1952_v45  ;;  %v5025_v60 = vadd.f32 %v1960_v15, %v1959_v40 }
 0x360   : > { %v1915_v21 = vmul.f32 %v5539_v20, %v4964_v18  ;;  %v1916_v23 = vmul.f32 %v5540_v22, %v4964_v18  ;;  %v1917_v42 = vmul.f32 %v5541_v25, %v4964_v18  ;;  %v1967_v34 = vrot.slane %v1966_v46, 1 }
 0x361   : > { %v1990_v62 = vsel %vm102_vm0, %v1910_v14, 0.0  ;;  %v1997_v16 = vsel %vm102_vm0, %v1911_v11, 0.0  ;;  %v2004_v39 = vsel %vm102_vm0, %v1912_v0, 0.0  ;;  %v2011_v31 = vsel %vm102_vm0, %v1913_v36, 0.0 }
 0x362   : > { %v5031_v1 = vadd.f32 %v1967_v34, %v1966_v46  ;;  %v1974_v44 = vrot.slane %v5004_v47, 1  ;;  %v1981_v37 = vrot.slane %v5006_v49, 1  ;;  %v1988_v45 = vrot.slane %v5008_v19, 1 }
 0x363   : > { %v1991_v63 = vrot.slane %v1990_v62, 4  ;;  %v1998_v17 = vrot.slane %v1997_v16, 4  ;;  %v2005_v33 = vrot.slane %v2004_v39, 4  ;;  %v2012_v12 = vrot.slane %v2011_v31, 4 }
 0x364   : > { %v2018_v14 = vsel %vm102_vm0, %v4994_v2, 0.0  ;;  %v2025_v11 = vsel %vm102_vm0, %v1915_v21, 0.0  ;;  %v2032_v0 = vsel %vm102_vm0, %v1916_v23, 0.0  ;;  %v2039_v46 = vsel %vm102_vm0, %v1917_v42, 0.0 }
 0x365   : > { %v1992_v36 = vadd.f32 %v1991_v63, %v1990_v62  ;;  %v1999_v28 = vadd.f32 %v1998_v17, %v1997_v16  ;;  %v2006_v40 = vadd.f32 %v2005_v33, %v2004_v39  ;;  %v2013_v13 = vadd.f32 %v2012_v12, %v2011_v31 }
 0x366   : > { %v2019_v29 = vrot.slane %v2018_v14, 4  ;;  %v2026_v43 = vrot.slane %v2025_v11, 4  ;;  %v2033_v30 = vrot.slane %v2032_v0, 4  ;;  %v2040_v7 = vrot.slane %v2039_v46, 4 }
 0x367   : > { %v1993_v5 = vrot.slane %v1992_v36, 2  ;;  %v2000_v10 = vrot.slane %v1999_v28, 2  ;;  %v2007_v15 = vrot.slane %v2006_v40, 2  ;;  %v2014_v2 = vrot.slane %v2013_v13, 2 }
 0x368   : > { %v2020_v20 = vadd.f32 %v2019_v29, %v2018_v14  ;;  %v2027_v21 = vadd.f32 %v2026_v43, %v2025_v11  ;;  %v2034_v22 = vadd.f32 %v2033_v30, %v2032_v0  ;;  %v2041_v23 = vadd.f32 %v2040_v7, %v2039_v46 }
 0x369   : > { %v1994_v25 = vadd.f32 %v1993_v5, %v1992_v36  ;;  %v2001_v42 = vadd.f32 %v2000_v10, %v1999_v28  ;;  %v2008_v34 = vadd.f32 %v2007_v15, %v2006_v40  ;;  %v2015_v62 = vadd.f32 %v2014_v2, %v2013_v13 }
 0x36a   : > { %v2021_v16 = vrot.slane %v2020_v20, 2  ;;  %v2028_v39 = vrot.slane %v2027_v21, 2  ;;  %v2035_v31 = vrot.slane %v2034_v22, 2  ;;  %v2042_v63 = vrot.slane %v2041_v23, 2 }
 0x36b   : > { %v1995_v17 = vrot.slane %v1994_v25, 1  ;;  %v2002_v33 = vrot.slane %v2001_v42, 1  ;;  %v2009_v12 = vrot.slane %v2008_v34, 1  ;;  %v2016_v50 = vrot.slane %v2015_v62, 1 }
 0x36c   : > { %v2022_v14 = vadd.f32 %v2021_v16, %v2020_v20  ;;  %v2029_v11 = vadd.f32 %v2028_v39, %v2027_v21  ;;  %v2036_v0 = vadd.f32 %v2035_v31, %v2034_v22  ;;  %v2043_v46 = vadd.f32 %v2042_v63, %v2041_v23 }
 0x36d   : > { %v1975_v36 = vadd.f32 %v1974_v44, %v5004_v47  ;;  %v1996_v28 = vadd.f32 %v1995_v17, %v1994_v25  ;;  %v2003_v40 = vadd.f32 %v2002_v33, %v2001_v42  ;;  %v2010_v13 = vadd.f32 %v2009_v12, %v2008_v34 }
 0x36e   : > { %v2023_v29 = vrot.slane %v2022_v14, 1  ;;  %v2030_v43 = vrot.slane %v2029_v11, 1  ;;  %v2037_v30 = vrot.slane %v2036_v0, 1  ;;  %v2044_v7 = vrot.slane %v2043_v46, 1 }
 0x36f   : > { %v1982_v5 = vadd.f32 %v1981_v37, %v5006_v49  ;;  %v1989_v10 = vadd.f32 %v1988_v45, %v5008_v19  ;;  %v2191_v15 = vsel %vm2190_vm4, %v5021_v26, %v5019_v24  ;;  %v2204_v2 = vsel %vm2190_vm4, %v2003_v40, %v1996_v28 }
 0x370   : > { %v2017_v20 = vadd.f32 %v2016_v50, %v2015_v62  ;;  %v2024_v21 = vadd.f32 %v2023_v29, %v2022_v14  ;;  %v5542_v47 = vunpack.c.l.bf16 %v4922_v41  ;;  %v5543_v22 = vunpack.c.h.bf16 %v4922_v41 }
 0x371   : > { %v2031_v25 = vadd.f32 %v2030_v43, %v2029_v11  ;;  %v2038_v49 = vadd.f32 %v2037_v30, %v2036_v0  ;;  %v2193_v19 = vsel %vm2192_vm5, %v5023_v27, %v2191_v15  ;;  %v2205_v37 = vsel %vm2192_vm5, %v2010_v13, %v2204_v2 }
 0x372   : > { %v1918_v44 = vmul.f32 %v5542_v47, %v4964_v18  ;;  %v1919_v23 = vmul.f32 %v5543_v22, %v4964_v18  ;;  %v2045_v24 = vadd.f32 %v2044_v7, %v2043_v46  ;;  %v2195_v50 = vsel %vm2194_vm6, %v5025_v60, %v2193_v19 }
 0x373   : > { %v2206_v26 = vsel %vm2194_vm6, %v2017_v20, %v2205_v37  ;;  %v5544_v45 = vunpack.c.l.bf16 %v4927_v3  ;;  %v2197_v41 = vsel %vm2196_vm7, %v5031_v1, %v2195_v50  ;;  %v5545_v27 = vunpack.c.h.bf16 %v4927_v3 }
 0x374   : > { %v2207_v34 = vsel %vm2196_vm7, %v2024_v21, %v2206_v26  ;;  %v5546_v16 = vunpack.c.l.bf16 %v4932_v6  ;;  %v2199_v60 = vsel %vm2198_vm8, %v1975_v36, %v2197_v41  ;;  %v5547_v63 = vunpack.c.h.bf16 %v4932_v6 }
 0x375   : > { %v1920_v42 = vmul.f32 %v5544_v45, %v4964_v18  ;;  %v1921_v62 = vmul.f32 %v5545_v27, %v4964_v18  ;;  %v2208_v31 = vsel %vm2198_vm8, %v2031_v25, %v2207_v34  ;;  %v5548_v1 = vunpack.c.l.bf16 %v4939_v48 }
 0x376   : > { %v1922_v39 = vmul.f32 %v5546_v16, %v4964_v18  ;;  %v1923_v17 = vmul.f32 %v5547_v63, %v4964_v18  ;;  %v2201_v12 = vsel %vm2200_vm9, %v1982_v5, %v2199_v60  ;;  %v2209_v3 = vsel %vm2200_vm9, %v2038_v49, %v2208_v31 }
 0x377   : > { %v1924_v33 = vmul.f32 %v5548_v1, %v4964_v18  ;;  %v5549_v14 = vunpack.c.h.bf16 %v4939_v48  ;;  %v5550_v0 = vunpack.c.l.bf16 %v4944_v38  ;;  %v2203_v36 = vsel %vm2202_vm10, %v1989_v10, %v2201_v12 }
 0x378   : > { %v2210_v6 = vsel %vm2202_vm10, %v2045_v24, %v2209_v3  ;;  %v5551_v28 = vunpack.c.h.bf16 %v4944_v38  ;;  %v5552_v13 = vunpack.c.l.bf16 %v4953_v9  ;;  %v5553_v48 = vunpack.c.h.bf16 %v4953_v9 }
 0x379   : > { %v1925_v11 = vmul.f32 %v5549_v14, %v4964_v18  ;;  %v1926_v46 = vmul.f32 %v5550_v0, %v4964_v18  ;;  %v3813_v43 = vpack.c.bf16 %v2210_v6, %v2203_v36  ;;  %v5554_v7 = vunpack.c.l.bf16 %v4958_v35 }
 0x37a   : > { %v1927_v40 = vmul.f32 %v5551_v28, %v4964_v18  ;;  %v1928_v29 = vmul.f32 %v5552_v13, %v4964_v18  ;;  %v5099_v30 = vmul.f32 %v5553_v48, %v4964_v18  ;;  %v2046_v10 = vsel %vm102_vm0, %v1918_v44, 0.0 }
 0x37b   : > { %v5104_v5 = vmul.f32 %v5554_v7, %v4964_v18  ;;  %v2047_v15 = vrot.slane %v2046_v10, 4  ;;  %v2053_v38 = vsel %vm102_vm0, %v1919_v23, 0.0  ;;  %v2060_v2 = vsel %vm102_vm0, %v1920_v42, 0.0  ;;  %3814 = vmatprep.subr.bf16.mxu1 %v3813_v43 }
 0x37c   : > { %v2067_v20 = vsel %vm102_vm0, %v1921_v62, 0.0  ;;  %v2054_v21 = vrot.slane %v2053_v38, 4  ;;  %v2061_v47 = vrot.slane %v2060_v2, 4  ;;  %v2074_v22 = vsel %vm102_vm0, %v1922_v39, 0.0  ;;  %3816 = vmatpush3.bf16.msra.mxu1 %v3813_v43 }
 0x37d   : > { %v2068_v9 = vrot.slane %v2067_v20, 4  ;;  %v2048_v25 = vadd.f32 %v2047_v15, %v2046_v10  ;;  %v2075_v49 = vrot.slane %v2074_v22, 4  ;;  %v2081_v19 = vsel %vm102_vm0, %v1923_v17, 0.0 }
 0x37e   : > { %v2088_v44 = vsel %vm102_vm0, %v1924_v33, 0.0  ;;  %v2055_v37 = vadd.f32 %v2054_v21, %v2053_v38  ;;  %v2062_v24 = vadd.f32 %v2061_v47, %v2060_v2  ;;  %v2082_v50 = vrot.slane %v2081_v19, 4 }
 0x37f   : > { %v2069_v23 = vadd.f32 %v2068_v9, %v2067_v20  ;;  %v2049_v26 = vrot.slane %v2048_v25, 2  ;;  %v2076_v45 = vadd.f32 %v2075_v49, %v2074_v22  ;;  %v2089_v42 = vrot.slane %v2088_v44, 4 }
 0x380   : > { %v2095_v41 = vsel %vm102_vm0, %v1925_v11, 0.0  ;;  %v2056_v34 = vrot.slane %v2055_v37, 2  ;;  %v2063_v27 = vrot.slane %v2062_v24, 2  ;;  %v2083_v16 = vadd.f32 %v2082_v50, %v2081_v19 }
 0x381   : > { %v2070_v62 = vrot.slane %v2069_v23, 2  ;;  %v2050_v39 = vadd.f32 %v2049_v26, %v2048_v25  ;;  %v2077_v60 = vrot.slane %v2076_v45, 2  ;;  %v2090_v31 = vadd.f32 %v2089_v42, %v2088_v44 }
 0x382   : > { %v2096_v63 = vrot.slane %v2095_v41, 4  ;;  %v2057_v17 = vadd.f32 %v2056_v34, %v2055_v37  ;;  %v2064_v1 = vadd.f32 %v2063_v27, %v2062_v24  ;;  %v2084_v12 = vrot.slane %v2083_v16, 2 }
 0x383   : > { %v2071_v33 = vadd.f32 %v2070_v62, %v2069_v23  ;;  %v2051_v3 = vrot.slane %v2050_v39, 1  ;;  %v2078_v14 = vadd.f32 %v2077_v60, %v2076_v45  ;;  %v2091_v0 = vrot.slane %v2090_v31, 2 }
 0x384   : > { %v2097_v36 = vadd.f32 %v2096_v63, %v2095_v41  ;;  %v2058_v6 = vrot.slane %v2057_v17, 1  ;;  %v2065_v28 = vrot.slane %v2064_v1, 1  ;;  %v5114_v11 = vadd.f32 %v2084_v12, %v2083_v16 }
 0x385   : > { %v2072_v13 = vrot.slane %v2071_v33, 1  ;;  %v5555_v43 = vunpack.c.h.bf16 %v4958_v35  ;;  %v2079_v7 = vrot.slane %v2078_v14, 1  ;;  %v5119_v10 = vadd.f32 %v2091_v0, %v2090_v31 }
 0x386   : > { %v2098_v15 = vrot.slane %v2097_v36, 2  ;;  %v5556_v38 = vunpack.c.l.bf16 %v4972_v32  ;;  %v5557_v20 = vunpack.c.h.bf16 %v4972_v32  ;;  %v2052_v47 = vadd.f32 %v2051_v3, %v2050_v39 }
 0x387   : > { %v1931_v48 = vmul.f32 %v5555_v43, %v4964_v18  ;;  %v2059_v9 = vadd.f32 %v2058_v6, %v2057_v17  ;;  %v2066_v22 = vadd.f32 %v2065_v28, %v2064_v1  ;;  %v5127_v25 = vadd.f32 %v2072_v13, %v2071_v33 }
 0x388   : > { %v1932_v2 = vmul.f32 %v5556_v38, %v4964_v18  ;;  %v1933_v21 = vmul.f32 %v5557_v20, %v4964_v18  ;;  %v5129_v49 = vadd.f32 %v2098_v15, %v2097_v36  ;;  %v2102_v35 = vsel %vm102_vm0, %v1926_v46, 0.0 }
 0x389   : > { %v2086_v19 = vrot.slane %v5114_v11, 1  ;;  %v2103_v44 = vrot.slane %v2102_v35, 4  ;;  %v2109_v37 = vsel %vm102_vm0, %v1927_v40, 0.0  ;;  %v2116_v24 = vsel %vm102_vm0, %v1928_v29, 0.0 }
 0x38a   : > { %v2080_v23 = vadd.f32 %v2079_v7, %v2078_v14  ;;  %v2093_v32 = vrot.slane %v5119_v10, 1  ;;  %v2110_v18 = vrot.slane %v2109_v37, 4  ;;  %v2117_v50 = vrot.slane %v2116_v24, 4 }
 0x38b   : > { %v2104_v26 = vadd.f32 %v2103_v44, %v2102_v35  ;;  %v2123_v45 = vsel %vm102_vm0, %v5099_v30, 0.0  ;;  %v2130_v42 = vsel %vm102_vm0, %v5104_v5, 0.0  ;;  %v2137_v46 = vsel %vm102_vm0, %v1931_v48, 0.0 }
 0x38c   : > { %v2100_v41 = vrot.slane %v5129_v49, 1  ;;  %v2111_v34 = vadd.f32 %v2110_v18, %v2109_v37  ;;  %v2118_v40 = vadd.f32 %v2117_v50, %v2116_v24  ;;  %v2124_v27 = vrot.slane %v2123_v45, 4 }
 0x38d   : > { %v2105_v29 = vrot.slane %v2104_v26, 2  ;;  %v2131_v62 = vrot.slane %v2130_v42, 4  ;;  %v2138_v16 = vrot.slane %v2137_v46, 4  ;;  %v2144_v39 = vsel %vm102_vm0, %v1932_v2, 0.0 }
 0x38e   : > { %v2112_v60 = vrot.slane %v2111_v34, 2  ;;  %v2119_v31 = vrot.slane %v2118_v40, 2  ;;  %v2125_v63 = vadd.f32 %v2124_v27, %v2123_v45  ;;  %v2145_v17 = vrot.slane %v2144_v39, 4 }
 0x38f   : > { %v2106_v30 = vadd.f32 %v2105_v29, %v2104_v26  ;;  %v2132_v1 = vadd.f32 %v2131_v62, %v2130_v42  ;;  %v2139_v33 = vadd.f32 %v2138_v16, %v2137_v46  ;;  %v2151_v5 = vsel %vm102_vm0, %v1933_v21, 0.0 }
 0x390   : > { %v2113_v12 = vadd.f32 %v2112_v60, %v2111_v34  ;;  %v2120_v3 = vadd.f32 %v2119_v31, %v2118_v40  ;;  %v2126_v14 = vrot.slane %v2125_v63, 2  ;;  %v2146_v0 = vadd.f32 %v2145_v17, %v2144_v39 }
 0x391   : > { %v2107_v36 = vrot.slane %v2106_v30, 1  ;;  %v2133_v6 = vrot.slane %v2132_v1, 2  ;;  %v2140_v28 = vrot.slane %v2139_v33, 2  ;;  %v2152_v13 = vrot.slane %v2151_v5, 4 }
 0x392   : > { %v2114_v43 = vrot.slane %v2113_v12, 1  ;;  %v2121_v48 = vrot.slane %v2120_v3, 1  ;;  %v2127_v7 = vadd.f32 %v2126_v14, %v2125_v63  ;;  %v2147_v15 = vrot.slane %v2146_v0, 2 }
 0x393   : > { %v2108_v38 = vadd.f32 %v2107_v36, %v2106_v30  ;;  %v2134_v2 = vadd.f32 %v2133_v6, %v2132_v1  ;;  %v2141_v20 = vadd.f32 %v2140_v28, %v2139_v33  ;;  %v2153_v35 = vadd.f32 %v2152_v13, %v2151_v5 }
 0x394   : > { %v2115_v44 = vadd.f32 %v2114_v43, %v2113_v12  ;;  %v2122_v37 = vadd.f32 %v2121_v48, %v2120_v3  ;;  %v2128_v24 = vrot.slane %v2127_v7, 1  ;;  %v2148_v21 = vadd.f32 %v2147_v15, %v2146_v0 }
 0x395   : > { %v2135_v18 = vrot.slane %v2134_v2, 1  ;;  %v2142_v50 = vrot.slane %v2141_v20, 1  ;;  %v2154_v26 = vrot.slane %v2153_v35, 2  ;;  %v2211_v45 = vsel %vm2190_vm4, %v2059_v9, %v2052_v47 }
 0x396   : > { %v2087_v42 = vadd.f32 %v2086_v19, %v5114_v11  ;;  %v2149_v46 = vrot.slane %v2148_v21, 1  ;;  %v2212_v34 = vsel %vm2192_vm5, %v2066_v22, %v2211_v45  ;;  %v2218_v40 = vsel %vm2190_vm4, %v2115_v44, %v2108_v38 }
 0x397   : > { %v2094_v27 = vadd.f32 %v2093_v32, %v5119_v10  ;;  %v2129_v29 = vadd.f32 %v2128_v24, %v2127_v7  ;;  %v2155_v62 = vadd.f32 %v2154_v26, %v2153_v35  ;;  %v2213_v16 = vsel %vm2194_vm6, %v5127_v25, %v2212_v34 }
 0x398   : > { %v2101_v39 = vadd.f32 %v2100_v41, %v5129_v49  ;;  %v2136_v60 = vadd.f32 %v2135_v18, %v2134_v2  ;;  %v2214_v31 = vsel %vm2196_vm7, %v2080_v23, %v2213_v16  ;;  %v2219_v47 = vsel %vm2192_vm5, %v2122_v37, %v2218_v40 }
 0x399   : > { %v2143_v11 = vadd.f32 %v2142_v50, %v2141_v20  ;;  %v2156_v9 = vrot.slane %v2155_v62, 1  ;;  %v2215_v22 = vsel %vm2198_vm8, %v2087_v42, %v2214_v31  ;;  %v2220_v19 = vsel %vm2194_vm6, %v2129_v29, %v2219_v47 }
 0x39a   : > { %v2150_v63 = vadd.f32 %v2149_v46, %v2148_v21  ;;  %v2216_v10 = vsel %vm2200_vm9, %v2094_v27, %v2215_v22  ;;  %v2221_v32 = vsel %vm2196_vm7, %v2136_v60, %v2220_v19  ;;  %v2326_v19 = vld [vmem:[%s5427_s3] sm:$0xf] }
 0x39b   : > { %v2157_v17 = vadd.f32 %v2156_v9, %v2155_v62  ;;  %v2217_v25 = vsel %vm2202_vm10, %v2101_v39, %v2216_v10  ;;  %v2222_v49 = vsel %vm2198_vm8, %v2143_v11, %v2221_v32 }
 0x39c   : > { %v2223_v23 = vsel %vm2200_vm9, %v2150_v63, %v2222_v49  ;;  %v2327_v63 = vld [vmem:[%s5427_s3 + $0x4] sm:$0xf]  ;;  %v2328_v49 = vld [vmem:[%s5427_s3 + $0x8] sm:$0xf] }
 0x39d   : > { %v2224_v41 = vsel %vm2202_vm10, %v2157_v17, %v2223_v23  ;;  %v2329_v23 = vld [vmem:[%s5427_s3 + $0xc] sm:$0xf] }
 0x39e   : > { %v3817_v30 = vpack.c.bf16 %v2224_v41, %v2217_v25 }
 0x3a0   : > { %3818 = vmatprep.subr.bf16.mxu1 %v3817_v30 }
 0x3a1   : > { %3820 = vmatpush3.bf16.msra.mxu1 %v3817_v30 }
 0x3a4   : > { %3784 = vmatmul.mubr.msk.f32.vlgmr.msra.gmra.mrb[8].mxu1 %vm554_vm3, %v4365_v53 }
 0x3a5   : > { %3786 = vmatprep.mubr.msk.f32.mxu1 %vm554_vm3, %v4370_v54 }
 0x3a8   : > { %3787 = vmatmul.mubr.msk.f32.gmra.mrb[10].mxu1 %vm554_vm3, %v4375_v55 }
 0x477   : > { %v3785_v1 = vpop.f32.mrb[8].mxu1 }
 0x478   : > { %v2307_v33 = vpop.f32.mrb[9].mxu1  ;;  %v2411_v14 = vcombine.high %v3785_v1, %v3785_v1  ;;  %v2418_v6 = vrot.slane %v3785_v1, %v4422_v4 }
 0x479   : > { %v2362_v5 = vcombine.high %v2307_v33, %v2307_v33  ;;  %v2369_v12 = vrot.slane %v2307_v33, %v4422_v4  ;;  %v5202_v33 = vpop.permute.xlu0 %3271 }
 0x47a   : > { %v2425_v13 = vrot.slane %v2411_v14, %v4422_v4  ;;  %v2426_v48 = vcombine.high %v2418_v6, %v2418_v6  ;;  %v2434_v7 = vrot.slane %v2418_v6, %v4422_v4 }
 0x47b   : > { %v5169_v3 = vpop.f32.mrb[10].mxu1  ;;  %v2376_v0 = vrot.slane %v2362_v5, %v4422_v4  ;;  %v2377_v28 = vcombine.high %v2369_v12, %v2369_v12  ;;  %v2385_v15 = vrot.slane %v2369_v12, %v4422_v4  ;;  %v2330_v5 = vld [vmem:[%s5427_s3 + $0x10] sm:$0xf] }
 0x47c   : > { %v5172_v36 = vpop.f32.mrb[11].mxu1  ;;  %v2427_v20 = vcombine.high %v2425_v13, %v2425_v13  ;;  %v2448_v44 = vrot.slane %v2426_v48, %v4422_v4  ;;  %v5183_v37 = vrot.slane %v2425_v13, %v4422_v4  ;;  %v2456_v24 = vcombine.high %v2434_v7, %v2434_v7 }
 0x47d   : > { %v2378_v43 = vcombine.high %v2376_v0, %v2376_v0  ;;  %v2392_v38 = vrot.slane %v2376_v0, %v4422_v4  ;;  %v2399_v2 = vrot.slane %v2377_v28, %v4422_v4  ;;  %v2407_v21 = vcombine.high %v2385_v15, %v2385_v15  ;;  %v2331_v28 = vld [vmem:[%s5427_s3 + $0x14] sm:$0xf] }
 0x47e   : > { %v5186_v26 = vrot.slane %v2427_v20, %v4422_v4  ;;  %v2598_v45 = vpack.c.bf16 %v2434_v7, %v2434_v7  ;;  %v2590_v46 = vpack.c.bf16 %v2385_v15, %v2385_v15  ;;  %v2599_v34 = vpack.c.bf16 %v2448_v44, %v2448_v44  ;;  %v5214_v15 = vpop.permute.xlu1 %3275 }
 0x47f   : > { %v2406_v35 = vrot.slane %v2378_v43, %v4422_v4  ;;  %v2408_v18 = vcombine.high %v2392_v38, %v2392_v38  ;;  %v2409_v50 = vcombine.high %v2399_v2, %v2399_v2  ;;  %v2591_v40 = vpack.c.bf16 %v2399_v2, %v2399_v2  ;;  %v2332_v2 = vld [vmem:[%s5427_s3 + $0x18] sm:$0xf] }
 0x480   : > { %v2592_v27 = vpack.c.bf16 %v2407_v21, %v2407_v21  ;;  %v2458_v62 = vcombine.high %v2448_v44, %v2448_v44  ;;  %v2594_v16 = vpack.c.bf16 %v2392_v38, %v2392_v38  ;;  %v2600_v31 = vpack.c.bf16 %v2456_v24, %v2456_v24  ;;  %v2333_v21 = vld [vmem:[%s5427_s3 + $0x1c] sm:$0xf] }
 0x481   : > { %v2410_v42 = vcombine.high %v2406_v35, %v2406_v35  ;;  %v2593_v29 = vpack.c.bf16 %v2409_v50, %v2409_v50  ;;  %v2595_v39 = vpack.c.bf16 %v2406_v35, %v2406_v35  ;;  %v2596_v60 = vpack.c.bf16 %v2408_v18, %v2408_v18 }
 0x482   : > { %v2623_v11 = vpack.i.b16 %v2590_v46, %v2590_v46  ;;  %v2630_v9 = vpack.i.b16 %v2591_v40, %v2591_v40  ;;  %v2679_v22 = vpack.i.b16 %v2598_v45, %v2598_v45  ;;  %v2637_v10 = vpack.i.b16 %v2592_v27, %v2592_v27  ;;  %v2334_v45 = vld [vmem:[%s5427_s3 + $0x20] sm:$0xf] }
 0x483   : > { %v2597_v47 = vpack.c.bf16 %v2410_v42, %v2410_v42  ;;  %v2644_v32 = vpack.i.b16 %v2593_v29, %v2593_v29  ;;  %v2651_v17 = vpack.i.b16 %v2594_v16, %v2594_v16  ;;  %v2686_v25 = vpack.i.b16 %v2599_v34, %v2599_v34  ;;  %v3280_v29 = vpop.permute.xlu0 %3279 }
 0x484   : > { %v2628_v41 = vrot.slane %v2623_v11, %v4435_v61  ;;  %v2635_v30 = vrot.slane %v2630_v9, %v4435_v61  ;;  %v2658_v1 = vpack.i.b16 %v2595_v39, %v2595_v39  ;;  %v2642_v12 = vrot.slane %v2637_v10, %v4435_v61  ;;  %v3284_v9 = vpop.permute.xlu1 %3283 }
 0x485   : > { %v2649_v14 = vrot.slane %v2644_v32, %v4435_v61  ;;  %v2656_v0 = vrot.slane %v2651_v17, %v4435_v61  ;;  %v2665_v6 = vpack.i.b16 %v2596_v60, %v2596_v60  ;;  %v2672_v43 = vpack.i.b16 %v2597_v47, %v2597_v47 }
 0x486   : > { %v2663_v13 = vrot.slane %v2658_v1, %v4435_v61  ;;  %v2846_v48 = vadd.bf16 %v2628_v41, %v2326_v19  ;;  %v2847_v7 = vadd.bf16 %v2635_v30, %v2327_v63  ;;  %v2601_v38 = vpack.c.bf16 %v2458_v62, %v2458_v62  ;;  %v2335_v62 = vld [vmem:[%s5427_s3 + $0x24] sm:$0xf]  ;;  %v2336_v19 = vld [vmem:[%s5427_s3 + $0x28] sm:$0xf] }
 0x487   : > { %v2670_v20 = vrot.slane %v2665_v6, %v4435_v61  ;;  %v2848_v35 = vadd.bf16 %v2642_v12, %v2328_v49  ;;  %v2849_v44 = vadd.bf16 %v2649_v14, %v2329_v23  ;;  %v2684_v24 = vrot.slane %v2679_v22, %v4435_v61  ;;  %v2337_v49 = vld [vmem:[%s5427_s3 + $0x2c] sm:$0xf] }
 0x488   : > { %v2677_v18 = vrot.slane %v2672_v43, %v4435_v61  ;;  %v2850_v50 = vadd.bf16 %v2656_v0, %v2330_v5  ;;  %3958 = vtanh.bf16 %v2846_v48  ;;  %v2693_v42 = vpack.i.b16 %v2600_v31, %v2600_v31  ;;  %v3292_v1 = vpop.permute.xlu1 %3291  ;;  %v2338_v0 = vld [vmem:[%s5427_s3 + $0x30] sm:$0xf]  ;;  %v2339_v48 = vld [vmem:[%s5427_s3 + $0x34] sm:$0xf] }
 0x489   : > { %v2851_v46 = vadd.bf16 %v2663_v13, %v2331_v28  ;;  %3960 = vtanh.bf16 %v2847_v7  ;;  %v2457_v34 = vcombine.high %v5183_v37, %v5183_v37  ;;  %v2691_v40 = vrot.slane %v2686_v25, %v4435_v61  ;;  %v3288_v25 = vpop.permute.xlu0 %3287 }
 0x48a   : > { %v2852_v27 = vadd.bf16 %v2670_v20, %v2332_v2  ;;  %3962 = vtanh.bf16 %v2848_v35  ;;  %v2459_v16 = vcombine.high %v5186_v26, %v5186_v26  ;;  %v2602_v39 = vpack.c.bf16 %v5183_v37, %v5183_v37 }
 0x48b   : > { %v2853_v60 = vadd.bf16 %v2677_v18, %v2333_v21  ;;  %3964 = vtanh.bf16 %v2849_v44  ;;  %v2603_v31 = vpack.c.bf16 %v5186_v26, %v5186_v26  ;;  %v2700_v47 = vpack.i.b16 %v2601_v38, %v2601_v38  ;;  %v2340_v21 = vld [vmem:[%s5427_s3 + $0x38] sm:$0xf] }
 0x48c   : > { %v2854_v11 = vadd.bf16 %v2684_v24, %v2334_v45  ;;  %3966 = vtanh.bf16 %v2850_v50  ;;  %v2698_v22 = vrot.slane %v2693_v42, %v4435_v61  ;;  %v2604_v63 = vpack.c.bf16 %v2457_v34, %v2457_v34 }
 0x48d   : > { %3968 = vtanh.bf16 %v2851_v46  ;;  %v2855_v10 = vadd.bf16 %v2691_v40, %v2335_v62  ;;  %v2605_v37 = vpack.c.bf16 %v2459_v16, %v2459_v16  ;;  %v2707_v32 = vpack.i.b16 %v2602_v39, %v2602_v39  ;;  %v3296_v24 = vpop.permute.xlu0 %3295  ;;  %v3300_v16 = vpop.permute.xlu1 %3299 }
 0x48e   : > { %3970 = vtanh.bf16 %v2852_v27  ;;  %v2705_v17 = vrot.slane %v2700_v47, %v4435_v61  ;;  %v2714_v26 = vpack.i.b16 %v2603_v31, %v2603_v31  ;;  %v2856_v23 = vadd.bf16 %v2698_v22, %v2336_v19 }
 0x48f   : > { %3972 = vtanh.bf16 %v2853_v60  ;;  %v2721_v41 = vpack.i.b16 %v2604_v63, %v2604_v63  ;;  %v2712_v5 = vrot.slane %v2707_v32, %v4435_v61  ;;  %v2728_v12 = vpack.i.b16 %v2605_v37, %v2605_v37 }
 0x490   : > { %3974 = vtanh.bf16 %v2854_v11  ;;  %v2719_v6 = vrot.slane %v2714_v26, %v4435_v61  ;;  %v2857_v28 = vadd.bf16 %v2705_v17, %v2337_v49 }
 0x491   : > { %3976 = vtanh.bf16 %v2855_v10  ;;  %v2726_v2 = vrot.slane %v2721_v41, %v4435_v61  ;;  %v2733_v18 = vrot.slane %v2728_v12, %v4435_v61  ;;  %v2858_v50 = vadd.bf16 %v2712_v5, %v2338_v0  ;;  %v3304_v26 = vpop.permute.xlu0 %3303  ;;  %v3308_v5 = vpop.permute.xlu1 %3307 }
 0x492   : > { %3978 = vtanh.bf16 %v2856_v23  ;;  %v2859_v34 = vadd.bf16 %v2719_v6, %v2339_v48 }
 0x493   : > { %v3959_v30 = vpop.eup %3958  ;;  %3980 = vtanh.bf16 %v2857_v28  ;;  %v2860_v22 = vadd.bf16 %v2726_v2, %v2340_v21 }
 0x494   : > { %v3961_v14 = vpop.eup %3960  ;;  %v3110_v13 = vunpack.c.l.bf16 %v3959_v30  ;;  %3982 = vtanh.bf16 %v2858_v50 }
 0x495   : > { %v3963_v43 = vpop.eup %3962  ;;  %v3111_v7 = vunpack.c.l.bf16 %v3961_v14  ;;  %3984 = vtanh.bf16 %v2859_v34  ;;  %v3316_v50 = vpop.permute.xlu1 %3315 }
 0x496   : > { %v3965_v38 = vpop.eup %3964  ;;  %v3112_v20 = vunpack.c.l.bf16 %v3963_v43  ;;  %v3398_v35 = vmul.f32 %v5202_v33, %v3110_v13  ;;  %v2341_v33 = vld [vmem:[%s5427_s3 + $0x3c] sm:$0xf]  ;;  %3986 = vtanh.bf16 %v2860_v22 }
 0x497   : > { %v3967_v44 = vpop.eup %3966  ;;  %v3113_v45 = vunpack.c.l.bf16 %v3965_v38  ;;  %v3399_v42 = vmul.f32 %v5214_v15, %v3111_v7  ;;  %v2861_v37 = vadd.bf16 %v2733_v18, %v2341_v33  ;;  %v3312_v38 = vpop.permute.xlu0 %3311  ;;  %v2516_v18 = vrot.slane %v5169_v3, %v4422_v4 }
 0x498   : > { %v3969_v46 = vpop.eup %3968  ;;  %v3114_v40 = vunpack.c.l.bf16 %v3967_v44  ;;  %v3400_v27 = vmul.f32 %v3280_v29, %v3112_v20  ;;  %v3430_v31 = vsel %vm102_vm0, %v3398_v35, 0.0  ;;  %v2460_v35 = vcombine.high %v5172_v36, %v5172_v36 }
 0x499   : > { %v3971_v62 = vpop.eup %3970  ;;  %v3115_v39 = vunpack.c.l.bf16 %v3969_v46  ;;  %v3401_v60 = vmul.f32 %v3284_v9, %v3113_v45  ;;  %v3431_v47 = vsel %vm102_vm0, %v3399_v42, 0.0  ;;  %3988 = vtanh.bf16 %v2861_v37 }
 0x49a   : > { %v3973_v11 = vpop.eup %3972  ;;  %v3432_v15 = vadd.f32 %v3431_v47, %v3430_v31  ;;  %v3116_v63 = vunpack.c.l.bf16 %v3971_v62  ;;  %v3402_v10 = vmul.f32 %v3288_v25, %v3114_v40  ;;  %v3433_v29 = vsel %vm102_vm0, %v3400_v27, 0.0 }
 0x49b   : > { %v3975_v19 = vpop.eup %3974  ;;  %v3117_v49 = vunpack.c.l.bf16 %v3973_v11  ;;  %v3403_v9 = vmul.f32 %v3292_v1, %v3115_v39  ;;  %v3435_v23 = vsel %vm102_vm0, %v3401_v60, 0.0  ;;  %v2509_v1 = vcombine.high %v5169_v3, %v5169_v3 }
 0x49c   : > { %v3434_v32 = vadd.f32 %v3433_v29, %v3432_v15  ;;  %v3977_v17 = vpop.eup %3976  ;;  %v3118_v41 = vunpack.c.l.bf16 %v3975_v19  ;;  %v3404_v12 = vmul.f32 %v3296_v24, %v3116_v63  ;;  %v3437_v14 = vsel %vm102_vm0, %v3402_v10, 0.0  ;;  %v3320_v19 = vpop.permute.xlu0 %3319 }
 0x49d   : > { %v3979_v0 = vpop.eup %3978  ;;  %v3119_v25 = vunpack.c.l.bf16 %v3977_v17  ;;  %v3405_v28 = vmul.f32 %v3300_v16, %v3117_v49  ;;  %v3439_v13 = vsel %vm102_vm0, %v3403_v9, 0.0  ;;  %v2467_v44 = vrot.slane %v5172_v36, %v4422_v4 }
 0x49e   : > { %v3436_v30 = vadd.f32 %v3435_v23, %v3434_v32  ;;  %v3406_v43 = vmul.f32 %v3304_v26, %v3118_v41  ;;  %v3981_v7 = vpop.eup %3980  ;;  %v3120_v2 = vunpack.c.l.bf16 %v3979_v0  ;;  %v3441_v20 = vsel %vm102_vm0, %v3404_v12, 0.0  ;;  %v3324_v23 = vpop.permute.xlu1 %3323 }
 0x49f   : > { %v3407_v24 = vmul.f32 %v3308_v5, %v3119_v25  ;;  %v3443_v45 = vsel %vm102_vm0, %v3405_v28, 0.0  ;;  %v2474_v42 = vrot.slane %v2460_v35, %v4422_v4  ;;  %v2475_v46 = vcombine.high %v2467_v44, %v2467_v44  ;;  %v3983_v40 = vpop.eup %3982 }
 0x4a0   : > { %v3438_v6 = vadd.f32 %v3437_v14, %v3436_v30  ;;  %v2483_v34 = vrot.slane %v2467_v44, %v4422_v4  ;;  %v3121_v27 = vunpack.c.l.bf16 %v3981_v7  ;;  %v3445_v62 = vsel %vm102_vm0, %v3406_v43, 0.0  ;;  %v3985_v31 = vpop.eup %3984  ;;  %v3328_v35 = vpop.permute.xlu0 %3327 }
 0x4a1   : > { %v2523_v36 = vrot.slane %v2509_v1, %v4422_v4  ;;  %v3408_v33 = vmul.f32 %v3312_v38, %v3120_v2  ;;  %v2476_v39 = vcombine.high %v2474_v42, %v2474_v42  ;;  %v2490_v60 = vrot.slane %v2474_v42, %v4422_v4  ;;  %v3987_v32 = vpop.eup %3986 }
 0x4a2   : > { %v3440_v48 = vadd.f32 %v3439_v13, %v3438_v6  ;;  %v2497_v3 = vrot.slane %v2475_v46, %v4422_v4  ;;  %v2524_v11 = vcombine.high %v2516_v18, %v2516_v18  ;;  %v2505_v22 = vcombine.high %v2483_v34, %v2483_v34 }
 0x4a3   : > { %v2606_v15 = vpack.c.bf16 %v2483_v34, %v2483_v34  ;;  %v3122_v63 = vunpack.c.l.bf16 %v3983_v40  ;;  %v3447_v10 = vsel %vm102_vm0, %v3407_v24, 0.0  ;;  %v2504_v29 = vrot.slane %v2476_v39, %v4422_v4 }
 0x4a4   : > { %v3442_v21 = vadd.f32 %v3441_v20, %v3440_v48  ;;  %v2507_v37 = vcombine.high %v2497_v3, %v2497_v3  ;;  %v2506_v26 = vcombine.high %v2490_v60, %v2490_v60  ;;  %v2607_v49 = vpack.c.bf16 %v2497_v3, %v2497_v3  ;;  %v5291_v14 = vpop.eup %3988  ;;  %v2343_v3 = vld [vmem:[%s5427_s3 + $0x44] sm:$0xf] }
 0x4a5   : > { %v2608_v9 = vpack.c.bf16 %v2505_v22, %v2505_v22  ;;  %v3123_v41 = vunpack.c.l.bf16 %v3985_v31  ;;  %v3409_v30 = vmul.f32 %v3316_v50, %v3121_v27  ;;  %v3449_v5 = vsel %vm102_vm0, %v3408_v33, 0.0 }
 0x4a6   : > { %v3444_v16 = vadd.f32 %v3443_v45, %v3442_v21  ;;  %v2609_v12 = vpack.c.bf16 %v2507_v37, %v2507_v37  ;;  %v2508_v25 = vcombine.high %v2504_v29, %v2504_v29  ;;  %v2610_v6 = vpack.c.bf16 %v2490_v60, %v2490_v60 }
 0x4a7   : > { %v2735_v28 = vpack.i.b16 %v2606_v15, %v2606_v15  ;;  %v3124_v13 = vunpack.c.l.bf16 %v3987_v32  ;;  %v2532_v43 = vrot.slane %v2516_v18, %v4422_v4  ;;  %v2611_v48 = vpack.c.bf16 %v2504_v29, %v2504_v29  ;;  %v3332_v18 = vpop.permute.xlu1 %3331 }
 0x4a8   : > { %v3446_v47 = vadd.f32 %v3445_v62, %v3444_v16  ;;  %v2742_v1 = vpack.i.b16 %v2607_v49, %v2607_v49  ;;  %v3410_v7 = vmul.f32 %v3320_v19, %v3122_v63  ;;  %v2525_v38 = vcombine.high %v2523_v36, %v2523_v36  ;;  %v2342_v62 = vld [vmem:[%s5427_s3 + $0x40] sm:$0xf]  ;;  %v2344_v19 = vld [vmem:[%s5427_s3 + $0x48] sm:$0xf]  ;;  %v2346_v49 = vld [vmem:[%s5427_s3 + $0x50] sm:$0xf] }
 0x4a9   : > { %v2612_v2 = vpack.c.bf16 %v2506_v26, %v2506_v26  ;;  %v2749_v20 = vpack.i.b16 %v2608_v9, %v2608_v9  ;;  %v3125_v44 = vunpack.c.l.bf16 %v5291_v14  ;;  %v3411_v24 = vmul.f32 %v3324_v23, %v3123_v41 }
 0x4aa   : > { %v3448_v17 = vadd.f32 %v3447_v10, %v3446_v47  ;;  %v2546_v21 = vrot.slane %v2524_v11, %v4422_v4  ;;  %v2756_v50 = vpack.i.b16 %v2609_v12, %v2609_v12  ;;  %v3451_v45 = vsel %vm102_vm0, %v3409_v30, 0.0  ;;  %v2345_v10 = vld [vmem:[%s5427_s3 + $0x4c] sm:$0xf] }
 0x4ab   : > { %v2613_v42 = vpack.c.bf16 %v2508_v25, %v2508_v25  ;;  %v2740_v46 = vrot.slane %v2735_v28, %v4435_v61  ;;  %v2763_v34 = vpack.i.b16 %v2610_v6, %v2610_v6  ;;  %v3412_v40 = vmul.f32 %v3328_v35, %v3124_v13  ;;  %v5328_v6 = vpop.permute.xlu1 %3339 }
 0x4ac   : > { %v3450_v0 = vadd.f32 %v3449_v5, %v3448_v17  ;;  %v2554_v27 = vcombine.high %v2532_v43, %v2532_v43  ;;  %v2747_v16 = vrot.slane %v2742_v1, %v4435_v61  ;;  %v2770_v33 = vpack.i.b16 %v2611_v48, %v2611_v48  ;;  %v5317_v17 = vpop.permute.xlu0 %3335  ;;  %v2347_v5 = vld [vmem:[%s5427_s3 + $0x54] sm:$0xf]  ;;  %v2348_v48 = vld [vmem:[%s5427_s3 + $0x58] sm:$0xf] }
 0x4ad   : > { %v2539_v39 = vrot.slane %v2523_v36, %v4422_v4  ;;  %v2614_v60 = vpack.c.bf16 %v2532_v43, %v2532_v43  ;;  %v2754_v31 = vrot.slane %v2749_v20, %v4435_v61  ;;  %v2777_v47 = vpack.i.b16 %v2612_v2, %v2612_v2 }
 0x4ae   : > { %v2553_v11 = vrot.slane %v2525_v38, %v4422_v4  ;;  %v2556_v22 = vcombine.high %v2546_v21, %v2546_v21  ;;  %v2615_v15 = vpack.c.bf16 %v2546_v21, %v2546_v21  ;;  %v2761_v63 = vrot.slane %v2756_v50, %v4435_v61 }
 0x4af   : > { %v3453_v36 = vsel %vm102_vm0, %v3410_v7, 0.0  ;;  %v2768_v29 = vrot.slane %v2763_v34, %v4435_v61  ;;  %v2784_v37 = vpack.i.b16 %v2613_v42, %v2613_v42  ;;  %v2862_v32 = vadd.bf16 %v2740_v46, %v2342_v62 }
 0x4b0   : > { %v3455_v4 = vsel %vm102_vm0, %v3411_v24, 0.0  ;;  %v2616_v26 = vpack.c.bf16 %v2554_v27, %v2554_v27  ;;  %v2775_v9 = vrot.slane %v2770_v33, %v4435_v61  ;;  %v2863_v23 = vadd.bf16 %v2747_v16, %v2343_v3  ;;  %v2349_v24 = vld [vmem:[%s5427_s3 + $0x5c] sm:$0xf]  ;;  %v5338_v34 = vpop.permute.xlu0 %3343  ;;  %v2350_v27 = vld [vmem:[%s5427_s3 + $0x60] sm:$0xf] }
 0x4b1   : > { %v2555_v41 = vcombine.high %v2539_v39, %v2539_v39  ;;  %v2791_v30 = vpack.i.b16 %v2614_v60, %v2614_v60  ;;  %v2782_v12 = vrot.slane %v2777_v47, %v4435_v61  ;;  %v2864_v25 = vadd.bf16 %v2754_v31, %v2344_v19  ;;  %v3348_v60 = vpop.permute.xlu1 %3347  ;;  %v2351_v31 = vld [vmem:[%s5427_s3 + $0x64] sm:$0xf] }
 0x4b2   : > { %v2557_v28 = vcombine.high %v2553_v11, %v2553_v11  ;;  %v2617_v13 = vpack.c.bf16 %v2556_v22, %v2556_v22  ;;  %v2798_v43 = vpack.i.b16 %v2615_v15, %v2615_v15  ;;  %v2865_v1 = vadd.bf16 %v2761_v63, %v2345_v10 }
 0x4b3   : > { %v2789_v7 = vrot.slane %v2784_v37, %v4435_v61  ;;  %v2866_v38 = vadd.bf16 %v2768_v29, %v2346_v49  ;;  %3990 = vtanh.bf16 %v2862_v32  ;;  %v3452_v2 = vadd.f32 %v3451_v45, %v3450_v0  ;;  %v2353_v37 = vld [vmem:[%s5427_s3 + $0x6c] sm:$0xf] }
 0x4b4   : > { %v2618_v20 = vpack.c.bf16 %v2539_v39, %v2539_v39  ;;  %v2805_v35 = vpack.i.b16 %v2616_v26, %v2616_v26  ;;  %v2867_v21 = vadd.bf16 %v2775_v9, %v2347_v5  ;;  %3992 = vtanh.bf16 %v2863_v23  ;;  %v3352_v29 = vpop.permute.xlu0 %3351  ;;  %v2354_v23 = vld [vmem:[%s5427_s3 + $0x70] sm:$0xf] }
 0x4b5   : > { %v2796_v50 = vrot.slane %v2791_v30, %v4435_v61  ;;  %v2868_v42 = vadd.bf16 %v2782_v12, %v2348_v48  ;;  %3994 = vtanh.bf16 %v2864_v25  ;;  %v3454_v46 = vadd.f32 %v3453_v36, %v3452_v2  ;;  %v3356_v9 = vpop.permute.xlu1 %3355  ;;  %v2355_v12 = vld [vmem:[%s5427_s3 + $0x74] sm:$0xf] }
 0x4b6   : > { %v2619_v0 = vpack.c.bf16 %v2553_v11, %v2553_v11  ;;  %v2803_v45 = vrot.slane %v2798_v43, %v4435_v61  ;;  %3996 = vtanh.bf16 %v2865_v1  ;;  %v3413_v62 = vmul.f32 %v3332_v18, %v3125_v44  ;;  %v2352_v44 = vld [vmem:[%s5427_s3 + $0x68] sm:$0xf] }
 0x4b7   : > { %v2812_v16 = vpack.i.b16 %v2617_v13, %v2617_v13  ;;  %v2869_v33 = vadd.bf16 %v2789_v7, %v2349_v24  ;;  %3998 = vtanh.bf16 %v2866_v38  ;;  %v3456_v39 = vadd.f32 %v3455_v4, %v3454_v46  ;;  %v2356_v7 = vld [vmem:[%s5427_s3 + $0x78] sm:$0xf] }
 0x4b8   : > { %v3457_v3 = vsel %vm102_vm0, %v3412_v40, 0.0  ;;  %v2620_v47 = vpack.c.bf16 %v2555_v41, %v2555_v41  ;;  %v2810_v11 = vrot.slane %v2805_v35, %v4435_v61  ;;  %4000 = vtanh.bf16 %v2867_v21  ;;  %v3360_v24 = vpop.permute.xlu0 %3359 }
 0x4b9   : > { %v2819_v22 = vpack.i.b16 %v2618_v20, %v2618_v20  ;;  %v2870_v15 = vadd.bf16 %v2796_v50, %v2350_v27  ;;  %4002 = vtanh.bf16 %v2868_v42  ;;  %v3458_v14 = vadd.f32 %v3457_v3, %v3456_v39 }
 0x4ba   : > { %v2621_v18 = vpack.c.bf16 %v2557_v28, %v2557_v28  ;;  %v2826_v19 = vpack.i.b16 %v2619_v0, %v2619_v0  ;;  %v3459_v40 = vsel %vm102_vm0, %v3413_v62, 0.0  ;;  %v2817_v63 = vrot.slane %v2812_v16, %v4435_v61  ;;  %v2357_v0 = vld [vmem:[%s5427_s3 + $0x7c] sm:$0xf] }
 0x4bb   : > { %v2871_v36 = vadd.bf16 %v2803_v45, %v2351_v31  ;;  %4004 = vtanh.bf16 %v2869_v33  ;;  %v3460_v10 = vadd.f32 %v3459_v40, %v3458_v14  ;;  %v2833_v32 = vpack.i.b16 %v2620_v47, %v2620_v47  ;;  %v3364_v33 = vpop.permute.xlu1 %3363 }
 0x4bc   : > { %v2824_v4 = vrot.slane %v2819_v22, %v4435_v61  ;;  %v2872_v26 = vadd.bf16 %v2810_v11, %v2352_v44  ;;  %4006 = vtanh.bf16 %v2870_v15  ;;  %v2831_v41 = vrot.slane %v2826_v19, %v4435_v61 }
 0x4bd   : > { %v2840_v30 = vpack.i.b16 %v2621_v18, %v2621_v18  ;;  %v2873_v25 = vadd.bf16 %v2817_v63, %v2353_v37  ;;  %4008 = vtanh.bf16 %v2871_v36  ;;  %v2838_v43 = vrot.slane %v2833_v32, %v4435_v61  ;;  %v3368_v18 = vpop.permute.xlu0 %3367 }
 0x4be   : > { %v3991_v49 = vpop.eup %3990  ;;  %v2874_v38 = vadd.bf16 %v2824_v4, %v2354_v23  ;;  %4010 = vtanh.bf16 %v2872_v26  ;;  %v2875_v50 = vadd.bf16 %v2831_v41, %v2355_v12 }
 0x4bf   : > { %v3993_v5 = vpop.eup %3992  ;;  %v3126_v28 = vunpack.c.l.bf16 %v3991_v49  ;;  %v2845_v21 = vrot.slane %v2840_v30, %v4435_v61  ;;  %4012 = vtanh.bf16 %v2873_v25  ;;  %v2876_v39 = vadd.bf16 %v2838_v43, %v2356_v7 }
 0x4c0   : > { %v3995_v13 = vpop.eup %3994  ;;  %v3127_v48 = vunpack.c.l.bf16 %v3993_v5  ;;  %4014 = vtanh.bf16 %v2874_v38 }
 0x4c1   : > { %v3997_v1 = vpop.eup %3996  ;;  %v3128_v2 = vunpack.c.l.bf16 %v3995_v13  ;;  %v3414_v20 = vmul.f32 %v5317_v17, %v3126_v28  ;;  %v2877_v11 = vadd.bf16 %v2845_v21, %v2357_v0  ;;  %4016 = vtanh.bf16 %v2875_v50  ;;  %v3376_v12 = vpop.permute.xlu0 %3375 }
 0x4c2   : > { %v3999_v35 = vpop.eup %3998  ;;  %v3129_v42 = vunpack.c.l.bf16 %v3997_v1  ;;  %v3415_v46 = vmul.f32 %v5328_v6, %v3127_v48  ;;  %4018 = vtanh.bf16 %v2876_v39 }
 0x4c3   : > { %v4001_v27 = vpop.eup %4000  ;;  %v3130_v45 = vunpack.c.l.bf16 %v3999_v35  ;;  %v3416_v62 = vmul.f32 %v5338_v34, %v3128_v2  ;;  %v3461_v16 = vsel %vm102_vm0, %v3414_v20, 0.0  ;;  %4020 = vtanh.bf16 %v2877_v11 }
 0x4c4   : > { %v4003_v17 = vpop.eup %4002  ;;  %v3462_v3 = vadd.f32 %v3461_v16, %v3460_v10  ;;  %v3131_v61 = vunpack.c.l.bf16 %v4001_v27  ;;  %v3417_v31 = vmul.f32 %v3348_v60, %v3129_v42  ;;  %v3463_v6 = vsel %vm102_vm0, %v3415_v46, 0.0  ;;  %v3372_v60 = vpop.permute.xlu1 %3371 }
 0x4c5   : > { %v3132_v15 = vunpack.c.l.bf16 %v4003_v17  ;;  %v3418_v14 = vmul.f32 %v3352_v29, %v3130_v45  ;;  %v3465_v44 = vsel %vm102_vm0, %v3416_v62, 0.0  ;;  %v3384_v46 = vpop.permute.xlu0 %3383 }
 0x4c6   : > { %v4005_v47 = vpop.eup %4004  ;;  %v3464_v22 = vadd.f32 %v3463_v6, %v3462_v3  ;;  %v3419_v63 = vmul.f32 %v3356_v9, %v3131_v61  ;;  %v3467_v36 = vsel %vm102_vm0, %v3417_v31, 0.0 }
 0x4c7   : > { %v4007_v34 = vpop.eup %4006  ;;  %v3133_v40 = vunpack.c.l.bf16 %v4005_v47  ;;  %v3420_v4 = vmul.f32 %v3360_v24, %v3132_v15  ;;  %v3469_v26 = vsel %vm102_vm0, %v3418_v14, 0.0 }
 0x4c8   : > { %v3466_v19 = vadd.f32 %v3465_v44, %v3464_v22  ;;  %v4009_v10 = vpop.eup %4008  ;;  %v3134_v32 = vunpack.c.l.bf16 %v4007_v34  ;;  %v3471_v30 = vsel %vm102_vm0, %v3419_v63, 0.0  ;;  %v3380_v48 = vpop.permute.xlu1 %3379 }
 0x4c9   : > { %v4011_v49 = vpop.eup %4010  ;;  %v3135_v23 = vunpack.c.l.bf16 %v4009_v10  ;;  %v3421_v41 = vmul.f32 %v3364_v33, %v3133_v40  ;;  %v3473_v13 = vsel %vm102_vm0, %v3420_v4, 0.0  ;;  %v3392_v22 = vpop.permute.xlu0 %3391 }
 0x4ca   : > { %v3468_v37 = vadd.f32 %v3467_v36, %v3466_v19  ;;  %v4013_v5 = vpop.eup %4012  ;;  %v3136_v9 = vunpack.c.l.bf16 %v4011_v49  ;;  %v3422_v28 = vmul.f32 %v3368_v18, %v3134_v32 }
 0x4cb   : > { %v4015_v43 = vpop.eup %4014  ;;  %v3137_v7 = vunpack.c.l.bf16 %v4013_v5  ;;  %v3423_v38 = vmul.f32 %v3372_v60, %v3135_v23  ;;  %v3475_v2 = vsel %vm102_vm0, %v3421_v41, 0.0  ;;  %v5558_v5 = vcvt.s32.f32 %v4144_v8 }
 0x4cc   : > { %v3470_v29 = vadd.f32 %v3469_v26, %v3468_v37  ;;  %v4017_v20 = vpop.eup %4016  ;;  %v3138_v24 = vunpack.c.l.bf16 %v4015_v43  ;;  %v3424_v21 = vmul.f32 %v3376_v12, %v3136_v9  ;;  %v3477_v50 = vsel %vm102_vm0, %v3422_v28, 0.0  ;;  %v3388_v17 = vpop.permute.xlu1 %3387 }
 0x4cd   : > { %v4019_v42 = vpop.eup %4018  ;;  %v3139_v0 = vunpack.c.l.bf16 %v4017_v20  ;;  %v3425_v45 = vmul.f32 %v3380_v48, %v3137_v7  ;;  %v3479_v62 = vsel %vm102_vm0, %v3423_v38, 0.0  ;;  %v3526_v20 = vld [vmem:[%s5424_s0 + $0x8] sm:$0xff] }
 0x4ce   : > { %v3472_v25 = vadd.f32 %v3471_v30, %v3470_v29  ;;  %v4021_v16 = vpop.eup %4020  ;;  %v3140_v39 = vunpack.c.l.bf16 %v4019_v42  ;;  %v3426_v3 = vmul.f32 %v3384_v46, %v3138_v24  ;;  %v3481_v61 = vsel %vm102_vm0, %v3424_v21, 0.0 }
 0x4cf   : > { %v3141_v6 = vunpack.c.l.bf16 %v4021_v16  ;;  %v3427_v47 = vmul.f32 %v3388_v17, %v3139_v0  ;;  %v3483_v11 = vsel %vm102_vm0, %v3425_v45, 0.0  ;;  %v5559_v24 = vmov %v5558_v5 }
 0x4d0   : > { %v3474_v1 = vadd.f32 %v3473_v13, %v3472_v25  ;;  %v3428_v14 = vmul.f32 %v3392_v22, %v3140_v39  ;;  %v3485_v44 = vsel %vm102_vm0, %v3426_v3, 0.0  ;;  %v3396_v34 = vpop.permute.xlu1 %3395  ;;  %v4038_v42 = vmov 0.0  }
 0x4d1   : > { %v3429_v19 = vmul.f32 %v3396_v34, %v3141_v6  ;;  %v3487_v40 = vsel %vm102_vm0, %v3427_v47, 0.0 }
 0x4d2   : > { %v3476_v35 = vadd.f32 %v3475_v2, %v3474_v1  ;;  %v3489_v36 = vsel %vm102_vm0, %v3428_v14, 0.0  ;;  %v3525_v2 = vld [vmem:[%s5424_s0] sm:$0xff] }
 0x4d3   : > { %v3491_v60 = vsel %vm102_vm0, %v3429_v19, 0.0 }
 0x4d4   : > { %v3478_v27 = vadd.f32 %v3477_v50, %v3476_v35 }
 0x4d6   : > { %v3480_v33 = vadd.f32 %v3479_v62, %v3478_v27 }
 0x4d8   : > { %v3482_v31 = vadd.f32 %v3481_v61, %v3480_v33 }
 0x4da   : > { %v3484_v15 = vadd.f32 %v3483_v11, %v3482_v31 }
 0x4dc   : > { %v3486_v18 = vadd.f32 %v3485_v44, %v3484_v15 }
 0x4de   : > { %v3488_v63 = vadd.f32 %v3487_v40, %v3486_v18 }
 0x4e0   : > { %v3490_v10 = vadd.f32 %v3489_v36, %v3488_v63 }
 0x4e2   : > { %v3492_v37 = vadd.f32 %v3491_v60, %v3490_v10 }
 0x4e4   : > { %v3493_v32 = vsel %vm102_vm0, %v3492_v37, -inf }
 0x4e5   : > { %v3494_v4 = vrot.slane %v3493_v32, 4 }
 0x4e7   : > { %v3495_v26 = vmax.f32 %v3493_v32, %v3494_v4 }
 0x4e9   : > { %v3496_v49 = vrot.slane %v3495_v26, 2 }
 0x4eb   : > { %v3497_v29 = vmax.f32 %v3495_v26, %v3496_v49 }
 0x4ed   : > { %v3498_v23 = vrot.slane %v3497_v29, 1 }
 0x4ef   : > { %v3499_v41 = vmax.f32 %v3497_v29, %v3498_v23 }
 0x4f1   : > { %v3500_v30 = vsub.f32 %v3492_v37, %v3499_v41  ;;  %vm3513_vm11 = vcmp.eq.f32.partialorder %v3492_v37, %v3499_v41 }
 0x4f2   : > { %v3514_v12 = vsel %vm3513_vm11, %v5558_v5, 8.0 }
 0x4f3   : > { %v3501_v25 = vmul.f32 1.442695, %v3500_v30  ;;  %v3515_v9 = vsel %vm102_vm0, %v3514_v12, inf }
 0x4f4   : > { %v3516_v28 = vrot.slane %v3515_v9, 4 }
 0x4f5   : > { %4022 = vpow2.f32 %v3501_v25 }
 0x4f6   : > { %v3517_v13 = vmin.f32 %v3515_v9, %v3516_v28 }
 0x4f8   : > { %v3518_v43 = vrot.slane %v3517_v13, 2 }
 0x4fa   : > { %v3519_v48 = vmin.f32 %v3517_v13, %v3518_v43 }
 0x4fc   : > { %v3520_v1 = vrot.slane %v3519_v48, 1 }
 0x4fe   : > { %v3521_v7 = vmin.f32 %v3519_v48, %v3520_v1 }
 0x4ff   : > { %v4023_v38 = vpop.eup %4022 }
 0x500   : > { %v3503_v35 = vsel %vm102_vm0, %v4023_v38, 0.0  ;;  %vm3522_vm12 = vcmp.eq.f32.partialorder %v5559_v24, %v3521_v7  ;;  %v3829_v21 = vtrunc.f32 %v3521_v7 }
 0x501   : > { %v3504_v50 = vrot.slane %v3503_v35, 4  ;;  %v3601_v46 = vsel %vm3522_vm12, 1.0, %v4038_v42 }
 0x502   : > { %v3527_v27 = vmul.f32 %v3601_v46, %v3525_v2  ;;  %v3528_v0 = vmul.f32 %v3601_v46, %v3526_v20  ;;  %v3830_v45 = vcvt.f32.s32 %v3829_v21 }
 0x503   : > { %v3505_v62 = vadd.f32 %v3504_v50, %v3503_v35 }
 0x504   : > { %v3529_v16 = vsel %vm102_vm0, %v3527_v27, 0.0  ;;  %v3536_v17 = vsel %vm102_vm0, %v3528_v0, 0.0  ;;  %3551 = vst.msk [vmem:[%s3549_s17] sm:$0x1] %vm3550_vm13, %v3830_v45 }
 0x505   : > { %v3506_v33 = vrot.slane %v3505_v62, 2  ;;  %v3530_v39 = vrot.slane %v3529_v16, 4  ;;  %v3537_v3 = vrot.slane %v3536_v17, 4 }
 0x507   : > { %v3507_v61 = vadd.f32 %v3506_v33, %v3505_v62  ;;  %v3531_v31 = vadd.f32 %v3530_v39, %v3529_v16  ;;  %v3538_v6 = vadd.f32 %v3537_v3, %v3536_v17 }
 0x509   : > { %v3508_v47 = vrot.slane %v3507_v61, 1  ;;  %v3532_v11 = vrot.slane %v3531_v31, 2  ;;  %v3539_v22 = vrot.slane %v3538_v6, 2 }
 0x50b   : > { %v3509_v15 = vadd.f32 %v3508_v47, %v3507_v61  ;;  %v3533_v14 = vadd.f32 %v3532_v11, %v3531_v31  ;;  %v3540_v44 = vadd.f32 %v3539_v22, %v3538_v6 }
 0x50d   : > { %4024 = vlog2.f32 %v3509_v15  ;;  %v3534_v34 = vrot.slane %v3533_v14, 1  ;;  %v3541_v18 = vrot.slane %v3540_v44, 1 }
 0x50f   : > { %v3535_v19 = vadd.f32 %v3534_v34, %v3533_v14  ;;  %v3542_v40 = vadd.f32 %v3541_v18, %v3540_v44 }
 0x511   : > { %v3545_v63 = vsel %vm2190_vm4, %v3542_v40, %v3535_v19 }
 0x512   : > { %3547 = vst.msk [vmem:[#allocation3] sm:$0x3] %vm107_vm1, %v3545_v63 }
 0x516   :  { %113 = sbr.rel (!%p111_p0) target bundleno = 28 (0x1c), region = 85 }
 0x517   : > { %v4025_v36 = vpop.eup %4024 }
 0x518   : > { %v3511_v10 = vmul.f32 0.6931472, %v4025_v36 }
 0x51a   : > { %v3512_v60 = vsub.f32 0.0, %v3511_v10 }
 0x51c   : > { %3553 = vst.msk [vmem:[%s3552_s18] sm:$0x1] %vm3550_vm13, %v3512_v60 }

</bundles_post_ra>
